<compile_context>
chip_gen: v5e
topology: v5e:2x2
jax: 0.10.0
libtpu: 0.0.40
codegen_flags: <defaults>
</compile_context>

<pallas_src>
import functools

import jax
import jax.numpy as jnp
import numpy as np
from jax import lax
from jax.experimental import pallas as pl
from jax.experimental.pallas import tpu as pltpu


def conv_block_kernel(x_ref, w1_ref, b1_ref, w2_ref, b2_ref, o_ref, mid_ref):
    """Fused conv3x3 -> ReLU -> conv3x3 -> ReLU for one batch element.

    x_ref  : (1, H+2, W+2, Cin)   zero-padded input tile (VMEM)
    w1_ref : (9*Cin, Cmid)        conv1 weights, taps stacked along rows (HWIO order)
    b1_ref : (1, Cmid)            conv1 bias
    w2_ref : (9*Cmid, Cout)       conv2 weights, taps stacked along rows
    b2_ref : (1, Cout)            conv2 bias
    o_ref  : (1, H*W, Cout)       output tile (spatial dims flattened)
    mid_ref: (H+2, W+2, Cmid)     VMEM scratch: zero-padded conv1 activation
    """
    Hp2, Wp2, Cmid = mid_ref.shape
    H, W = Hp2 - 2, Wp2 - 2
    Cin = x_ref.shape[3]
    Cout = o_ref.shape[2]
    HW = H * W

    # ---- conv1 + ReLU : 9 whole-image matmuls (M = H*W) ------------------
    # Accumulator is initialized with the broadcast bias (no separate add).
    acc1 = jnp.broadcast_to(b1_ref[...], (HW, Cmid)).astype(jnp.float32)
    for dh in range(3):
        for dw in range(3):
            t = dh * 3 + dw
            patch = x_ref[0, dh:dh + H, dw:dw + W, :].reshape(HW, Cin)
            acc1 = acc1 + jnp.dot(patch, w1_ref[t * Cin:(t + 1) * Cin, :],
                                  preferred_element_type=jnp.float32)
    mid = jnp.maximum(acc1, 0.0).reshape(H, W, Cmid)

    # Zero only the 1-pixel border of the padded scratch; the interior is
    # fully overwritten below.  (Done every step: scratch persists per core.)
    zrow = jnp.zeros((1, Wp2, Cmid), jnp.float32)
    mid_ref[0:1, :, :] = zrow
    mid_ref[H + 1:H + 2, :, :] = zrow
    zcol = jnp.zeros((H, 1, Cmid), jnp.float32)
    mid_ref[1:H + 1, 0:1, :] = zcol
    mid_ref[1:H + 1, W + 1:W + 2, :] = zcol
    mid_ref[1:H + 1, 1:W + 1, :] = mid

    # ---- conv2 + ReLU : 9 whole-image matmuls -----------------------------
    acc2 = jnp.broadcast_to(b2_ref[...], (HW, Cout)).astype(jnp.float32)
    for dh in range(3):
        for dw in range(3):
            t = dh * 3 + dw
            patch = mid_ref[dh:dh + H, dw:dw + W, :].reshape(HW, Cmid)
            acc2 = acc2 + jnp.dot(patch, w2_ref[t * Cmid:(t + 1) * Cmid, :],
                                  preferred_element_type=jnp.float32)

    # Single whole-slab store for this batch element.
    o_ref[0, :, :] = jnp.maximum(acc2, 0.0).astype(o_ref.dtype)


@jax.jit
def conv_block_forward(x_nchw, w1_hwio, b1, w2_hwio, b2):
    """Conv_Block forward. x_nchw: (N, Cin, H, W) float32 -> (N, Cout, H, W)."""
    N, Cin, H, W = x_nchw.shape
    Cmid = w1_hwio.shape[3]
    Cout = w2_hwio.shape[3]

    # Glue: NCHW -> NHWC, explicit zero padding (padding=1), 2D tap-major weights.
    x_nhwc = jnp.transpose(x_nchw, (0, 2, 3, 1)).astype(jnp.float32)
    x_pad = jnp.pad(x_nhwc, ((0, 0), (1, 1), (1, 1), (0, 0)))
    w1_2d = w1_hwio.astype(jnp.float32).reshape(9 * Cin, Cmid)
    w2_2d = w2_hwio.astype(jnp.float32).reshape(9 * Cmid, Cout)

    # NOTE: whole-image-per-grid-step.  For large H/W/Cmid (v7x 64 MiB VMEM)
    # a row-block grid axis with halo handling would be added here.
    out_flat = pl.pallas_call(
        conv_block_kernel,
        out_shape=jax.ShapeDtypeStruct((N, H * W, Cout), jnp.float32),
        grid_spec=pltpu.PrefetchScalarGridSpec(
            num_scalar_prefetch=0,
            grid=(N,),
            in_specs=[
                pl.BlockSpec((1, H + 2, W + 2, Cin), lambda n: (n, 0, 0, 0)),
                pl.BlockSpec((9 * Cin, Cmid), lambda n: (0, 0)),
                pl.BlockSpec((1, Cmid), lambda n: (0, 0)),
                pl.BlockSpec((9 * Cmid, Cout), lambda n: (0, 0)),
                pl.BlockSpec((1, Cout), lambda n: (0, 0)),
            ],
            out_specs=pl.BlockSpec((1, H * W, Cout), lambda n: (n, 0, 0)),
            scratch_shapes=[pltpu.VMEM((H + 2, W + 2, Cmid), jnp.float32)],
        ),
        compiler_params=pltpu.CompilerParams(
            dimension_semantics=("parallel",)),
    )(x_pad, w1_2d, b1.reshape(1, Cmid).astype(jnp.float32),
      w2_2d, b2.reshape(1, Cout).astype(jnp.float32))

    out_nhwc = out_flat.reshape(N, H, W, Cout)
    return jnp.transpose(out_nhwc, (0, 3, 1, 2))


def _reference_forward(x_nchw, w1_hwio, b1, w2_hwio, b2):
    """Pure-JAX reference (lax conv) mirroring PyTorch Conv2d semantics."""
    dn = ("NCHW", "OIHW", "NCHW")
    w1_oihw = jnp.transpose(w1_hwio, (3, 2, 0, 1))
    w2_oihw = jnp.transpose(w2_hwio, (3, 2, 0, 1))
    y = lax.conv_general_dilated(x_nchw, w1_oihw, (1, 1), "SAME",
                                 dimension_numbers=dn)
    y = jnp.maximum(y + b1[None, :, None, None], 0.0)
    y = lax.conv_general_dilated(y, w2_oihw, (1, 1), "SAME",
                                 dimension_numbers=dn)
    y = jnp.maximum(y + b2[None, :, None, None], 0.0)
    return y


if __name__ == "__main__":
    # Small shapes: batch=2, in_channels=4, out_channels=8, spatial 16x16,
    # intermediate_channel_multiplier=1 -> Cmid = 8.
    N, Cin, H, W = 2, 4, 16, 16
    Cout = 8
    Cmid = Cout * 1  # intermediate_channel_multiplier = 1

    key = jax.random.PRNGKey(0)
    kx, kw1, kb1, kw2, kb2 = jax.random.split(key, 5)

    x = jax.random.normal(kx, (N, Cin, H, W), dtype=jnp.float32)
    # Deterministic synthetic parameters (HWIO layout for the kernel).
    w1 = jax.random.normal(kw1, (3, 3, Cin, Cmid), dtype=jnp.float32) * 0.1
    b1 = jax.random.normal(kb1, (Cmid,), dtype=jnp.float32) * 0.1
    w2 = jax.random.normal(kw2, (3, 3, Cmid, Cout), dtype=jnp.float32) * 0.1
    b2 = jax.random.normal(kb2, (Cout,), dtype=jnp.float32) * 0.1

    out = conv_block_forward(x, w1, b1, w2, b2)
    out = jax.block_until_ready(out)

    ref = jax.block_until_ready(_reference_forward(x, w1, b1, w2, b2))
    np.testing.assert_allclose(np.asarray(out), np.asarray(ref),
                               rtol=1e-4, atol=1e-4)

    # TODO(synk): dropout (inactive at default dropout_perc=0) and BatchNorm
    # (inactive at default use_batch_norm=False) are not implemented.
    print("KERNEL_OK")
</pallas_src>

<mosaic_0001>
module attributes {stable_mosaic.version = 11 : i64} {
  func.func @conv_block_kernel(%arg0: i32, %arg1: memref<1x18x18x4xf32, #tpu.memory_space<vmem>>, %arg2: memref<36x8xf32, #tpu.memory_space<vmem>>, %arg3: memref<1x8xf32, #tpu.memory_space<vmem>>, %arg4: memref<72x8xf32, #tpu.memory_space<vmem>>, %arg5: memref<1x8xf32, #tpu.memory_space<vmem>>, %arg6: memref<1x256x8xf32, #tpu.memory_space<vmem>>, %arg7: memref<18x18x8xf32, #tpu.memory_space<vmem>>) attributes {dimension_semantics = [#tpu.dimension_semantics<parallel>], iteration_bounds = array<i64: 2>, scalar_prefetch = 0 : i64, scratch_operands = 1 : i64, tpu.core_type = #tpu.core_type<tc>, window_params = [{transform_indices = @transform_0, window_bounds = array<i64: 1, 18, 18, 4>}, {pipeline_mode = #tpu.pipeline_mode<synchronous>, transform_indices = @transform_1, window_bounds = array<i64: 36, 8>}, {pipeline_mode = #tpu.pipeline_mode<synchronous>, transform_indices = @transform_2, window_bounds = array<i64: 1, 8>}, {pipeline_mode = #tpu.pipeline_mode<synchronous>, transform_indices = @transform_3, window_bounds = array<i64: 72, 8>}, {pipeline_mode = #tpu.pipeline_mode<synchronous>, transform_indices = @transform_4, window_bounds = array<i64: 1, 8>}, {transform_indices = @transform_5, window_bounds = array<i64: 1, 256, 8>}]} {
    %c0 = arith.constant 0 : index
    %c0_0 = arith.constant 0 : index
    %0 = vector.load %arg3[%c0, %c0_0] : memref<1x8xf32, #tpu.memory_space<vmem>>, vector<1x8xf32>
    %1 = vector.shape_cast %0 : vector<1x8xf32> to vector<1x8xf32>
    %2 = vector.broadcast %1 : vector<1x8xf32> to vector<256x8xf32>
    %c0_1 = arith.constant 0 : index
    %c0_2 = arith.constant 0 : index
    %c0_3 = arith.constant 0 : index
    %c0_4 = arith.constant 0 : index
    %3 = vector.load %arg1[%c0_1, %c0_2, %c0_3, %c0_4] : memref<1x18x18x4xf32, #tpu.memory_space<vmem>>, vector<1x16x16x4xf32>
    %4 = vector.shape_cast %3 : vector<1x16x16x4xf32> to vector<16x16x4xf32>
    %5 = vector.shape_cast %4 : vector<16x16x4xf32> to vector<256x4xf32>
    %c0_5 = arith.constant 0 : index
    %c0_6 = arith.constant 0 : index
    %6 = vector.load %arg2[%c0_5, %c0_6] : memref<36x8xf32, #tpu.memory_space<vmem>>, vector<4x8xf32>
    %cst = arith.constant dense<0.000000e+00> : vector<256x8xf32>
    %7 = tpu.matmul %5, %6, %cst {dimension_numbers = #tpu.dot_dimension_numbers<[1], [0], [0], [1], [0, 0, 1, 1], [], []>} : vector<256x4xf32>, vector<4x8xf32>, vector<256x8xf32> -> vector<256x8xf32>
    %8 = arith.addf %2, %7 : vector<256x8xf32>
    %c0_7 = arith.constant 0 : index
    %c0_8 = arith.constant 0 : index
    %c1 = arith.constant 1 : index
    %c0_9 = arith.constant 0 : index
    %9 = vector.load %arg1[%c0_7, %c0_8, %c1, %c0_9] : memref<1x18x18x4xf32, #tpu.memory_space<vmem>>, vector<1x16x16x4xf32>
    %10 = vector.shape_cast %9 : vector<1x16x16x4xf32> to vector<16x16x4xf32>
    %11 = vector.shape_cast %10 : vector<16x16x4xf32> to vector<256x4xf32>
    %c4 = arith.constant 4 : index
    %c0_10 = arith.constant 0 : index
    %12 = vector.load %arg2[%c4, %c0_10] : memref<36x8xf32, #tpu.memory_space<vmem>>, vector<4x8xf32>
    %cst_11 = arith.constant dense<0.000000e+00> : vector<256x8xf32>
    %13 = tpu.matmul %11, %12, %cst_11 {dimension_numbers = #tpu.dot_dimension_numbers<[1], [0], [0], [1], [0, 0, 1, 1], [], []>} : vector<256x4xf32>, vector<4x8xf32>, vector<256x8xf32> -> vector<256x8xf32>
    %14 = arith.addf %8, %13 : vector<256x8xf32>
    %c0_12 = arith.constant 0 : index
    %c0_13 = arith.constant 0 : index
    %c2 = arith.constant 2 : index
    %c0_14 = arith.constant 0 : index
    %15 = vector.load %arg1[%c0_12, %c0_13, %c2, %c0_14] : memref<1x18x18x4xf32, #tpu.memory_space<vmem>>, vector<1x16x16x4xf32>
    %16 = vector.shape_cast %15 : vector<1x16x16x4xf32> to vector<16x16x4xf32>
    %17 = vector.shape_cast %16 : vector<16x16x4xf32> to vector<256x4xf32>
    %c8 = arith.constant 8 : index
    %c0_15 = arith.constant 0 : index
    %18 = vector.load %arg2[%c8, %c0_15] : memref<36x8xf32, #tpu.memory_space<vmem>>, vector<4x8xf32>
    %cst_16 = arith.constant dense<0.000000e+00> : vector<256x8xf32>
    %19 = tpu.matmul %17, %18, %cst_16 {dimension_numbers = #tpu.dot_dimension_numbers<[1], [0], [0], [1], [0, 0, 1, 1], [], []>} : vector<256x4xf32>, vector<4x8xf32>, vector<256x8xf32> -> vector<256x8xf32>
    %20 = arith.addf %14, %19 : vector<256x8xf32>
    %c0_17 = arith.constant 0 : index
    %c1_18 = arith.constant 1 : index
    %c0_19 = arith.constant 0 : index
    %c0_20 = arith.constant 0 : index
    %21 = vector.load %arg1[%c0_17, %c1_18, %c0_19, %c0_20] : memref<1x18x18x4xf32, #tpu.memory_space<vmem>>, vector<1x16x16x4xf32>
    %22 = vector.shape_cast %21 : vector<1x16x16x4xf32> to vector<16x16x4xf32>
    %23 = vector.shape_cast %22 : vector<16x16x4xf32> to vector<256x4xf32>
    %c12 = arith.constant 12 : index
    %c0_21 = arith.constant 0 : index
    %24 = vector.load %arg2[%c12, %c0_21] : memref<36x8xf32, #tpu.memory_space<vmem>>, vector<4x8xf32>
    %cst_22 = arith.constant dense<0.000000e+00> : vector<256x8xf32>
    %25 = tpu.matmul %23, %24, %cst_22 {dimension_numbers = #tpu.dot_dimension_numbers<[1], [0], [0], [1], [0, 0, 1, 1], [], []>} : vector<256x4xf32>, vector<4x8xf32>, vector<256x8xf32> -> vector<256x8xf32>
    %26 = arith.addf %20, %25 : vector<256x8xf32>
    %c0_23 = arith.constant 0 : index
    %c1_24 = arith.constant 1 : index
    %c1_25 = arith.constant 1 : index
    %c0_26 = arith.constant 0 : index
    %27 = vector.load %arg1[%c0_23, %c1_24, %c1_25, %c0_26] : memref<1x18x18x4xf32, #tpu.memory_space<vmem>>, vector<1x16x16x4xf32>
    %28 = vector.shape_cast %27 : vector<1x16x16x4xf32> to vector<16x16x4xf32>
    %29 = vector.shape_cast %28 : vector<16x16x4xf32> to vector<256x4xf32>
    %c16 = arith.constant 16 : index
    %c0_27 = arith.constant 0 : index
    %30 = vector.load %arg2[%c16, %c0_27] : memref<36x8xf32, #tpu.memory_space<vmem>>, vector<4x8xf32>
    %cst_28 = arith.constant dense<0.000000e+00> : vector<256x8xf32>
    %31 = tpu.matmul %29, %30, %cst_28 {dimension_numbers = #tpu.dot_dimension_numbers<[1], [0], [0], [1], [0, 0, 1, 1], [], []>} : vector<256x4xf32>, vector<4x8xf32>, vector<256x8xf32> -> vector<256x8xf32>
    %32 = arith.addf %26, %31 : vector<256x8xf32>
    %c0_29 = arith.constant 0 : index
    %c1_30 = arith.constant 1 : index
    %c2_31 = arith.constant 2 : index
    %c0_32 = arith.constant 0 : index
    %33 = vector.load %arg1[%c0_29, %c1_30, %c2_31, %c0_32] : memref<1x18x18x4xf32, #tpu.memory_space<vmem>>, vector<1x16x16x4xf32>
    %34 = vector.shape_cast %33 : vector<1x16x16x4xf32> to vector<16x16x4xf32>
    %35 = vector.shape_cast %34 : vector<16x16x4xf32> to vector<256x4xf32>
    %c20 = arith.constant 20 : index
    %c0_33 = arith.constant 0 : index
    %36 = vector.load %arg2[%c20, %c0_33] : memref<36x8xf32, #tpu.memory_space<vmem>>, vector<4x8xf32>
    %cst_34 = arith.constant dense<0.000000e+00> : vector<256x8xf32>
    %37 = tpu.matmul %35, %36, %cst_34 {dimension_numbers = #tpu.dot_dimension_numbers<[1], [0], [0], [1], [0, 0, 1, 1], [], []>} : vector<256x4xf32>, vector<4x8xf32>, vector<256x8xf32> -> vector<256x8xf32>
    %38 = arith.addf %32, %37 : vector<256x8xf32>
    %c0_35 = arith.constant 0 : index
    %c2_36 = arith.constant 2 : index
    %c0_37 = arith.constant 0 : index
    %c0_38 = arith.constant 0 : index
    %39 = vector.load %arg1[%c0_35, %c2_36, %c0_37, %c0_38] : memref<1x18x18x4xf32, #tpu.memory_space<vmem>>, vector<1x16x16x4xf32>
    %40 = vector.shape_cast %39 : vector<1x16x16x4xf32> to vector<16x16x4xf32>
    %41 = vector.shape_cast %40 : vector<16x16x4xf32> to vector<256x4xf32>
    %c24 = arith.constant 24 : index
    %c0_39 = arith.constant 0 : index
    %42 = vector.load %arg2[%c24, %c0_39] : memref<36x8xf32, #tpu.memory_space<vmem>>, vector<4x8xf32>
    %cst_40 = arith.constant dense<0.000000e+00> : vector<256x8xf32>
    %43 = tpu.matmul %41, %42, %cst_40 {dimension_numbers = #tpu.dot_dimension_numbers<[1], [0], [0], [1], [0, 0, 1, 1], [], []>} : vector<256x4xf32>, vector<4x8xf32>, vector<256x8xf32> -> vector<256x8xf32>
    %44 = arith.addf %38, %43 : vector<256x8xf32>
    %c0_41 = arith.constant 0 : index
    %c2_42 = arith.constant 2 : index
    %c1_43 = arith.constant 1 : index
    %c0_44 = arith.constant 0 : index
    %45 = vector.load %arg1[%c0_41, %c2_42, %c1_43, %c0_44] : memref<1x18x18x4xf32, #tpu.memory_space<vmem>>, vector<1x16x16x4xf32>
    %46 = vector.shape_cast %45 : vector<1x16x16x4xf32> to vector<16x16x4xf32>
    %47 = vector.shape_cast %46 : vector<16x16x4xf32> to vector<256x4xf32>
    %c28 = arith.constant 28 : index
    %c0_45 = arith.constant 0 : index
    %48 = vector.load %arg2[%c28, %c0_45] : memref<36x8xf32, #tpu.memory_space<vmem>>, vector<4x8xf32>
    %cst_46 = arith.constant dense<0.000000e+00> : vector<256x8xf32>
    %49 = tpu.matmul %47, %48, %cst_46 {dimension_numbers = #tpu.dot_dimension_numbers<[1], [0], [0], [1], [0, 0, 1, 1], [], []>} : vector<256x4xf32>, vector<4x8xf32>, vector<256x8xf32> -> vector<256x8xf32>
    %50 = arith.addf %44, %49 : vector<256x8xf32>
    %c0_47 = arith.constant 0 : index
    %c2_48 = arith.constant 2 : index
    %c2_49 = arith.constant 2 : index
    %c0_50 = arith.constant 0 : index
    %51 = vector.load %arg1[%c0_47, %c2_48, %c2_49, %c0_50] : memref<1x18x18x4xf32, #tpu.memory_space<vmem>>, vector<1x16x16x4xf32>
    %52 = vector.shape_cast %51 : vector<1x16x16x4xf32> to vector<16x16x4xf32>
    %53 = vector.shape_cast %52 : vector<16x16x4xf32> to vector<256x4xf32>
    %c32 = arith.constant 32 : index
    %c0_51 = arith.constant 0 : index
    %54 = vector.load %arg2[%c32, %c0_51] : memref<36x8xf32, #tpu.memory_space<vmem>>, vector<4x8xf32>
    %cst_52 = arith.constant dense<0.000000e+00> : vector<256x8xf32>
    %55 = tpu.matmul %53, %54, %cst_52 {dimension_numbers = #tpu.dot_dimension_numbers<[1], [0], [0], [1], [0, 0, 1, 1], [], []>} : vector<256x4xf32>, vector<4x8xf32>, vector<256x8xf32> -> vector<256x8xf32>
    %56 = arith.addf %50, %55 : vector<256x8xf32>
    %cst_53 = arith.constant 0.000000e+00 : f32
    %57 = vector.broadcast %cst_53 : f32 to vector<256x8xf32>
    %58 = arith.maximumf %56, %57 : vector<256x8xf32>
    %59 = vector.shape_cast %58 : vector<256x8xf32> to vector<16x16x8xf32>
    %cst_54 = arith.constant 0.000000e+00 : f32
    %60 = vector.broadcast %cst_54 : f32 to vector<1x18x8xf32>
    %c0_55 = arith.constant 0 : index
    %c0_56 = arith.constant 0 : index
    %c0_57 = arith.constant 0 : index
    %61 = vector.load %arg7[%c0_55, %c0_56, %c0_57] : memref<18x18x8xf32, #tpu.memory_space<vmem>>, vector<1x18x8xf32>
    tpu.vector_store %arg7[%c0_55, %c0_56, %c0_57], %60 {strides = array<i32>} : memref<18x18x8xf32, #tpu.memory_space<vmem>>, vector<1x18x8xf32>,
    %c17 = arith.constant 17 : index
    %c0_58 = arith.constant 0 : index
    %c0_59 = arith.constant 0 : index
    %62 = vector.load %arg7[%c17, %c0_58, %c0_59] : memref<18x18x8xf32, #tpu.memory_space<vmem>>, vector<1x18x8xf32>
    tpu.vector_store %arg7[%c17, %c0_58, %c0_59], %60 {strides = array<i32>} : memref<18x18x8xf32, #tpu.memory_space<vmem>>, vector<1x18x8xf32>,
    %cst_60 = arith.constant 0.000000e+00 : f32
    %63 = vector.broadcast %cst_60 : f32 to vector<16x1x8xf32>
    %c1_61 = arith.constant 1 : index
    %c0_62 = arith.constant 0 : index
    %c0_63 = arith.constant 0 : index
    %64 = vector.load %arg7[%c1_61, %c0_62, %c0_63] : memref<18x18x8xf32, #tpu.memory_space<vmem>>, vector<16x1x8xf32>
    tpu.vector_store %arg7[%c1_61, %c0_62, %c0_63], %63 {strides = array<i32>} : memref<18x18x8xf32, #tpu.memory_space<vmem>>, vector<16x1x8xf32>,
    %c1_64 = arith.constant 1 : index
    %c17_65 = arith.constant 17 : index
    %c0_66 = arith.constant 0 : index
    %65 = vector.load %arg7[%c1_64, %c17_65, %c0_66] : memref<18x18x8xf32, #tpu.memory_space<vmem>>, vector<16x1x8xf32>
    tpu.vector_store %arg7[%c1_64, %c17_65, %c0_66], %63 {strides = array<i32>} : memref<18x18x8xf32, #tpu.memory_space<vmem>>, vector<16x1x8xf32>,
    %c1_67 = arith.constant 1 : index
    %c1_68 = arith.constant 1 : index
    %c0_69 = arith.constant 0 : index
    %66 = vector.load %arg7[%c1_67, %c1_68, %c0_69] : memref<18x18x8xf32, #tpu.memory_space<vmem>>, vector<16x16x8xf32>
    tpu.vector_store %arg7[%c1_67, %c1_68, %c0_69], %59 {strides = array<i32>} : memref<18x18x8xf32, #tpu.memory_space<vmem>>, vector<16x16x8xf32>,
    %c0_70 = arith.constant 0 : index
    %c0_71 = arith.constant 0 : index
    %67 = vector.load %arg5[%c0_70, %c0_71] : memref<1x8xf32, #tpu.memory_space<vmem>>, vector<1x8xf32>
    %68 = vector.shape_cast %67 : vector<1x8xf32> to vector<1x8xf32>
    %69 = vector.broadcast %68 : vector<1x8xf32> to vector<256x8xf32>
    %c0_72 = arith.constant 0 : index
    %c0_73 = arith.constant 0 : index
    %c0_74 = arith.constant 0 : index
    %70 = vector.load %arg7[%c0_72, %c0_73, %c0_74] : memref<18x18x8xf32, #tpu.memory_space<vmem>>, vector<16x16x8xf32>
    %71 = vector.shape_cast %70 : vector<16x16x8xf32> to vector<256x8xf32>
    %c0_75 = arith.constant 0 : index
    %c0_76 = arith.constant 0 : index
    %72 = vector.load %arg4[%c0_75, %c0_76] : memref<72x8xf32, #tpu.memory_space<vmem>>, vector<8x8xf32>
    %cst_77 = arith.constant dense<0.000000e+00> : vector<256x8xf32>
    %73 = tpu.matmul %71, %72, %cst_77 {dimension_numbers = #tpu.dot_dimension_numbers<[1], [0], [0], [1], [0, 0, 1, 1], [], []>} : vector<256x8xf32>, vector<8x8xf32>, vector<256x8xf32> -> vector<256x8xf32>
    %74 = arith.addf %69, %73 : vector<256x8xf32>
    %c0_78 = arith.constant 0 : index
    %c1_79 = arith.constant 1 : index
    %c0_80 = arith.constant 0 : index
    %75 = vector.load %arg7[%c0_78, %c1_79, %c0_80] : memref<18x18x8xf32, #tpu.memory_space<vmem>>, vector<16x16x8xf32>
    %76 = vector.shape_cast %75 : vector<16x16x8xf32> to vector<256x8xf32>
    %c8_81 = arith.constant 8 : index
    %c0_82 = arith.constant 0 : index
    %77 = vector.load %arg4[%c8_81, %c0_82] : memref<72x8xf32, #tpu.memory_space<vmem>>, vector<8x8xf32>
    %cst_83 = arith.constant dense<0.000000e+00> : vector<256x8xf32>
    %78 = tpu.matmul %76, %77, %cst_83 {dimension_numbers = #tpu.dot_dimension_numbers<[1], [0], [0], [1], [0, 0, 1, 1], [], []>} : vector<256x8xf32>, vector<8x8xf32>, vector<256x8xf32> -> vector<256x8xf32>
    %79 = arith.addf %74, %78 : vector<256x8xf32>
    %c0_84 = arith.constant 0 : index
    %c2_85 = arith.constant 2 : index
    %c0_86 = arith.constant 0 : index
    %80 = vector.load %arg7[%c0_84, %c2_85, %c0_86] : memref<18x18x8xf32, #tpu.memory_space<vmem>>, vector<16x16x8xf32>
    %81 = vector.shape_cast %80 : vector<16x16x8xf32> to vector<256x8xf32>
    %c16_87 = arith.constant 16 : index
    %c0_88 = arith.constant 0 : index
    %82 = vector.load %arg4[%c16_87, %c0_88] : memref<72x8xf32, #tpu.memory_space<vmem>>, vector<8x8xf32>
    %cst_89 = arith.constant dense<0.000000e+00> : vector<256x8xf32>
    %83 = tpu.matmul %81, %82, %cst_89 {dimension_numbers = #tpu.dot_dimension_numbers<[1], [0], [0], [1], [0, 0, 1, 1], [], []>} : vector<256x8xf32>, vector<8x8xf32>, vector<256x8xf32> -> vector<256x8xf32>
    %84 = arith.addf %79, %83 : vector<256x8xf32>
    %c1_90 = arith.constant 1 : index
    %c0_91 = arith.constant 0 : index
    %c0_92 = arith.constant 0 : index
    %85 = vector.load %arg7[%c1_90, %c0_91, %c0_92] : memref<18x18x8xf32, #tpu.memory_space<vmem>>, vector<16x16x8xf32>
    %86 = vector.shape_cast %85 : vector<16x16x8xf32> to vector<256x8xf32>
    %c24_93 = arith.constant 24 : index
    %c0_94 = arith.constant 0 : index
    %87 = vector.load %arg4[%c24_93, %c0_94] : memref<72x8xf32, #tpu.memory_space<vmem>>, vector<8x8xf32>
    %cst_95 = arith.constant dense<0.000000e+00> : vector<256x8xf32>
    %88 = tpu.matmul %86, %87, %cst_95 {dimension_numbers = #tpu.dot_dimension_numbers<[1], [0], [0], [1], [0, 0, 1, 1], [], []>} : vector<256x8xf32>, vector<8x8xf32>, vector<256x8xf32> -> vector<256x8xf32>
    %89 = arith.addf %84, %88 : vector<256x8xf32>
    %c1_96 = arith.constant 1 : index
    %c1_97 = arith.constant 1 : index
    %c0_98 = arith.constant 0 : index
    %90 = vector.load %arg7[%c1_96, %c1_97, %c0_98] : memref<18x18x8xf32, #tpu.memory_space<vmem>>, vector<16x16x8xf32>
    %91 = vector.shape_cast %90 : vector<16x16x8xf32> to vector<256x8xf32>
    %c32_99 = arith.constant 32 : index
    %c0_100 = arith.constant 0 : index
    %92 = vector.load %arg4[%c32_99, %c0_100] : memref<72x8xf32, #tpu.memory_space<vmem>>, vector<8x8xf32>
    %cst_101 = arith.constant dense<0.000000e+00> : vector<256x8xf32>
    %93 = tpu.matmul %91, %92, %cst_101 {dimension_numbers = #tpu.dot_dimension_numbers<[1], [0], [0], [1], [0, 0, 1, 1], [], []>} : vector<256x8xf32>, vector<8x8xf32>, vector<256x8xf32> -> vector<256x8xf32>
    %94 = arith.addf %89, %93 : vector<256x8xf32>
    %c1_102 = arith.constant 1 : index
    %c2_103 = arith.constant 2 : index
    %c0_104 = arith.constant 0 : index
    %95 = vector.load %arg7[%c1_102, %c2_103, %c0_104] : memref<18x18x8xf32, #tpu.memory_space<vmem>>, vector<16x16x8xf32>
    %96 = vector.shape_cast %95 : vector<16x16x8xf32> to vector<256x8xf32>
    %c40 = arith.constant 40 : index
    %c0_105 = arith.constant 0 : index
    %97 = vector.load %arg4[%c40, %c0_105] : memref<72x8xf32, #tpu.memory_space<vmem>>, vector<8x8xf32>
    %cst_106 = arith.constant dense<0.000000e+00> : vector<256x8xf32>
    %98 = tpu.matmul %96, %97, %cst_106 {dimension_numbers = #tpu.dot_dimension_numbers<[1], [0], [0], [1], [0, 0, 1, 1], [], []>} : vector<256x8xf32>, vector<8x8xf32>, vector<256x8xf32> -> vector<256x8xf32>
    %99 = arith.addf %94, %98 : vector<256x8xf32>
    %c2_107 = arith.constant 2 : index
    %c0_108 = arith.constant 0 : index
    %c0_109 = arith.constant 0 : index
    %100 = vector.load %arg7[%c2_107, %c0_108, %c0_109] : memref<18x18x8xf32, #tpu.memory_space<vmem>>, vector<16x16x8xf32>
    %101 = vector.shape_cast %100 : vector<16x16x8xf32> to vector<256x8xf32>
    %c48 = arith.constant 48 : index
    %c0_110 = arith.constant 0 : index
    %102 = vector.load %arg4[%c48, %c0_110] : memref<72x8xf32, #tpu.memory_space<vmem>>, vector<8x8xf32>
    %cst_111 = arith.constant dense<0.000000e+00> : vector<256x8xf32>
    %103 = tpu.matmul %101, %102, %cst_111 {dimension_numbers = #tpu.dot_dimension_numbers<[1], [0], [0], [1], [0, 0, 1, 1], [], []>} : vector<256x8xf32>, vector<8x8xf32>, vector<256x8xf32> -> vector<256x8xf32>
    %104 = arith.addf %99, %103 : vector<256x8xf32>
    %c2_112 = arith.constant 2 : index
    %c1_113 = arith.constant 1 : index
    %c0_114 = arith.constant 0 : index
    %105 = vector.load %arg7[%c2_112, %c1_113, %c0_114] : memref<18x18x8xf32, #tpu.memory_space<vmem>>, vector<16x16x8xf32>
    %106 = vector.shape_cast %105 : vector<16x16x8xf32> to vector<256x8xf32>
    %c56 = arith.constant 56 : index
    %c0_115 = arith.constant 0 : index
    %107 = vector.load %arg4[%c56, %c0_115] : memref<72x8xf32, #tpu.memory_space<vmem>>, vector<8x8xf32>
    %cst_116 = arith.constant dense<0.000000e+00> : vector<256x8xf32>
    %108 = tpu.matmul %106, %107, %cst_116 {dimension_numbers = #tpu.dot_dimension_numbers<[1], [0], [0], [1], [0, 0, 1, 1], [], []>} : vector<256x8xf32>, vector<8x8xf32>, vector<256x8xf32> -> vector<256x8xf32>
    %109 = arith.addf %104, %108 : vector<256x8xf32>
    %c2_117 = arith.constant 2 : index
    %c2_118 = arith.constant 2 : index
    %c0_119 = arith.constant 0 : index
    %110 = vector.load %arg7[%c2_117, %c2_118, %c0_119] : memref<18x18x8xf32, #tpu.memory_space<vmem>>, vector<16x16x8xf32>
    %111 = vector.shape_cast %110 : vector<16x16x8xf32> to vector<256x8xf32>
    %c64 = arith.constant 64 : index
    %c0_120 = arith.constant 0 : index
    %112 = vector.load %arg4[%c64, %c0_120] : memref<72x8xf32, #tpu.memory_space<vmem>>, vector<8x8xf32>
    %cst_121 = arith.constant dense<0.000000e+00> : vector<256x8xf32>
    %113 = tpu.matmul %111, %112, %cst_121 {dimension_numbers = #tpu.dot_dimension_numbers<[1], [0], [0], [1], [0, 0, 1, 1], [], []>} : vector<256x8xf32>, vector<8x8xf32>, vector<256x8xf32> -> vector<256x8xf32>
    %114 = arith.addf %109, %113 : vector<256x8xf32>
    %cst_122 = arith.constant 0.000000e+00 : f32
    %115 = vector.broadcast %cst_122 : f32 to vector<256x8xf32>
    %116 = arith.maximumf %114, %115 : vector<256x8xf32>
    %c0_123 = arith.constant 0 : index
    %c0_124 = arith.constant 0 : index
    %c0_125 = arith.constant 0 : index
    %117 = vector.load %arg6[%c0_123, %c0_124, %c0_125] : memref<1x256x8xf32, #tpu.memory_space<vmem>>, vector<1x256x8xf32>
    %118 = vector.shape_cast %117 : vector<1x256x8xf32> to vector<256x8xf32>
    %119 = vector.shape_cast %116 : vector<256x8xf32> to vector<1x256x8xf32>
    tpu.vector_store %arg6[%c0_123, %c0_124, %c0_125], %119 {strides = array<i32>} : memref<1x256x8xf32, #tpu.memory_space<vmem>>, vector<1x256x8xf32>,
    return
  }
  func.func @transform_0(%arg0: i32) -> (i32, i32, i32, i32) {
    %c0_i32 = arith.constant 0 : i32
    %c0_i32_0 = arith.constant 0 : i32
    %c0_i32_1 = arith.constant 0 : i32
    %c0_i32_2 = arith.constant 0 : i32
    return %arg0, %c0_i32, %c0_i32_0, %c0_i32_1 : i32, i32, i32, i32
  }
  func.func @transform_1(%arg0: i32) -> (i32, i32) {
    %c0_i32 = arith.constant 0 : i32
    %c0_i32_0 = arith.constant 0 : i32
    %c0_i32_1 = arith.constant 0 : i32
    return %c0_i32, %c0_i32_0 : i32, i32
  }
  func.func @transform_2(%arg0: i32) -> (i32, i32) {
    %c0_i32 = arith.constant 0 : i32
    %c0_i32_0 = arith.constant 0 : i32
    %c0_i32_1 = arith.constant 0 : i32
    return %c0_i32, %c0_i32_0 : i32, i32
  }
  func.func @transform_3(%arg0: i32) -> (i32, i32) {
    %c0_i32 = arith.constant 0 : i32
    %c0_i32_0 = arith.constant 0 : i32
    %c0_i32_1 = arith.constant 0 : i32
    return %c0_i32, %c0_i32_0 : i32, i32
  }
  func.func @transform_4(%arg0: i32) -> (i32, i32) {
    %c0_i32 = arith.constant 0 : i32
    %c0_i32_0 = arith.constant 0 : i32
    %c0_i32_1 = arith.constant 0 : i32
    return %c0_i32, %c0_i32_0 : i32, i32
  }
  func.func @transform_5(%arg0: i32) -> (i32, i32, i32) {
    %c0_i32 = arith.constant 0 : i32
    %c0_i32_0 = arith.constant 0 : i32
    %c0_i32_1 = arith.constant 0 : i32
    return %arg0, %c0_i32, %c0_i32_0 : i32, i32, i32
  }
}

</mosaic_0001>

<bundles_post_ra>
// kernel: conv_block_forward.1
= control target key start
LH: loop header
LB: loop body
LE: loop exit
PB: predicated region body
PF: predicated region fallthrough
CT: control target
= control target key end

     0   :  { %s6264_s18 = smov 0   ;;  %s8868_s0 = inlined_call_operand.vmem [shape: f32[2,18,18,4], index: 0, kind: input, shape index: {}]   ;;  %s8869_s1 = inlined_call_operand.vmem [shape: f32[36,8], index: 1, kind: input, shape index: {}]   ;;  %s8870_s2 = inlined_call_operand.vmem [shape: f32[1,8], index: 2, kind: input, shape index: {}]   ;;  %s8871_s3 = inlined_call_operand.vmem [shape: f32[72,8], index: 3, kind: input, shape index: {}]   ;;  %s8872_s4 = inlined_call_operand.vmem [shape: f32[1,8], index: 4, kind: input, shape index: {}]   ;;  %s8873_s5 = inlined_call_operand.vmem [shape: f32[2,256,8], index: 5, kind: output, shape index: {}]  }
   0x1 LB: > { %s5423_s19 = sadd.s32 4294967295, %s6231_s18   ;;  %p5427_p0 = scmp.ge.s32.totalorder %s6231_s18, 1  ;;  %s6231_s18 = sphi %s6264_s18, %s15_s18  }
   0x2   : > { %p187_p1 = scmp.lt.s32.totalorder %s6231_s18, 3 }
   0x4   : > { %p188_p2 = pnand %p5427_p0, %p187_p1 }
   0x6   : > { %191 = sbr.rel (%p188_p2) target bundleno = 1426 (0x592), region = 40 }
   0xb   : > { %v261_v0 = vld [vmem:[%s8869_s1] sm:$0xf]  ;;  %vm359_vm0 = vcmask 1043456   ;;  %v540_v1 = vld [vmem:[%s8869_s1 + $0x4] sm:$0xf]  ;;  %p215_p3 = scmp.lt.s32.totalorder %s5423_s19, 1 }
   0xc   : > { %5431 = vmatpush.msk.msra.mxu0 %vm359_vm0, %v261_v0  ;;  %6211 = vmatpush.msk.msra.mxu2 %vm359_vm0, %v261_v0  ;;  %v817_v2 = vld [vmem:[%s8869_s1 + $0x8] sm:$0xf]  ;;  %v1095_v3 = vld [vmem:[%s8869_s1 + $0xc] sm:$0xf]  ;;  %v1372_v4 = vld [vmem:[%s8869_s1 + $0x10] sm:$0xf] }
   0xd   : > { %6212 = vmatpush.msk.msra.mxu3 %vm359_vm0, %v540_v1  ;;  %s9138_s19 = smov (!%p215_p3, %s5423_s19), 1  ;;  %5464 = vmatpush.msk.msra.mxu1 %vm359_vm0, %v540_v1  ;;  %vm262_vm1 = vcmask 31744   ;;  %v1927_v57 = vld [vmem:[%s8869_s1 + $0x18] sm:$0xf]  ;;  %v2204_v58 = vld [vmem:[%s8869_s1 + $0x1c] sm:$0xf] }
   0xe   : > { %5497 = vmatpush.msk.msrb.mxu2 %vm359_vm0, %v817_v2  ;;  %5627 = vmatpush.msk.msrb.mxu0 %vm359_vm0, %v1372_v4  ;;  %s6213_s30 = smul.u32 432, %s9138_s19  ;;  %v1649_v62 = vld [vmem:[%s8869_s1 + $0x14] sm:$0xf]  ;;  %v2481_v0 = vld [vmem:[%s8869_s1 + $0x20] sm:$0xf]  ;;  %vm2758_vm2 = vcmask 64512  }
   0xf   : > { %5562 = vmatpush.msk.msrb.mxu3 %vm359_vm0, %v1095_v3  ;;  %5692 = vmatpush.msk.msrb.mxu1 %vm359_vm0, %v1649_v62  ;;  %vm2768_vm3 = vcmask 57344   ;;  %vm2761_vm4 = vcmask 58368   ;;  %s6210_s16 = sshll.u32 %s9138_s19, 8 }
  0x10   : > { %s6300_s8 = scalar_lea.vmem %s8868_s0, %s6213_s30  ;;  %s8659_s21 = scalar_lea.vmem %s8873_s5, %s6210_s16 }
  0x11   : > { %v229_v5 = vld [vmem:[%s6300_s8] sm:$0xff]  ;;  %v230_v9 = vld [vmem:[%s6300_s8 + $0x8] sm:$0xff]  ;;  %v6331_v13 = vld [vmem:[%s6300_s8 + $0x18] sm:$0xff] }
  0x12   : > { %v6304_v6 = vld [vmem:[%s6300_s8 + $0xc0] sm:$0xff]  ;;  %5432 = vmatmul.msk.f32.vlgmr.msra.gmra.mxu0 %vm262_vm1, %v229_v5  ;;  %v6318_v10 = vld [vmem:[%s6300_s8 + $0xc8] sm:$0xff]  ;;  %v6334_v14 = vld [vmem:[%s6300_s8 + $0xd8] sm:$0xff] }
  0x13   : > { %v6307_v7 = vld [vmem:[%s6300_s8 + $0xc1] sm:$0xff]  ;;  %5448 = vmatmul.msk.f32.vlgmr.msra.gmra.mxu2 %vm262_vm1, %v6304_v6  ;;  %v6321_v11 = vld [vmem:[%s6300_s8 + $0xc9] sm:$0xff]  ;;  %v6337_v15 = vld [vmem:[%s6300_s8 + $0xd9] sm:$0xff]  ;;  %5887 = vmatpush.msk.msra.mxu0 %vm359_vm0, %v2481_v0 }
  0x14   : > { %5481 = vmatmul.msk.f32.vlgmr.msra.gmra.mxu3 %vm262_vm1, %v6307_v7  ;;  %v508_v8 = vld [vmem:[%s6300_s8 + $0x1] sm:$0xff]  ;;  %v509_v12 = vld [vmem:[%s6300_s8 + $0x9] sm:$0xff]  ;;  %v6340_v16 = vld [vmem:[%s6300_s8 + $0x19] sm:$0xff]  ;;  %5757 = vmatpush.msk.msra.mxu2 %vm359_vm0, %v1927_v57 }
  0x15   : > { %5465 = vmatmul.msk.f32.vlgmr.msra.gmra.mxu1 %vm262_vm1, %v508_v8  ;;  %v6351_v17 = vld [vmem:[%s6300_s8 + $0x20] sm:$0xff]  ;;  %v6371_v21 = vld [vmem:[%s6300_s8 + $0x30] sm:$0xff]  ;;  %v6391_v25 = vld [vmem:[%s6300_s8 + $0x38] sm:$0xff]  ;;  %5822 = vmatpush.msk.msra.mxu3 %vm359_vm0, %v2204_v58 }
  0x16   : > { %v6354_v18 = vld [vmem:[%s6300_s8 + $0xe0] sm:$0xff]  ;;  %v6374_v22 = vld [vmem:[%s6300_s8 + $0xf0] sm:$0xff]  ;;  %v6394_v26 = vld [vmem:[%s6300_s8 + $0xf8] sm:$0xff] }
  0x17   : > { %v6357_v19 = vld [vmem:[%s6300_s8 + $0xe1] sm:$0xff]  ;;  %v6377_v23 = vld [vmem:[%s6300_s8 + $0xf1] sm:$0xff]  ;;  %v6397_v27 = vld [vmem:[%s6300_s8 + $0xf9] sm:$0xff] }
  0x18   : > { %v6360_v20 = vld [vmem:[%s6300_s8 + $0x21] sm:$0xff]  ;;  %v6380_v24 = vld [vmem:[%s6300_s8 + $0x31] sm:$0xff]  ;;  %v6400_v28 = vld [vmem:[%s6300_s8 + $0x39] sm:$0xff] }
  0x19   : > { %v6411_v29 = vld [vmem:[%s6300_s8 + $0x48] sm:$0xff]  ;;  %v6431_v33 = vld [vmem:[%s6300_s8 + $0x50] sm:$0xff]  ;;  %v6451_v37 = vld [vmem:[%s6300_s8 + $0x60] sm:$0xff] }
  0x1a   : > { %5433 = vmatmul.msk.f32.gmra.mxu0 %vm262_vm1, %v230_v9  ;;  %v6414_v30 = vld [vmem:[%s6300_s8 + $0x108] sm:$0xff]  ;;  %v6434_v34 = vld [vmem:[%s6300_s8 + $0x110] sm:$0xff]  ;;  %v6454_v38 = vld [vmem:[%s6300_s8 + $0x120] sm:$0xff] }
  0x1b   : > { %5449 = vmatmul.msk.f32.gmra.mxu2 %vm262_vm1, %v6318_v10  ;;  %v6417_v31 = vld [vmem:[%s6300_s8 + $0x109] sm:$0xff]  ;;  %v6437_v35 = vld [vmem:[%s6300_s8 + $0x111] sm:$0xff]  ;;  %v6457_v39 = vld [vmem:[%s6300_s8 + $0x121] sm:$0xff] }
  0x1c   : > { %5482 = vmatmul.msk.f32.gmra.mxu3 %vm262_vm1, %v6321_v11  ;;  %v6420_v32 = vld [vmem:[%s6300_s8 + $0x49] sm:$0xff]  ;;  %v6440_v36 = vld [vmem:[%s6300_s8 + $0x51] sm:$0xff]  ;;  %v6460_v40 = vld [vmem:[%s6300_s8 + $0x61] sm:$0xff] }
  0x1d   : > { %5466 = vmatmul.msk.f32.gmra.mxu1 %vm262_vm1, %v509_v12  ;;  %v6471_v41 = vld [vmem:[%s6300_s8 + $0x68] sm:$0xff]  ;;  %v6491_v45 = vld [vmem:[%s6300_s8 + $0x78] sm:$0xff]  ;;  %v6511_v49 = vld [vmem:[%s6300_s8 + $0x80] sm:$0xff] }
  0x1e   : > { %v6474_v42 = vld [vmem:[%s6300_s8 + $0x128] sm:$0xff]  ;;  %v6494_v46 = vld [vmem:[%s6300_s8 + $0x138] sm:$0xff]  ;;  %v6514_v50 = vld [vmem:[%s6300_s8 + $0x140] sm:$0xff] }
  0x1f   : > { %v6477_v43 = vld [vmem:[%s6300_s8 + $0x129] sm:$0xff]  ;;  %v6497_v47 = vld [vmem:[%s6300_s8 + $0x139] sm:$0xff]  ;;  %v6517_v51 = vld [vmem:[%s6300_s8 + $0x141] sm:$0xff] }
  0x20   : > { %v6480_v44 = vld [vmem:[%s6300_s8 + $0x69] sm:$0xff]  ;;  %v6500_v48 = vld [vmem:[%s6300_s8 + $0x79] sm:$0xff]  ;;  %v6520_v52 = vld [vmem:[%s6300_s8 + $0x81] sm:$0xff] }
  0x21   : > { %v6531_v53 = vld [vmem:[%s6300_s8 + $0x90] sm:$0xff]  ;;  %v6559_v59 = vld [vmem:[%s6300_s8 + $0x98] sm:$0xff]  ;;  %v6587_v1 = vld [vmem:[%s6300_s8 + $0xa8] sm:$0xff] }
  0x22   : > { %5434 = vmatmul.msk.f32.gmra.mxu0 %vm262_vm1, %v6331_v13  ;;  %v6534_v54 = vld [vmem:[%s6300_s8 + $0x150] sm:$0xff]  ;;  %v6562_v60 = vld [vmem:[%s6300_s8 + $0x158] sm:$0xff]  ;;  %v6590_v2 = vld [vmem:[%s6300_s8 + $0x168] sm:$0xff] }
  0x23   : > { %5450 = vmatmul.msk.f32.gmra.mxu2 %vm262_vm1, %v6334_v14  ;;  %8922 = vst [vmem:[#allocation3_spill] sm:$0xff] %v6534_v54  ;;  %v6537_v55 = vld [vmem:[%s6300_s8 + $0x151] sm:$0xff]  ;;  %v6565_v61 = vld [vmem:[%s6300_s8 + $0x159] sm:$0xff]  ;;  %v6593_v3 = vld [vmem:[%s6300_s8 + $0x169] sm:$0xff] }
  0x24   : > { %5483 = vmatmul.msk.f32.gmra.mxu3 %vm262_vm1, %v6337_v15  ;;  %8923 = vst [vmem:[#allocation4_spill] sm:$0xff] %v6537_v55  ;;  %v6540_v56 = vld [vmem:[%s6300_s8 + $0x91] sm:$0xff]  ;;  %v6571_v63 = vld [vmem:[%s6300_s8 + $0x99] sm:$0xff]  ;;  %v6596_v4 = vld [vmem:[%s6300_s8 + $0xa9] sm:$0xff] }
  0x25   : > { %5467 = vmatmul.msk.f32.gmra.mxu1 %vm262_vm1, %v6340_v16  ;;  %8924 = vst [vmem:[#allocation5_spill] sm:$0xff] %v6562_v60  ;;  %v6607_v5 = vld [vmem:[%s6300_s8 + $0xb0] sm:$0xff]  ;;  %v785_v58 = vld [vmem:[%s6300_s8 + $0x2] sm:$0xff]  ;;  %v5660_v0 = vld [vmem:[%s6300_s8 + $0x1a] sm:$0xff] }
  0x26   : > { %8925 = vst [vmem:[#allocation6_spill] sm:$0xff] %v6565_v61  ;;  %v6610_v8 = vld [vmem:[%s6300_s8 + $0x170] sm:$0xff] }
  0x27   : > { %8926 = vst [vmem:[#allocation7_spill] sm:$0xff] %v6590_v2  ;;  %v6613_v9 = vld [vmem:[%s6300_s8 + $0x171] sm:$0xff] }
  0x28   : > { %8927 = vst [vmem:[#allocation8_spill] sm:$0xff] %v6593_v3  ;;  %v6616_v12 = vld [vmem:[%s6300_s8 + $0xb1] sm:$0xff] }
  0x29   : > { %8928 = vst [vmem:[#allocation9_spill] sm:$0xff] %v6610_v8 }
  0x2a   : > { %5435 = vmatmul.msk.f32.gmra.mxu0 %vm262_vm1, %v6351_v17  ;;  %8929 = vst [vmem:[#allocation10_spill] sm:$0xff] %v6613_v9 }
  0x2b   : > { %5451 = vmatmul.msk.f32.gmra.mxu2 %vm262_vm1, %v6354_v18 }
  0x2c   : > { %5484 = vmatmul.msk.f32.gmra.mxu3 %vm262_vm1, %v6357_v19 }
  0x2d   : > { %5468 = vmatmul.msk.f32.gmra.mxu1 %vm262_vm1, %v6360_v20 }
  0x32   : > { %5436 = vmatmul.msk.f32.gmra.mxu0 %vm262_vm1, %v6371_v21 }
  0x33   : > { %5452 = vmatmul.msk.f32.gmra.mxu2 %vm262_vm1, %v6374_v22 }
  0x34   : > { %5485 = vmatmul.msk.f32.gmra.mxu3 %vm262_vm1, %v6377_v23 }
  0x35   : > { %5469 = vmatmul.msk.f32.gmra.mxu1 %vm262_vm1, %v6380_v24 }
  0x3a   : > { %5437 = vmatmul.msk.f32.gmra.mxu0 %vm262_vm1, %v6391_v25 }
  0x3b   : > { %5453 = vmatmul.msk.f32.gmra.mxu2 %vm262_vm1, %v6394_v26 }
  0x3c   : > { %5486 = vmatmul.msk.f32.gmra.mxu3 %vm262_vm1, %v6397_v27 }
  0x3d   : > { %5470 = vmatmul.msk.f32.gmra.mxu1 %vm262_vm1, %v6400_v28 }
  0x42   : > { %5438 = vmatmul.msk.f32.gmra.mxu0 %vm262_vm1, %v6411_v29 }
  0x43   : > { %5454 = vmatmul.msk.f32.gmra.mxu2 %vm262_vm1, %v6414_v30 }
  0x44   : > { %5487 = vmatmul.msk.f32.gmra.mxu3 %vm262_vm1, %v6417_v31 }
  0x45   : > { %5471 = vmatmul.msk.f32.gmra.mxu1 %vm262_vm1, %v6420_v32 }
  0x4a   : > { %5439 = vmatmul.msk.f32.gmra.mxu0 %vm262_vm1, %v6431_v33 }
  0x4b   : > { %5455 = vmatmul.msk.f32.gmra.mxu2 %vm262_vm1, %v6434_v34 }
  0x4c   : > { %5488 = vmatmul.msk.f32.gmra.mxu3 %vm262_vm1, %v6437_v35 }
  0x4d   : > { %5472 = vmatmul.msk.f32.gmra.mxu1 %vm262_vm1, %v6440_v36 }
  0x52   : > { %5440 = vmatmul.msk.f32.gmra.mxu0 %vm262_vm1, %v6451_v37 }
  0x53   : > { %5456 = vmatmul.msk.f32.gmra.mxu2 %vm262_vm1, %v6454_v38 }
  0x54   : > { %5489 = vmatmul.msk.f32.gmra.mxu3 %vm262_vm1, %v6457_v39 }
  0x55   : > { %5473 = vmatmul.msk.f32.gmra.mxu1 %vm262_vm1, %v6460_v40 }
  0x5a   : > { %5441 = vmatmul.msk.f32.gmra.mxu0 %vm262_vm1, %v6471_v41 }
  0x5b   : > { %5457 = vmatmul.msk.f32.gmra.mxu2 %vm262_vm1, %v6474_v42 }
  0x5c   : > { %5490 = vmatmul.msk.f32.gmra.mxu3 %vm262_vm1, %v6477_v43 }
  0x5d   : > { %5474 = vmatmul.msk.f32.gmra.mxu1 %vm262_vm1, %v6480_v44 }
  0x62   : > { %5442 = vmatmul.msk.f32.gmra.mxu0 %vm262_vm1, %v6491_v45 }
  0x63   : > { %5458 = vmatmul.msk.f32.gmra.mxu2 %vm262_vm1, %v6494_v46 }
  0x64   : > { %5491 = vmatmul.msk.f32.gmra.mxu3 %vm262_vm1, %v6497_v47 }
  0x65   : > { %5475 = vmatmul.msk.f32.gmra.mxu1 %vm262_vm1, %v6500_v48 }
  0x6a   : > { %5443 = vmatmul.msk.f32.gmra.mxu0 %vm262_vm1, %v6511_v49 }
  0x6b   : > { %5459 = vmatmul.msk.f32.gmra.mxu2 %vm262_vm1, %v6514_v50 }
  0x6c   : > { %5492 = vmatmul.msk.f32.gmra.mxu3 %vm262_vm1, %v6517_v51 }
  0x6d   : > { %5476 = vmatmul.msk.f32.gmra.mxu1 %vm262_vm1, %v6520_v52 }
  0x72   : > { %5444 = vmatmul.msk.f32.gmra.mxu0 %vm262_vm1, %v6531_v53 }
  0x73   : > { %5460 = vmatmul.msk.f32.gmra.mxu2 %vm262_vm1, %v6534_v54 }
  0x74   : > { %5493 = vmatmul.msk.f32.gmra.mxu3 %vm262_vm1, %v6537_v55 }
  0x75   : > { %5477 = vmatmul.msk.f32.gmra.mxu1 %vm262_vm1, %v6540_v56 }
  0x7a   : > { %5445 = vmatmul.msk.f32.gmra.mxu0 %vm262_vm1, %v6559_v59 }
  0x7b   : > { %5461 = vmatmul.msk.f32.gmra.mxu2 %vm262_vm1, %v6562_v60 }
  0x7c   : > { %5494 = vmatmul.msk.f32.gmra.mxu3 %vm262_vm1, %v6565_v61  ;;  %v786_v61 = vld [vmem:[%s6300_s8 + $0xa] sm:$0xff] }
  0x7d   : > { %5478 = vmatmul.msk.f32.gmra.mxu1 %vm262_vm1, %v6571_v63 }
  0x82   : > { %5446 = vmatmul.msk.f32.gmra.mxu0 %vm262_vm1, %v6587_v1 }
  0x83   : > { %5462 = vmatmul.msk.f32.gmra.mxu2 %vm262_vm1, %v6590_v2  ;;  %v6635_v2 = vld [vmem:[%s8870_s2] ss:$0 sm:$0xff] }
  0x84   : > { %5495 = vmatmul.msk.f32.gmra.mxu3 %vm262_vm1, %v6593_v3 }
  0x85   : > { %5479 = vmatmul.msk.f32.gmra.mxu1 %vm262_vm1, %v6596_v4 }
  0x8a   : > { %5447 = vmatmul.msk.f32.gmra.mxu0 %vm262_vm1, %v6607_v5 }
  0x8b   : > { %5463 = vmatmul.msk.f32.gmra.mxu2 %vm262_vm1, %v6610_v8 }
  0x8c   : > { %5496 = vmatmul.msk.f32.gmra.mxu3 %vm262_vm1, %v6613_v9 }
  0x8d   : > { %5480 = vmatmul.msk.f32.gmra.mxu1 %vm262_vm1, %v6616_v12 }
  0x8f   : > { %v6626_v57 = vpop.f32.mrf.mxu0 }
  0x92   : > { %v6629_v62 = vpop.f32.mrf.mxu1  ;;  %5628 = vmatmul.msk.f32.vlgmr.msrb.gmra.mxu0 %vm262_vm1, %v6340_v16 }
  0x93   : > { %5498 = vmatmul.msk.f32.vlgmr.msrb.gmra.mxu2 %vm262_vm1, %v785_v58  ;;  %v5661_v58 = vld [vmem:[%s6300_s8 + $0x22] sm:$0xff] }
  0x94   : > { %5563 = vmatmul.msk.f32.vlgmr.msrb.gmra.mxu3 %vm262_vm1, %v6331_v13 }
  0x95   : > { %5693 = vmatmul.msk.f32.vlgmr.msrb.gmra.mxu1 %vm262_vm1, %v5660_v0 }
  0x96   : > { %v428_v8 = vpop.f32.mrf.mxu2 }
  0x97   : > { %v492_v9 = vadd.f32 %v6635_v2, %v428_v8  ;;  %v705_v3 = vpop.f32.mrf.mxu3  ;;  %v6644_v60 = vpop.f32.mrf.mxu0 }
  0x99   : > { %v6647_v54 = vadd.f32 %v705_v3, %v492_v9 }
  0x9a   : > { %v6649_v55 = vpop.f32.mrf.mxu1  ;;  %5629 = vmatmul.msk.f32.gmra.mxu0 %vm262_vm1, %v6360_v20 }
  0x9b   : > { %8930 = vst [vmem:[#allocation11_spill] sm:$0xff] %v6647_v54  ;;  %5499 = vmatmul.msk.f32.gmra.mxu2 %vm262_vm1, %v786_v61  ;;  %v6666_v61 = vld [vmem:[%s6300_s8 + $0x32] sm:$0xff] }
  0x9c   : > { %5564 = vmatmul.msk.f32.gmra.mxu3 %vm262_vm1, %v6351_v17  ;;  %8932 = vst [vmem:[#allocation13_spill] sm:$0xff] %v6666_v61 }
  0x9d   : > { %5694 = vmatmul.msk.f32.gmra.mxu1 %vm262_vm1, %v5661_v58 }
  0x9e   : > { %v431_v13 = vpop.f32.mrf.mxu2 }
  0x9f   : > { %v493_v16 = vadd.f32 %v6635_v2, %v431_v13  ;;  %v708_v8 = vpop.f32.mrf.mxu3  ;;  %v6659_v3 = vpop.f32.mrf.mxu0 }
  0xa1   : > { %v6661_v9 = vadd.f32 %v708_v8, %v493_v16 }
  0xa2   : > { %v6663_v54 = vpop.f32.mrf.mxu1  ;;  %5630 = vmatmul.msk.f32.gmra.mxu0 %vm262_vm1, %v6380_v24 }
  0xa3   : > { %8931 = vst [vmem:[#allocation12_spill] sm:$0xff] %v6661_v9  ;;  %5500 = vmatmul.msk.f32.gmra.mxu2 %vm262_vm1, %v5660_v0  ;;  %v6683_v0 = vld [vmem:[%s6300_s8 + $0x3a] sm:$0xff] }
  0xa4   : > { %5565 = vmatmul.msk.f32.gmra.mxu3 %vm262_vm1, %v6371_v21  ;;  %8934 = vst [vmem:[#allocation15_spill] sm:$0xff] %v6683_v0 }
  0xa5   : > { %5695 = vmatmul.msk.f32.gmra.mxu1 %vm262_vm1, %v6666_v61 }
  0xa6   : > { %v434_v17 = vpop.f32.mrf.mxu2 }
  0xa7   : > { %v494_v20 = vadd.f32 %v6635_v2, %v434_v17  ;;  %v711_v13 = vpop.f32.mrf.mxu3  ;;  %v6676_v16 = vpop.f32.mrf.mxu0 }
  0xa9   : > { %v6678_v8 = vadd.f32 %v711_v13, %v494_v20 }
  0xaa   : > { %v6680_v9 = vpop.f32.mrf.mxu1  ;;  %5631 = vmatmul.msk.f32.gmra.mxu0 %vm262_vm1, %v6400_v28 }
  0xab   : > { %8933 = vst [vmem:[#allocation14_spill] sm:$0xff] %v6678_v8  ;;  %5501 = vmatmul.msk.f32.gmra.mxu2 %vm262_vm1, %v5661_v58  ;;  %v6700_v58 = vld [vmem:[%s6300_s8 + $0x4a] sm:$0xff] }
  0xac   : > { %5566 = vmatmul.msk.f32.gmra.mxu3 %vm262_vm1, %v6391_v25  ;;  %8936 = vst [vmem:[#allocation17_spill] sm:$0xff] %v6700_v58 }
  0xad   : > { %5696 = vmatmul.msk.f32.gmra.mxu1 %vm262_vm1, %v6683_v0 }
  0xae   : > { %v437_v21 = vpop.f32.mrf.mxu2 }
  0xaf   : > { %v495_v24 = vadd.f32 %v6635_v2, %v437_v21  ;;  %v714_v17 = vpop.f32.mrf.mxu3  ;;  %v6693_v20 = vpop.f32.mrf.mxu0 }
  0xb1   : > { %v6695_v13 = vadd.f32 %v714_v17, %v495_v24 }
  0xb2   : > { %v6697_v8 = vpop.f32.mrf.mxu1  ;;  %5632 = vmatmul.msk.f32.gmra.mxu0 %vm262_vm1, %v6420_v32 }
  0xb3   : > { %8935 = vst [vmem:[#allocation16_spill] sm:$0xff] %v6695_v13  ;;  %5502 = vmatmul.msk.f32.gmra.mxu2 %vm262_vm1, %v6666_v61  ;;  %v6718_v61 = vld [vmem:[%s6300_s8 + $0x52] sm:$0xff] }
  0xb4   : > { %5567 = vmatmul.msk.f32.gmra.mxu3 %vm262_vm1, %v6411_v29  ;;  %8938 = vst [vmem:[#allocation19_spill] sm:$0xff] %v6718_v61 }
  0xb5   : > { %5697 = vmatmul.msk.f32.gmra.mxu1 %vm262_vm1, %v6700_v58 }
  0xb6   : > { %v440_v25 = vpop.f32.mrf.mxu2 }
  0xb7   : > { %v496_v28 = vadd.f32 %v6635_v2, %v440_v25  ;;  %v717_v21 = vpop.f32.mrf.mxu3  ;;  %v6711_v24 = vpop.f32.mrf.mxu0 }
  0xb9   : > { %v6713_v17 = vadd.f32 %v717_v21, %v496_v28 }
  0xba   : > { %v6715_v13 = vpop.f32.mrf.mxu1  ;;  %5633 = vmatmul.msk.f32.gmra.mxu0 %vm262_vm1, %v6440_v36 }
  0xbb   : > { %8937 = vst [vmem:[#allocation18_spill] sm:$0xff] %v6713_v17  ;;  %5503 = vmatmul.msk.f32.gmra.mxu2 %vm262_vm1, %v6683_v0  ;;  %v6736_v0 = vld [vmem:[%s6300_s8 + $0x62] sm:$0xff] }
  0xbc   : > { %5568 = vmatmul.msk.f32.gmra.mxu3 %vm262_vm1, %v6431_v33  ;;  %8940 = vst [vmem:[#allocation21_spill] sm:$0xff] %v6736_v0 }
  0xbd   : > { %5698 = vmatmul.msk.f32.gmra.mxu1 %vm262_vm1, %v6718_v61 }
  0xbe   : > { %v443_v29 = vpop.f32.mrf.mxu2 }
  0xbf   : > { %v497_v32 = vadd.f32 %v6635_v2, %v443_v29  ;;  %v720_v25 = vpop.f32.mrf.mxu3  ;;  %v6729_v28 = vpop.f32.mrf.mxu0 }
  0xc1   : > { %v6731_v21 = vadd.f32 %v720_v25, %v497_v32 }
  0xc2   : > { %v6733_v17 = vpop.f32.mrf.mxu1  ;;  %5634 = vmatmul.msk.f32.gmra.mxu0 %vm262_vm1, %v6460_v40 }
  0xc3   : > { %8939 = vst [vmem:[#allocation20_spill] sm:$0xff] %v6731_v21  ;;  %5504 = vmatmul.msk.f32.gmra.mxu2 %vm262_vm1, %v6700_v58  ;;  %v6754_v58 = vld [vmem:[%s6300_s8 + $0x6a] sm:$0xff] }
  0xc4   : > { %5569 = vmatmul.msk.f32.gmra.mxu3 %vm262_vm1, %v6451_v37  ;;  %8942 = vst [vmem:[#allocation23_spill] sm:$0xff] %v6754_v58 }
  0xc5   : > { %5699 = vmatmul.msk.f32.gmra.mxu1 %vm262_vm1, %v6736_v0 }
  0xc6   : > { %v446_v33 = vpop.f32.mrf.mxu2 }
  0xc7   : > { %v498_v36 = vadd.f32 %v6635_v2, %v446_v33  ;;  %v723_v29 = vpop.f32.mrf.mxu3  ;;  %v6747_v32 = vpop.f32.mrf.mxu0 }
  0xc9   : > { %v6749_v25 = vadd.f32 %v723_v29, %v498_v36 }
  0xca   : > { %v6751_v21 = vpop.f32.mrf.mxu1  ;;  %5635 = vmatmul.msk.f32.gmra.mxu0 %vm262_vm1, %v6480_v44 }
  0xcb   : > { %8941 = vst [vmem:[#allocation22_spill] sm:$0xff] %v6749_v25  ;;  %5505 = vmatmul.msk.f32.gmra.mxu2 %vm262_vm1, %v6718_v61  ;;  %v6772_v61 = vld [vmem:[%s6300_s8 + $0x7a] sm:$0xff] }
  0xcc   : > { %5570 = vmatmul.msk.f32.gmra.mxu3 %vm262_vm1, %v6471_v41  ;;  %8944 = vst [vmem:[#allocation25_spill] sm:$0xff] %v6772_v61 }
  0xcd   : > { %5700 = vmatmul.msk.f32.gmra.mxu1 %vm262_vm1, %v6754_v58 }
  0xce   : > { %v449_v37 = vpop.f32.mrf.mxu2 }
  0xcf   : > { %v499_v40 = vadd.f32 %v6635_v2, %v449_v37  ;;  %v726_v33 = vpop.f32.mrf.mxu3  ;;  %v6765_v36 = vpop.f32.mrf.mxu0 }
  0xd1   : > { %v6767_v29 = vadd.f32 %v726_v33, %v499_v40 }
  0xd2   : > { %v6769_v25 = vpop.f32.mrf.mxu1  ;;  %5636 = vmatmul.msk.f32.gmra.mxu0 %vm262_vm1, %v6500_v48 }
  0xd3   : > { %8943 = vst [vmem:[#allocation24_spill] sm:$0xff] %v6767_v29  ;;  %5506 = vmatmul.msk.f32.gmra.mxu2 %vm262_vm1, %v6736_v0  ;;  %v6790_v0 = vld [vmem:[%s6300_s8 + $0x82] sm:$0xff] }
  0xd4   : > { %5571 = vmatmul.msk.f32.gmra.mxu3 %vm262_vm1, %v6491_v45  ;;  %8946 = vst [vmem:[#allocation27_spill] sm:$0xff] %v6790_v0 }
  0xd5   : > { %5701 = vmatmul.msk.f32.gmra.mxu1 %vm262_vm1, %v6772_v61 }
  0xd6   : > { %v452_v41 = vpop.f32.mrf.mxu2 }
  0xd7   : > { %v500_v44 = vadd.f32 %v6635_v2, %v452_v41  ;;  %v729_v37 = vpop.f32.mrf.mxu3  ;;  %v6783_v40 = vpop.f32.mrf.mxu0 }
  0xd9   : > { %v6785_v33 = vadd.f32 %v729_v37, %v500_v44 }
  0xda   : > { %v6787_v29 = vpop.f32.mrf.mxu1  ;;  %5637 = vmatmul.msk.f32.gmra.mxu0 %vm262_vm1, %v6520_v52 }
  0xdb   : > { %8945 = vst [vmem:[#allocation26_spill] sm:$0xff] %v6785_v33  ;;  %5507 = vmatmul.msk.f32.gmra.mxu2 %vm262_vm1, %v6754_v58  ;;  %v6808_v58 = vld [vmem:[%s6300_s8 + $0x92] sm:$0xff] }
  0xdc   : > { %5572 = vmatmul.msk.f32.gmra.mxu3 %vm262_vm1, %v6511_v49  ;;  %8948 = vst [vmem:[#allocation29_spill] sm:$0xff] %v6808_v58 }
  0xdd   : > { %5702 = vmatmul.msk.f32.gmra.mxu1 %vm262_vm1, %v6790_v0 }
  0xde   : > { %v455_v45 = vpop.f32.mrf.mxu2 }
  0xdf   : > { %v501_v48 = vadd.f32 %v6635_v2, %v455_v45  ;;  %v732_v41 = vpop.f32.mrf.mxu3  ;;  %v6801_v44 = vpop.f32.mrf.mxu0 }
  0xe1   : > { %v6803_v37 = vadd.f32 %v732_v41, %v501_v48 }
  0xe2   : > { %v6805_v33 = vpop.f32.mrf.mxu1  ;;  %5638 = vmatmul.msk.f32.gmra.mxu0 %vm262_vm1, %v6540_v56 }
  0xe3   : > { %8947 = vst [vmem:[#allocation28_spill] sm:$0xff] %v6803_v37  ;;  %5508 = vmatmul.msk.f32.gmra.mxu2 %vm262_vm1, %v6772_v61  ;;  %v6826_v61 = vld [vmem:[%s6300_s8 + $0x9a] sm:$0xff] }
  0xe4   : > { %5573 = vmatmul.msk.f32.gmra.mxu3 %vm262_vm1, %v6531_v53  ;;  %8950 = vst [vmem:[#allocation31_spill] sm:$0xff] %v6826_v61 }
  0xe5   : > { %5703 = vmatmul.msk.f32.gmra.mxu1 %vm262_vm1, %v6808_v58 }
  0xe6   : > { %v458_v49 = vpop.f32.mrf.mxu2 }
  0xe7   : > { %v502_v52 = vadd.f32 %v6635_v2, %v458_v49  ;;  %v735_v45 = vpop.f32.mrf.mxu3  ;;  %v6819_v48 = vpop.f32.mrf.mxu0 }
  0xe9   : > { %v6821_v41 = vadd.f32 %v735_v45, %v502_v52 }
  0xea   : > { %v6823_v37 = vpop.f32.mrf.mxu1  ;;  %5639 = vmatmul.msk.f32.gmra.mxu0 %vm262_vm1, %v6571_v63 }
  0xeb   : > { %8949 = vst [vmem:[#allocation30_spill] sm:$0xff] %v6821_v41  ;;  %5509 = vmatmul.msk.f32.gmra.mxu2 %vm262_vm1, %v6790_v0  ;;  %v6844_v0 = vld [vmem:[%s6300_s8 + $0xaa] sm:$0xff] }
  0xec   : > { %5574 = vmatmul.msk.f32.gmra.mxu3 %vm262_vm1, %v6559_v59  ;;  %8952 = vst [vmem:[#allocation33_spill] sm:$0xff] %v6844_v0 }
  0xed   : > { %5704 = vmatmul.msk.f32.gmra.mxu1 %vm262_vm1, %v6826_v61 }
  0xee   : > { %v461_v53 = vpop.f32.mrf.mxu2 }
  0xef   : > { %v503_v56 = vadd.f32 %v6635_v2, %v461_v53  ;;  %v738_v49 = vpop.f32.mrf.mxu3  ;;  %v6837_v52 = vpop.f32.mrf.mxu0 }
  0xf1   : > { %v6839_v45 = vadd.f32 %v738_v49, %v503_v56 }
  0xf2   : > { %v6841_v41 = vpop.f32.mrf.mxu1  ;;  %5640 = vmatmul.msk.f32.gmra.mxu0 %vm262_vm1, %v6596_v4 }
  0xf3   : > { %8951 = vst [vmem:[#allocation32_spill] sm:$0xff] %v6839_v45  ;;  %5510 = vmatmul.msk.f32.gmra.mxu2 %vm262_vm1, %v6808_v58  ;;  %v2869_v45 = vld [vmem:[%s8871_s3] sm:$0xff]  ;;  %v6865_v58 = vld [vmem:[%s6300_s8 + $0xb2] sm:$0xff] }
  0xf4   : > { %5575 = vmatmul.msk.f32.gmra.mxu3 %vm262_vm1, %v6587_v1  ;;  %8954 = vst [vmem:[#allocation35_spill] sm:$0xff] %v6865_v58  ;;  %2981 = vmatpush.msra.mxu1 %v2869_v45 }
  0xf5   : > { %5705 = vmatmul.msk.f32.gmra.mxu1 %vm262_vm1, %v6844_v0 }
  0xf6   : > { %v464_v59 = vpop.f32.mrf.mxu2 }
  0xf7   : > { %v504_v63 = vadd.f32 %v6635_v2, %v464_v59  ;;  %v741_v53 = vpop.f32.mrf.mxu3  ;;  %v6855_v56 = vpop.f32.mrf.mxu0 }
  0xf9   : > { %v6857_v49 = vadd.f32 %v741_v53, %v504_v63 }
  0xfa   : > { %v6862_v4 = vpop.f32.mrf.mxu1  ;;  %5641 = vmatmul.msk.f32.gmra.mxu0 %vm262_vm1, %v6616_v12 }
  0xfb   : > { %8953 = vst [vmem:[#allocation34_spill] sm:$0xff] %v6857_v49  ;;  %5511 = vmatmul.msk.f32.gmra.mxu2 %vm262_vm1, %v6826_v61  ;;  %v6883_v61 = vld [vmem:[%s6300_s8 + $0xc2] sm:$0xff] }
  0xfc   : > { %5576 = vmatmul.msk.f32.gmra.mxu3 %vm262_vm1, %v6607_v5  ;;  %8956 = vst [vmem:[#allocation37_spill] sm:$0xff] %v6883_v61 }
  0xfd   : > { %5706 = vmatmul.msk.f32.gmra.mxu1 %vm262_vm1, %v6865_v58 }
  0xfe   : > { %v467_v1 = vpop.f32.mrf.mxu2 }
  0xff   : > { %v505_v59 = vadd.f32 %v6635_v2, %v467_v1  ;;  %v744_v63 = vpop.f32.mrf.mxu3  ;;  %v6876_v53 = vpop.f32.mrf.mxu0 }
 0x101   : > { %v6878_v45 = vadd.f32 %v744_v63, %v505_v59 }
 0x102   : > { %v6880_v49 = vpop.f32.mrf.mxu1  ;;  %5642 = vmatmul.msk.f32.gmra.mxu0 %vm262_vm1, %v6307_v7 }
 0x103   : > { %8955 = vst [vmem:[#allocation36_spill] sm:$0xff] %v6878_v45  ;;  %5512 = vmatmul.msk.f32.gmra.mxu2 %vm262_vm1, %v6844_v0  ;;  %v6901_v0 = vld [vmem:[%s6300_s8 + $0xca] sm:$0xff] }
 0x104   : > { %5577 = vmatmul.msk.f32.gmra.mxu3 %vm262_vm1, %v6304_v6 }
 0x105   : > { %5707 = vmatmul.msk.f32.gmra.mxu1 %vm262_vm1, %v6883_v61 }
 0x106   : > { %v470_v5 = vpop.f32.mrf.mxu2 }
 0x107   : > { %v506_v12 = vadd.f32 %v6635_v2, %v470_v5  ;;  %v747_v1 = vpop.f32.mrf.mxu3  ;;  %v6894_v59 = vpop.f32.mrf.mxu0 }
 0x108   : > { %8957 = vst [vmem:[#allocation38_spill] sm:$0xff] %v6894_v59  ;;  %v6931_v59 = vld [vmem:[%s6300_s8 + $0xe2] sm:$0xff] }
 0x109   : > { %v6896_v63 = vadd.f32 %v747_v1, %v506_v12  ;;  %v476_v1 = vadd.f32 %v6635_v2, %v6626_v57 }
 0x10a   : > { %v6898_v45 = vpop.f32.mrf.mxu1  ;;  %5643 = vmatmul.msk.f32.gmra.mxu0 %vm262_vm1, %v6321_v11 }
 0x10b   : > { %8958 = vst [vmem:[#allocation39_spill] sm:$0xff] %v6896_v63  ;;  %5513 = vmatmul.msk.f32.gmra.mxu2 %vm262_vm1, %v6865_v58 }
 0x10c   : > { %8959 = vst [vmem:[#allocation40_spill] sm:$0xff] %v6898_v45  ;;  %5578 = vmatmul.msk.f32.gmra.mxu3 %vm262_vm1, %v6318_v10  ;;  %v6917_v45 = vld [vmem:[%s6300_s8 + $0xda] sm:$0xff]  ;;  %v753_v10 = vadd.f32 %v6629_v62, %v476_v1 }
 0x10d   : > { %5708 = vmatmul.msk.f32.gmra.mxu1 %vm262_vm1, %v6901_v0 }
 0x10e   : > { %v473_v6 = vpop.f32.mrf.mxu2 }
 0x10f   : > { %v507_v7 = vadd.f32 %v6635_v2, %v473_v6  ;;  %v750_v5 = vpop.f32.mrf.mxu3  ;;  %v1489_v12 = vpop.f32.mrf.mxu0 }
 0x111   : > { %v6914_v63 = vadd.f32 %v750_v5, %v507_v7  ;;  %v477_v5 = vadd.f32 %v6635_v2, %v6644_v60 }
 0x112   : > { %v1766_v58 = vpop.f32.mrf.mxu1  ;;  %5644 = vmatmul.msk.f32.gmra.mxu0 %vm262_vm1, %v6337_v15 }
 0x113   : > { %8960 = vst [vmem:[#allocation41_spill] sm:$0xff] %v6914_v63  ;;  %5514 = vmatmul.msk.f32.gmra.mxu2 %vm262_vm1, %v6883_v61  ;;  %v754_v15 = vadd.f32 %v6649_v55, %v477_v5 }
 0x114   : > { %5579 = vmatmul.msk.f32.gmra.mxu3 %vm262_vm1, %v6334_v14 }
 0x115   : > { %5709 = vmatmul.msk.f32.gmra.mxu1 %vm262_vm1, %v6917_v45 }
 0x116   : > { %v934_v11 = vpop.f32.mrf.mxu2 }
 0x117   : > { %v1030_v57 = vadd.f32 %v934_v11, %v753_v10  ;;  %v1212_v6 = vpop.f32.mrf.mxu3  ;;  %v1492_v7 = vpop.f32.mrf.mxu0 }
 0x119   : > { %v1308_v63 = vadd.f32 %v1212_v6, %v1030_v57  ;;  %v478_v57 = vadd.f32 %v6635_v2, %v6659_v3 }
 0x11a   : > { %v1769_v61 = vpop.f32.mrf.mxu1  ;;  %5645 = vmatmul.msk.f32.gmra.mxu0 %vm262_vm1, %v6357_v19 }
 0x11b   : > { %5515 = vmatmul.msk.f32.gmra.mxu2 %vm262_vm1, %v6901_v0  ;;  %v1585_v14 = vadd.f32 %v1489_v12, %v1308_v63  ;;  %v6947_v63 = vld [vmem:[%s6300_s8 + $0xf2] sm:$0xff]  ;;  %v755_v55 = vadd.f32 %v6663_v54, %v478_v57 }
 0x11c   : > { %5580 = vmatmul.msk.f32.gmra.mxu3 %vm262_vm1, %v6354_v18 }
 0x11d   : > { %v6940_v62 = vadd.f32 %v1766_v58, %v1585_v14  ;;  %5710 = vmatmul.msk.f32.gmra.mxu1 %vm262_vm1, %v6931_v59 }
 0x11e   : > { %v937_v60 = vpop.f32.mrf.mxu2 }
 0x11f   : > { %v1031_v1 = vadd.f32 %v937_v60, %v754_v15  ;;  %v1215_v10 = vpop.f32.mrf.mxu3  ;;  %v1495_v11 = vpop.f32.mrf.mxu0  ;;  %v479_v15 = vadd.f32 %v6635_v2, %v6676_v16 }
 0x121   : > { %v1309_v6 = vadd.f32 %v1215_v10, %v1031_v1  ;;  %v756_v54 = vadd.f32 %v6680_v9, %v479_v15 }
 0x122   : > { %v1772_v19 = vpop.f32.mrf.mxu1  ;;  %5646 = vmatmul.msk.f32.gmra.mxu0 %vm262_vm1, %v6377_v23 }
 0x123   : > { %5516 = vmatmul.msk.f32.gmra.mxu2 %vm262_vm1, %v6917_v45  ;;  %v1586_v18 = vadd.f32 %v1492_v7, %v1309_v6  ;;  %v6963_v7 = vld [vmem:[%s6300_s8 + $0xfa] sm:$0xff]  ;;  %v480_v6 = vadd.f32 %v6635_v2, %v6693_v20 }
 0x124   : > { %5581 = vmatmul.msk.f32.gmra.mxu3 %vm262_vm1, %v6374_v22 }
 0x125   : > { %v6956_v58 = vadd.f32 %v1769_v61, %v1586_v18  ;;  %5711 = vmatmul.msk.f32.gmra.mxu1 %vm262_vm1, %v6947_v63 }
 0x126   : > { %v940_v3 = vpop.f32.mrf.mxu2 }
 0x127   : > { %v1032_v12 = vadd.f32 %v940_v3, %v755_v55  ;;  %v1218_v5 = vpop.f32.mrf.mxu3  ;;  %v1498_v14 = vpop.f32.mrf.mxu0 }
 0x129   : > { %v1310_v60 = vadd.f32 %v1218_v5, %v1032_v12  ;;  %v481_v5 = vadd.f32 %v6635_v2, %v6711_v24 }
 0x12a   : > { %v1775_v23 = vpop.f32.mrf.mxu1  ;;  %5647 = vmatmul.msk.f32.gmra.mxu0 %vm262_vm1, %v6397_v27  ;;  %v6979_v27 = vld [vmem:[%s6300_s8 + $0x10a] sm:$0xff] }
 0x12b   : > { %5517 = vmatmul.msk.f32.gmra.mxu2 %vm262_vm1, %v6931_v59  ;;  %v1587_v22 = vadd.f32 %v1495_v11, %v1310_v60  ;;  %v757_v11 = vadd.f32 %v6697_v8, %v480_v6  ;;  %v758_v8 = vadd.f32 %v6715_v13, %v481_v5  ;;  %v484_v5 = vadd.f32 %v6635_v2, %v6765_v36 }
 0x12c   : > { %5582 = vmatmul.msk.f32.gmra.mxu3 %vm262_vm1, %v6394_v26 }
 0x12d   : > { %v6972_v61 = vadd.f32 %v1772_v19, %v1587_v22  ;;  %5712 = vmatmul.msk.f32.gmra.mxu1 %vm262_vm1, %v6963_v7 }
 0x12e   : > { %v943_v16 = vpop.f32.mrf.mxu2 }
 0x12f   : > { %v1033_v1 = vadd.f32 %v943_v16, %v756_v54  ;;  %v1221_v10 = vpop.f32.mrf.mxu3  ;;  %v1501_v57 = vpop.f32.mrf.mxu0  ;;  %v482_v16 = vadd.f32 %v6635_v2, %v6729_v28 }
 0x131   : > { %v1311_v18 = vadd.f32 %v1221_v10, %v1033_v1  ;;  %v7011_v1 = vld [vmem:[%s6300_s8 + $0x122] sm:$0xff]  ;;  %v759_v13 = vadd.f32 %v6733_v17, %v482_v16 }
 0x132   : > { %5648 = vmatmul.msk.f32.gmra.mxu0 %vm262_vm1, %v6417_v31  ;;  %v1778_v9 = vpop.f32.mrf.mxu1 }
 0x133   : > { %5518 = vmatmul.msk.f32.gmra.mxu2 %vm262_vm1, %v6947_v63  ;;  %v1588_v26 = vadd.f32 %v1498_v14, %v1311_v18  ;;  %v6995_v14 = vld [vmem:[%s6300_s8 + $0x112] sm:$0xff] }
 0x134   : > { %5583 = vmatmul.msk.f32.gmra.mxu3 %vm262_vm1, %v6414_v30 }
 0x135   : > { %v6988_v19 = vadd.f32 %v1775_v23, %v1588_v26  ;;  %5713 = vmatmul.msk.f32.gmra.mxu1 %vm262_vm1, %v6979_v27 }
 0x136   : > { %v946_v20 = vpop.f32.mrf.mxu2 }
 0x137   : > { %v1034_v55 = vadd.f32 %v946_v20, %v757_v11  ;;  %v1224_v3 = vpop.f32.mrf.mxu3  ;;  %v1504_v12 = vpop.f32.mrf.mxu0  ;;  %v7027_v11 = vld [vmem:[%s6300_s8 + $0x12a] sm:$0xff] }
 0x139   : > { %v1312_v31 = vadd.f32 %v1224_v3, %v1034_v55 }
 0x13a   : > { %5649 = vmatmul.msk.f32.gmra.mxu0 %vm262_vm1, %v6437_v35  ;;  %v1781_v60 = vpop.f32.mrf.mxu1 }
 0x13b   : > { %5519 = vmatmul.msk.f32.gmra.mxu2 %vm262_vm1, %v6963_v7  ;;  %v1589_v30 = vadd.f32 %v1501_v57, %v1312_v31 }
 0x13c   : > { %5584 = vmatmul.msk.f32.gmra.mxu3 %vm262_vm1, %v6434_v34 }
 0x13d   : > { %v7004_v15 = vadd.f32 %v1778_v9, %v1589_v30  ;;  %5714 = vmatmul.msk.f32.gmra.mxu1 %vm262_vm1, %v6995_v14  ;;  %v483_v9 = vadd.f32 %v6635_v2, %v6747_v32  ;;  %v7043_v30 = vld [vmem:[%s6300_s8 + $0x13a] sm:$0xff] }
 0x13e   : > { %v949_v24 = vpop.f32.mrf.mxu2 }
 0x13f   : > { %v1035_v23 = vadd.f32 %v949_v24, %v758_v8  ;;  %v1227_v22 = vpop.f32.mrf.mxu3  ;;  %v1507_v54 = vpop.f32.mrf.mxu0  ;;  %v760_v17 = vadd.f32 %v6751_v21, %v483_v9  ;;  %v761_v21 = vadd.f32 %v6769_v25, %v484_v5 }
 0x141   : > { %v1313_v35 = vadd.f32 %v1227_v22, %v1035_v23  ;;  %v485_v22 = vadd.f32 %v6635_v2, %v6783_v40 }
 0x142   : > { %5650 = vmatmul.msk.f32.gmra.mxu0 %vm262_vm1, %v6457_v39  ;;  %v1784_v26 = vpop.f32.mrf.mxu1 }
 0x143   : > { %5520 = vmatmul.msk.f32.gmra.mxu2 %vm262_vm1, %v6979_v27  ;;  %v1590_v34 = vadd.f32 %v1504_v12, %v1313_v35  ;;  %v762_v25 = vadd.f32 %v6787_v29, %v485_v22 }
 0x144   : > { %5585 = vmatmul.msk.f32.gmra.mxu3 %vm262_vm1, %v6454_v38 }
 0x145   : > { %v7020_v10 = vadd.f32 %v1781_v60, %v1590_v34  ;;  %5715 = vmatmul.msk.f32.gmra.mxu1 %vm262_vm1, %v7011_v1 }
 0x146   : > { %v952_v28 = vpop.f32.mrf.mxu2 }
 0x147   : > { %v1036_v57 = vadd.f32 %v952_v28, %v759_v13  ;;  %v1230_v6 = vpop.f32.mrf.mxu3  ;;  %v1510_v18 = vpop.f32.mrf.mxu0  ;;  %v486_v13 = vadd.f32 %v6635_v2, %v6801_v44 }
 0x149   : > { %v1314_v39 = vadd.f32 %v1230_v6, %v1036_v57  ;;  %v8962_v57 = vld [vmem:[#allocation3_spill] sm:$0xff]  ;;  %v763_v6 = vadd.f32 %v6805_v33, %v486_v13 }
 0x14a   : > { %5651 = vmatmul.msk.f32.gmra.mxu0 %vm262_vm1, %v6477_v43  ;;  %v1787_v43 = vpop.f32.mrf.mxu1 }
 0x14b   : > { %5521 = vmatmul.msk.f32.gmra.mxu2 %vm262_vm1, %v6995_v14  ;;  %v1591_v38 = vadd.f32 %v1507_v54, %v1314_v39  ;;  %v7059_v54 = vld [vmem:[%s6300_s8 + $0x142] sm:$0xff]  ;;  %v487_v39 = vadd.f32 %v6635_v2, %v6819_v48 }
 0x14c   : > { %5586 = vmatmul.msk.f32.gmra.mxu3 %vm262_vm1, %v6474_v42 }
 0x14d   : > { %v7036_v20 = vadd.f32 %v1784_v26, %v1591_v38  ;;  %5716 = vmatmul.msk.f32.gmra.mxu1 %vm262_vm1, %v7027_v11 }
 0x14e   : > { %v955_v32 = vpop.f32.mrf.mxu2 }
 0x14f   : > { %v1037_v55 = vadd.f32 %v955_v32, %v760_v17  ;;  %v1233_v3 = vpop.f32.mrf.mxu3  ;;  %v1513_v12 = vpop.f32.mrf.mxu0  ;;  %v7091_v17 = vld [vmem:[%s6300_s8 + $0x15a] sm:$0xff]  ;;  %v8963_v32 = vld [vmem:[#allocation6_spill] sm:$0xff] }
 0x151   : > { %v1315_v31 = vadd.f32 %v1233_v3, %v1037_v55  ;;  %v8964_v55 = vld [vmem:[#allocation5_spill] sm:$0xff]  ;;  %v764_v3 = vadd.f32 %v6823_v37, %v487_v39 }
 0x152   : > { %5652 = vmatmul.msk.f32.gmra.mxu0 %vm262_vm1, %v6497_v47 }
 0x153   : > { %5522 = vmatmul.msk.f32.gmra.mxu2 %vm262_vm1, %v7011_v1  ;;  %v1592_v42 = vadd.f32 %v1510_v18, %v1315_v31 }
 0x154   : > { %5587 = vmatmul.msk.f32.gmra.mxu3 %vm262_vm1, %v6494_v46 }
 0x155   : > { %v7052_v8 = vadd.f32 %v1787_v43, %v1592_v42  ;;  %5717 = vmatmul.msk.f32.gmra.mxu1 %vm262_vm1, %v7043_v30  ;;  %v488_v43 = vadd.f32 %v6635_v2, %v6837_v52 }
 0x156   : > { %v958_v36 = vpop.f32.mrf.mxu2 }
 0x157   : > { %v1038_v24 = vadd.f32 %v958_v36, %v761_v21  ;;  %v1236_v60 = vpop.f32.mrf.mxu3  ;;  %v1516_v23 = vpop.f32.mrf.mxu0  ;;  %v7107_v21 = vld [vmem:[%s6300_s8 + $0x16a] sm:$0xff]  ;;  %v8965_v36 = vld [vmem:[#allocation8_spill] sm:$0xff] }
 0x159   : > { %v1316_v47 = vadd.f32 %v1236_v60, %v1038_v24  ;;  %v8966_v24 = vld [vmem:[#allocation7_spill] sm:$0xff]  ;;  %v765_v60 = vadd.f32 %v6841_v41, %v488_v43  ;;  %v8967_v41 = vld [vmem:[#allocation10_spill] sm:$0xff] }
 0x15a   : > { %5653 = vmatmul.msk.f32.gmra.mxu0 %vm262_vm1, %v6517_v51  ;;  %v7075_v51 = vld [vmem:[%s6300_s8 + $0x152] sm:$0xff]  ;;  %v7167_v43 = vld [vmem:[%s6300_s8 + $0x18a] sm:$0xff] }
 0x15b   : > { %5523 = vmatmul.msk.f32.gmra.mxu2 %vm262_vm1, %v7027_v11  ;;  %v7065_v46 = vadd.f32 %v1513_v12, %v1316_v47 }
 0x15c   : > { %5588 = vmatmul.msk.f32.gmra.mxu3 %vm262_vm1, %v6514_v50  ;;  %v8961_v50 = vld [vmem:[#allocation4_spill] sm:$0xff] }
 0x15d   : > { %5718 = vmatmul.msk.f32.gmra.mxu1 %vm262_vm1, %v7059_v54 }
 0x15e   : > { %v961_v40 = vpop.f32.mrf.mxu2 }
 0x15f   : > { %v1039_v16 = vadd.f32 %v961_v40, %v762_v25  ;;  %v1239_v35 = vpop.f32.mrf.mxu3  ;;  %v1519_v34 = vpop.f32.mrf.mxu0  ;;  %v489_v25 = vadd.f32 %v6635_v2, %v6855_v56 }
 0x161   : > { %v1317_v28 = vadd.f32 %v1239_v35, %v1039_v16  ;;  %v7123_v16 = vld [vmem:[%s6300_s8 + $0x172] sm:$0xff]  ;;  %v766_v13 = vadd.f32 %v6862_v4, %v489_v25  ;;  %v8971_v25 = vld [vmem:[#allocation13_spill] sm:$0xff] }
 0x162   : > { %5654 = vmatmul.msk.f32.gmra.mxu0 %vm262_vm1, %v8961_v50 }
 0x163   : > { %5524 = vmatmul.msk.f32.gmra.mxu2 %vm262_vm1, %v7043_v30  ;;  %v7081_v29 = vadd.f32 %v1516_v23, %v1317_v28 }
 0x164   : > { %5589 = vmatmul.msk.f32.gmra.mxu3 %vm262_vm1, %v8962_v57 }
 0x165   : > { %5719 = vmatmul.msk.f32.gmra.mxu1 %vm262_vm1, %v7075_v51 }
 0x166   : > { %v964_v44 = vpop.f32.mrf.mxu2 }
 0x167   : > { %v1040_v18 = vadd.f32 %v964_v44, %v763_v6  ;;  %v1242_v26 = vpop.f32.mrf.mxu3  ;;  %v1522_v9 = vpop.f32.mrf.mxu0  ;;  %v7137_v6 = vld [vmem:[%s6300_s8 + $0x181] sm:$0xff]  ;;  %v490_v44 = vadd.f32 %v6635_v2, %v6876_v53 }
 0x169   : > { %v1318_v38 = vadd.f32 %v1242_v26, %v1040_v18  ;;  %v7142_v26 = vld [vmem:[%s6300_s8 + $0x180] sm:$0xff]  ;;  %v767_v53 = vadd.f32 %v6880_v49, %v490_v44 }
 0x16a   : > { %5655 = vmatmul.msk.f32.gmra.mxu0 %vm262_vm1, %v8963_v32  ;;  %v5791_v44 = vld [vmem:[%s6300_s8 + $0x39] sm:$0xff] }
 0x16b   : > { %5525 = vmatmul.msk.f32.gmra.mxu2 %vm262_vm1, %v7059_v54  ;;  %v7097_v33 = vadd.f32 %v1519_v34, %v1318_v38  ;;  %v8968_v34 = vld [vmem:[#allocation9_spill] sm:$0xff] }
 0x16c   : > { %5590 = vmatmul.msk.f32.gmra.mxu3 %vm262_vm1, %v8964_v55 }
 0x16d   : > { %5720 = vmatmul.msk.f32.gmra.mxu1 %vm262_vm1, %v7091_v17 }
 0x16e   : > { %v967_v48 = vpop.f32.mrf.mxu2 }
 0x16f   : > { %v1041_v12 = vadd.f32 %v967_v48, %v764_v3  ;;  %v1245_v5 = vpop.f32.mrf.mxu3  ;;  %v1525_v31 = vpop.f32.mrf.mxu0  ;;  %v7159_v3 = vld [vmem:[%s6300_s8 + $0x189] sm:$0xff] }
 0x170   : > { %v8969_v48 = vld [vmem:[#allocation38_spill] sm:$0xff] }
 0x171   : > { %v1319_v42 = vadd.f32 %v1245_v5, %v1041_v12  ;;  %v491_v12 = vadd.f32 %v6635_v2, %v8969_v48 }
 0x172   : > { %5656 = vmatmul.msk.f32.gmra.mxu0 %vm262_vm1, %v8965_v36 }
 0x173   : > { %5526 = vmatmul.msk.f32.gmra.mxu2 %vm262_vm1, %v7075_v51  ;;  %v7113_v37 = vadd.f32 %v1522_v9, %v1319_v42  ;;  %v7145_v9 = vld [vmem:[%s6300_s8 + $0x182] sm:$0xff]  ;;  %v8970_v42 = vld [vmem:[#allocation40_spill] sm:$0xff] }
 0x174   : > { %5591 = vmatmul.msk.f32.gmra.mxu3 %vm262_vm1, %v8966_v24  ;;  %v768_v36 = vadd.f32 %v8970_v42, %v491_v12  ;;  %v5727_v12 = vld [vmem:[%s6300_s8 + $0x48] sm:$0xff] }
 0x175   : > { %5721 = vmatmul.msk.f32.gmra.mxu1 %vm262_vm1, %v7107_v21  ;;  %v5792_v42 = vld [vmem:[%s6300_s8 + $0x49] sm:$0xff] }
 0x176   : > { %v970_v52 = vpop.f32.mrf.mxu2 }
 0x177   : > { %v1042_v23 = vadd.f32 %v970_v52, %v765_v60  ;;  %v1248_v22 = vpop.f32.mrf.mxu3  ;;  %v1528_v47 = vpop.f32.mrf.mxu0 }
 0x179   : > { %v1320_v40 = vadd.f32 %v1248_v22, %v1042_v23  ;;  %v5725_v23 = vld [vmem:[%s6300_s8 + $0x30] sm:$0xff] }
 0x17a   : > { %5657 = vmatmul.msk.f32.gmra.mxu0 %vm262_vm1, %v8967_v41 }
 0x17b   : > { %5527 = vmatmul.msk.f32.gmra.mxu2 %vm262_vm1, %v7091_v17  ;;  %v7129_v35 = vadd.f32 %v1525_v31, %v1320_v40  ;;  %v7164_v31 = vld [vmem:[%s6300_s8 + $0x188] sm:$0xff] }
 0x17c   : > { %5592 = vmatmul.msk.f32.gmra.mxu3 %vm262_vm1, %v8968_v34  ;;  %v8972_v34 = vld [vmem:[#allocation11_spill] sm:$0xff] }
 0x17d   : > { %5722 = vmatmul.msk.f32.gmra.mxu1 %vm262_vm1, %v7123_v16 }
 0x17e   : > { %v973_v56 = vpop.f32.mrf.mxu2 }
 0x17f   : > { %v1043_v28 = vadd.f32 %v973_v56, %v766_v13  ;;  %v1251_v50 = vpop.f32.mrf.mxu3  ;;  %v1531_v57 = vpop.f32.mrf.mxu0 }
 0x181   : > { %v1321_v18 = vadd.f32 %v1251_v50, %v1043_v28  ;;  %v5726_v50 = vld [vmem:[%s6300_s8 + $0x38] sm:$0xff] }
 0x182   : > { %5658 = vmatmul.msk.f32.gmra.mxu0 %vm262_vm1, %v7137_v6 }
 0x183   : > { %5528 = vmatmul.msk.f32.gmra.mxu2 %vm262_vm1, %v7107_v21  ;;  %v7151_v4 = vadd.f32 %v1528_v47, %v1321_v18  ;;  %v5790_v47 = vld [vmem:[%s6300_s8 + $0x31] sm:$0xff] }
 0x184   : > { %5593 = vmatmul.msk.f32.gmra.mxu3 %vm262_vm1, %v7142_v26  ;;  %v8973_v18 = vld [vmem:[#allocation15_spill] sm:$0xff] }
 0x185   : > { %5723 = vmatmul.msk.f32.gmra.mxu1 %vm262_vm1, %v7145_v9 }
 0x186   : > { %v976_v39 = vpop.f32.mrf.mxu2 }
 0x187   : > { %v1044_v38 = vadd.f32 %v976_v39, %v767_v53  ;;  %v1254_v32 = vpop.f32.mrf.mxu3  ;;  %v1534_v55 = vpop.f32.mrf.mxu0 }
 0x189   : > { %v1322_v5 = vadd.f32 %v1254_v32, %v1044_v38  ;;  %v8974_v38 = vld [vmem:[#allocation12_spill] sm:$0xff] }
 0x18a   : > { %5659 = vmatmul.msk.f32.gmra.mxu0 %vm262_vm1, %v7159_v3 }
 0x18b   : > { %5529 = vmatmul.msk.f32.gmra.mxu2 %vm262_vm1, %v7123_v16  ;;  %v7173_v49 = vadd.f32 %v1531_v57, %v1322_v5 }
 0x18c   : > { %5594 = vmatmul.msk.f32.gmra.mxu3 %vm262_vm1, %v7164_v31 }
 0x18d   : > { %5724 = vmatmul.msk.f32.gmra.mxu1 %vm262_vm1, %v7167_v43 }
 0x18e   : > { %v979_v2 = vpop.f32.mrf.mxu2 }
 0x18f   : > { %v1045_v24 = vadd.f32 %v979_v2, %v768_v36  ;;  %v1257_v60 = vpop.f32.mrf.mxu3  ;;  %v1537_v52 = vpop.f32.mrf.mxu0  ;;  %v8975_v2 = vld [vmem:[#allocation17_spill] sm:$0xff] }
 0x190   : > { %v7200_v36 = vpop.f32.mrf.mxu1 }
 0x191   : > { %v1323_v22 = vadd.f32 %v1257_v60, %v1045_v24 }
 0x192   : > { %5888 = vmatmul.msk.f32.vlgmr.msra.gmra.mxu0 %vm262_vm1, %v8971_v25  ;;  %v5728_v25 = vld [vmem:[%s6300_s8 + $0x50] sm:$0xff] }
 0x193   : > { %5758 = vmatmul.msk.f32.vlgmr.msra.gmra.mxu2 %vm262_vm1, %v5725_v23  ;;  %v7185_v40 = vadd.f32 %v1534_v55, %v1323_v22 }
 0x194   : > { %5823 = vmatmul.msk.f32.vlgmr.msra.gmra.mxu3 %vm262_vm1, %v5790_v47 }
 0x196   : > { %v982_v41 = vpop.f32.mrf.mxu2 }
 0x197   : > { %v1046_v13 = vadd.f32 %v982_v41, %v8972_v34  ;;  %v1260_v56 = vpop.f32.mrf.mxu3  ;;  %v1540_v28 = vpop.f32.mrf.mxu0  ;;  %v5793_v34 = vld [vmem:[%s6300_s8 + $0x51] sm:$0xff] }
 0x199   : > { %v1324_v57 = vadd.f32 %v1260_v56, %v1046_v13  ;;  %v8977_v13 = vld [vmem:[#allocation19_spill] sm:$0xff] }
 0x19a   : > { %5889 = vmatmul.msk.f32.gmra.mxu0 %vm262_vm1, %v8973_v18 }
 0x19b   : > { %5759 = vmatmul.msk.f32.gmra.mxu2 %vm262_vm1, %v5726_v50  ;;  %v7194_v53 = vadd.f32 %v1537_v52, %v1324_v57  ;;  %v8976_v52 = vld [vmem:[#allocation14_spill] sm:$0xff]  ;;  %v8978_v57 = vld [vmem:[#allocation16_spill] sm:$0xff] }
 0x19c   : > { %5824 = vmatmul.msk.f32.gmra.mxu3 %vm262_vm1, %v5791_v44 }
 0x19e   : > { %v985_v39 = vpop.f32.mrf.mxu2 }
 0x19f   : > { %v1047_v32 = vadd.f32 %v985_v39, %v8974_v38  ;;  %v1263_v55 = vpop.f32.mrf.mxu3  ;;  %v1543_v48 = vpop.f32.mrf.mxu0  ;;  %v5729_v38 = vld [vmem:[%s6300_s8 + $0x60] sm:$0xff] }
 0x1a1   : > { %v1325_v5 = vadd.f32 %v1263_v55, %v1047_v32  ;;  %v5794_v55 = vld [vmem:[%s6300_s8 + $0x61] sm:$0xff] }
 0x1a2   : > { %5890 = vmatmul.msk.f32.gmra.mxu0 %vm262_vm1, %v8975_v2  ;;  %v8981_v2 = vld [vmem:[#allocation18_spill] sm:$0xff] }
 0x1a3   : > { %5760 = vmatmul.msk.f32.gmra.mxu2 %vm262_vm1, %v5727_v12  ;;  %v7205_v24 = vadd.f32 %v1540_v28, %v1325_v5  ;;  %v7216_v28 = vpop.f32.mrf.mxu1  ;;  %v8979_v12 = vld [vmem:[#allocation21_spill] sm:$0xff] }
 0x1a4   : > { %5825 = vmatmul.msk.f32.gmra.mxu3 %vm262_vm1, %v5792_v42 }
 0x1a6   : > { %v988_v60 = vpop.f32.mrf.mxu2 }
 0x1a7   : > { %v1048_v23 = vadd.f32 %v988_v60, %v8976_v52  ;;  %v1266_v22 = vpop.f32.mrf.mxu3  ;;  %v1546_v47 = vpop.f32.mrf.mxu0 }
 0x1a9   : > { %v1326_v41 = vadd.f32 %v1266_v22, %v1048_v23  ;;  %v5730_v22 = vld [vmem:[%s6300_s8 + $0x68] sm:$0xff] }
 0x1aa   : > { %5891 = vmatmul.msk.f32.gmra.mxu0 %vm262_vm1, %v8977_v13 }
 0x1ab   : > { %5761 = vmatmul.msk.f32.gmra.mxu2 %vm262_vm1, %v5728_v25  ;;  %v7214_v56 = vadd.f32 %v1543_v48, %v1326_v41  ;;  %v7228_v5 = vpop.f32.mrf.mxu1  ;;  %v5795_v41 = vld [vmem:[%s6300_s8 + $0x69] sm:$0xff] }
 0x1ac   : > { %5826 = vmatmul.msk.f32.gmra.mxu3 %vm262_vm1, %v5793_v34  ;;  %v8982_v34 = vld [vmem:[#allocation23_spill] sm:$0xff] }
 0x1ae   : > { %v991_v50 = vpop.f32.mrf.mxu2 }
 0x1af   : > { %v1049_v44 = vadd.f32 %v991_v50, %v8978_v57  ;;  %v1269_v18 = vpop.f32.mrf.mxu3  ;;  %v1549_v39 = vpop.f32.mrf.mxu0  ;;  %v8984_v50 = vld [vmem:[#allocation20_spill] sm:$0xff] }
 0x1b1   : > { %v1327_v32 = vadd.f32 %v1269_v18, %v1049_v44 }
 0x1b2   : > { %5892 = vmatmul.msk.f32.gmra.mxu0 %vm262_vm1, %v8979_v12  ;;  %v5796_v12 = vld [vmem:[%s6300_s8 + $0x79] sm:$0xff] }
 0x1b3   : > { %5762 = vmatmul.msk.f32.gmra.mxu2 %vm262_vm1, %v5729_v38  ;;  %v7225_v48 = vadd.f32 %v1546_v47, %v1327_v32  ;;  %v7240_v18 = vpop.f32.mrf.mxu1  ;;  %v5731_v32 = vld [vmem:[%s6300_s8 + $0x78] sm:$0xff] }
 0x1b4   : > { %5827 = vmatmul.msk.f32.gmra.mxu3 %vm262_vm1, %v5794_v55 }
 0x1b5   : > { %8980 = vst [vmem:[#allocation4_spill] sm:$0xff] %v7225_v48  ;;  %v5738_v48 = vld [vmem:[%s6300_s8 + $0xc8] sm:$0xff] }
 0x1b6   : > { %v994_v42 = vpop.f32.mrf.mxu2 }
 0x1b7   : > { %v1050_v60 = vadd.f32 %v994_v42, %v8981_v2  ;;  %v1272_v52 = vpop.f32.mrf.mxu3  ;;  %v1552_v23 = vpop.f32.mrf.mxu0  ;;  %v8985_v42 = vld [vmem:[#allocation25_spill] sm:$0xff] }
 0x1b9   : > { %v1328_v25 = vadd.f32 %v1272_v52, %v1050_v60  ;;  %v8987_v60 = vld [vmem:[#allocation22_spill] sm:$0xff] }
 0x1ba   : > { %5893 = vmatmul.msk.f32.gmra.mxu0 %vm262_vm1, %v8982_v34 }
 0x1bb   : > { %5763 = vmatmul.msk.f32.gmra.mxu2 %vm262_vm1, %v5730_v22  ;;  %v7236_v47 = vadd.f32 %v1549_v39, %v1328_v25 }
 0x1bc   : > { %5828 = vmatmul.msk.f32.gmra.mxu3 %vm262_vm1, %v5795_v41  ;;  %v5732_v41 = vld [vmem:[%s6300_s8 + $0x80] sm:$0xff] }
 0x1bd   : > { %8983 = vst [vmem:[#allocation3_spill] sm:$0xff] %v7236_v47  ;;  %v5736_v47 = vld [vmem:[%s6300_s8 + $0xb0] sm:$0xff] }
 0x1be   : > { %v997_v13 = vpop.f32.mrf.mxu2 }
 0x1bf   : > { %v1051_v57 = vadd.f32 %v997_v13, %v8984_v50  ;;  %v1275_v44 = vpop.f32.mrf.mxu3  ;;  %v1555_v38 = vpop.f32.mrf.mxu0  ;;  %v5797_v13 = vld [vmem:[%s6300_s8 + $0x81] sm:$0xff] }
 0x1c0   : > { %v7253_v50 = vpop.f32.mrf.mxu1 }
 0x1c1   : > { %v1329_v55 = vadd.f32 %v1275_v44, %v1051_v57  ;;  %v8988_v57 = vld [vmem:[#allocation27_spill] sm:$0xff] }
 0x1c2   : > { %5894 = vmatmul.msk.f32.gmra.mxu0 %vm262_vm1, %v8985_v42 }
 0x1c3   : > { %5764 = vmatmul.msk.f32.gmra.mxu2 %vm262_vm1, %v5731_v32  ;;  %v7247_v39 = vadd.f32 %v1552_v23, %v1329_v55  ;;  %v8990_v32 = vld [vmem:[#allocation24_spill] sm:$0xff] }
 0x1c4   : > { %5829 = vmatmul.msk.f32.gmra.mxu3 %vm262_vm1, %v5796_v12 }
 0x1c5   : > { %8986 = vst [vmem:[#allocation6_spill] sm:$0xff] %v7247_v39  ;;  %v5800_v39 = vld [vmem:[%s6300_s8 + $0xa9] sm:$0xff] }
 0x1c6   : > { %v1000_v2 = vpop.f32.mrf.mxu2 }
 0x1c7   : > { %v1052_v52 = vadd.f32 %v1000_v2, %v8987_v60  ;;  %v1278_v22 = vpop.f32.mrf.mxu3  ;;  %v1558_v25 = vpop.f32.mrf.mxu0  ;;  %v5733_v2 = vld [vmem:[%s6300_s8 + $0x90] sm:$0xff] }
 0x1c9   : > { %v1330_v34 = vadd.f32 %v1278_v22, %v1052_v52  ;;  %v5798_v52 = vld [vmem:[%s6300_s8 + $0x91] sm:$0xff]  ;;  %v8991_v22 = vld [vmem:[#allocation29_spill] sm:$0xff] }
 0x1ca   : > { %5895 = vmatmul.msk.f32.gmra.mxu0 %vm262_vm1, %v8988_v57 }
 0x1cb   : > { %5765 = vmatmul.msk.f32.gmra.mxu2 %vm262_vm1, %v5732_v41  ;;  %v7258_v23 = vadd.f32 %v1555_v38, %v1330_v34  ;;  %v7269_v38 = vpop.f32.mrf.mxu1 }
 0x1cc   : > { %5830 = vmatmul.msk.f32.gmra.mxu3 %vm262_vm1, %v5797_v13  ;;  %v8993_v13 = vld [vmem:[#allocation26_spill] sm:$0xff] }
 0x1cd   : > { %8989 = vst [vmem:[#allocation5_spill] sm:$0xff] %v7258_v23  ;;  %v5799_v23 = vld [vmem:[%s6300_s8 + $0x99] sm:$0xff] }
 0x1ce   : > { %v1003_v44 = vpop.f32.mrf.mxu2 }
 0x1cf   : > { %v1053_v55 = vadd.f32 %v1003_v44, %v8990_v32  ;;  %v1281_v12 = vpop.f32.mrf.mxu3  ;;  %v1561_v42 = vpop.f32.mrf.mxu0 }
 0x1d1   : > { %v1331_v60 = vadd.f32 %v1281_v12, %v1053_v55  ;;  %v5734_v55 = vld [vmem:[%s6300_s8 + $0x98] sm:$0xff] }
 0x1d2   : > { %5896 = vmatmul.msk.f32.gmra.mxu0 %vm262_vm1, %v8991_v22  ;;  %v8996_v22 = vld [vmem:[#allocation28_spill] sm:$0xff] }
 0x1d3   : > { %5766 = vmatmul.msk.f32.gmra.mxu2 %vm262_vm1, %v5733_v2  ;;  %v7267_v41 = vadd.f32 %v1558_v25, %v1331_v60  ;;  %v8994_v2 = vld [vmem:[#allocation31_spill] sm:$0xff]  ;;  %v7281_v60 = vpop.f32.mrf.mxu1 }
 0x1d4   : > { %5831 = vmatmul.msk.f32.gmra.mxu3 %vm262_vm1, %v5798_v52 }
 0x1d5   : > { %8992 = vst [vmem:[#allocation8_spill] sm:$0xff] %v7267_v41 }
 0x1d6   : > { %v1006_v34 = vpop.f32.mrf.mxu2 }
 0x1d7   : > { %v1054_v57 = vadd.f32 %v1006_v34, %v8993_v13  ;;  %v1284_v44 = vpop.f32.mrf.mxu3  ;;  %v1564_v32 = vpop.f32.mrf.mxu0 }
 0x1d9   : > { %v1332_v12 = vadd.f32 %v1284_v44, %v1054_v57  ;;  %v5735_v57 = vld [vmem:[%s6300_s8 + $0xa8] sm:$0xff] }
 0x1da   : > { %5897 = vmatmul.msk.f32.gmra.mxu0 %vm262_vm1, %v8994_v2 }
 0x1db   : > { %5767 = vmatmul.msk.f32.gmra.mxu2 %vm262_vm1, %v5734_v55  ;;  %v7278_v25 = vadd.f32 %v1561_v42, %v1332_v12  ;;  %v8997_v55 = vld [vmem:[#allocation33_spill] sm:$0xff]  ;;  %v8999_v12 = vld [vmem:[#allocation30_spill] sm:$0xff] }
 0x1dc   : > { %5832 = vmatmul.msk.f32.gmra.mxu3 %vm262_vm1, %v5799_v23 }
 0x1dd   : > { %8995 = vst [vmem:[#allocation7_spill] sm:$0xff] %v7278_v25 }
 0x1de   : > { %v1009_v52 = vpop.f32.mrf.mxu2 }
 0x1df   : > { %v1055_v34 = vadd.f32 %v1009_v52, %v8996_v22  ;;  %v1287_v13 = vpop.f32.mrf.mxu3  ;;  %v1567_v41 = vpop.f32.mrf.mxu0 }
 0x1e0   : > { %v7293_v52 = vpop.f32.mrf.mxu1 }
 0x1e1   : > { %v1333_v44 = vadd.f32 %v1287_v13, %v1055_v34  ;;  %v5801_v13 = vld [vmem:[%s6300_s8 + $0xb1] sm:$0xff] }
 0x1e2   : > { %5898 = vmatmul.msk.f32.gmra.mxu0 %vm262_vm1, %v8997_v55 }
 0x1e3   : > { %5768 = vmatmul.msk.f32.gmra.mxu2 %vm262_vm1, %v5735_v57  ;;  %v7289_v42 = vadd.f32 %v1564_v32, %v1333_v44  ;;  %v9000_v57 = vld [vmem:[#allocation35_spill] sm:$0xff] }
 0x1e4   : > { %5833 = vmatmul.msk.f32.gmra.mxu3 %vm262_vm1, %v5800_v39  ;;  %v3143_v39 = vld [vmem:[%s8871_s3 + $0x8] sm:$0xff] }
 0x1e5   : > { %8998 = vst [vmem:[#allocation10_spill] sm:$0xff] %v7289_v42  ;;  %3255 = vmatpush.msrb.mxu2 %v3143_v39  ;;  %v9003_v39 = vld [vmem:[#allocation37_spill] sm:$0xff] }
 0x1e6   : > { %v1012_v23 = vpop.f32.mrf.mxu2 }
 0x1e7   : > { %v1056_v2 = vadd.f32 %v1012_v23, %v8999_v12  ;;  %v1290_v25 = vpop.f32.mrf.mxu3  ;;  %v1570_v22 = vpop.f32.mrf.mxu0 }
 0x1e9   : > { %v1334_v34 = vadd.f32 %v1290_v25, %v1056_v2  ;;  %v3417_v25 = vld [vmem:[%s8871_s3 + $0x10] sm:$0xff]  ;;  %v8895_v2 = vmov 0.0  }
 0x1ea   : > { %5899 = vmatmul.msk.f32.gmra.mxu0 %vm262_vm1, %v9000_v57  ;;  %3529 = vmatpush.msrb.mxu3 %v3417_v25  ;;  %2759 = vst.msk [vmem:[#allocation2] sm:$0xff] %vm2758_vm2, %v8895_v2  ;;  %v7316_v57 = vpop.f32.mrf.mxu1 }
 0x1eb   : > { %5769 = vmatmul.msk.f32.gmra.mxu2 %vm262_vm1, %v5736_v47  ;;  %v7300_v32 = vadd.f32 %v1567_v41, %v1334_v34  ;;  %v9002_v47 = vld [vmem:[#allocation32_spill] sm:$0xff]  ;;  %v5737_v41 = vld [vmem:[%s6300_s8 + $0xc0] sm:$0xff]  ;;  %2760 = vst.msk [vmem:[#allocation2 + $0x8] sm:$0xff] %vm2758_vm2, %v8895_v2 }
 0x1ec   : > { %5834 = vmatmul.msk.f32.gmra.mxu3 %vm262_vm1, %v5801_v13  ;;  %v5802_v13 = vld [vmem:[%s6300_s8 + $0xc1] sm:$0xff]  ;;  %2764 = vst.msk [vmem:[#allocation2 + $0x198] sm:$0xff] %vm2758_vm2, %v8895_v2 }
 0x1ed   : > { %9001 = vst [vmem:[#allocation9_spill] sm:$0xff] %v7300_v32 }
 0x1ee   : > { %v1015_v44 = vpop.f32.mrf.mxu2  ;;  %2765 = vst.msk [vmem:[#allocation2 + $0x1a0] sm:$0xff] %vm2758_vm2, %v8895_v2 }
 0x1ef   : > { %v1057_v55 = vadd.f32 %v1015_v44, %v9002_v47  ;;  %v1293_v23 = vpop.f32.mrf.mxu3  ;;  %v1573_v12 = vpop.f32.mrf.mxu0  ;;  %v3691_v44 = vld [vmem:[%s8871_s3 + $0x18] sm:$0xff] }
 0x1f0   : > { %3803 = vmatpush.msrb.mxu0 %v3691_v44 }
 0x1f1   : > { %v1335_v34 = vadd.f32 %v1293_v23, %v1057_v55  ;;  %v9004_v55 = vld [vmem:[#allocation34_spill] sm:$0xff] }
 0x1f2   : > { %5900 = vmatmul.msk.f32.gmra.mxu0 %vm262_vm1, %v9003_v39  ;;  %v7340_v39 = vpop.f32.mrf.mxu1 }
 0x1f3   : > { %5770 = vmatmul.msk.f32.gmra.mxu2 %vm262_vm1, %v5737_v41  ;;  %v7323_v25 = vadd.f32 %v1570_v22, %v1335_v34  ;;  %v2837_v41 = vld [vmem:[#allocation2] sm:$0xff]  ;;  %v5803_v34 = vld [vmem:[%s6300_s8 + $0xc9] sm:$0xff] }
 0x1f4   : > { %5835 = vmatmul.msk.f32.gmra.mxu3 %vm262_vm1, %v5802_v13  ;;  %5920 = vmatmul.msk.f32.vlgmr.msra.gmra.mxu1 %vm2758_vm2, %v2837_v41  ;;  %v5739_v41 = vld [vmem:[%s6300_s8 + $0xd8] sm:$0xff] }
 0x1f6   : > { %v1018_v47 = vpop.f32.mrf.mxu2 }
 0x1f7   : > { %v1058_v23 = vadd.f32 %v1018_v47, %v9004_v55  ;;  %v1296_v32 = vpop.f32.mrf.mxu3  ;;  %v1576_v42 = vpop.f32.mrf.mxu0  ;;  %v9005_v47 = vld [vmem:[#allocation36_spill] sm:$0xff] }
 0x1f9   : > { %v1336_v22 = vadd.f32 %v1296_v32, %v1058_v23  ;;  %v3965_v32 = vld [vmem:[%s8871_s3 + $0x20] sm:$0xff]  ;;  %v2838_v23 = vld [vmem:[#allocation2 + $0x8] sm:$0xff] }
 0x1fa   : > { %5901 = vmatmul.msk.f32.gmra.mxu0 %vm262_vm1, %v6901_v0  ;;  %4077 = vmatpush.msrb.mxu1 %v3965_v32  ;;  %v9006_v0 = vmov 0.0   ;;  %v5740_v32 = vld [vmem:[%s6300_s8 + $0xe0] sm:$0xff] }
 0x1fb   : > { %5771 = vmatmul.msk.f32.gmra.mxu2 %vm262_vm1, %v5738_v48  ;;  %v7338_v13 = vadd.f32 %v1573_v12, %v1336_v22  ;;  %2769 = vst.msk [vmem:[#allocation2 + $0x18] sm:$0x1] %vm2768_vm3, %v9006_v0  ;;  %v5804_v22 = vld [vmem:[%s6300_s8 + $0xd9] sm:$0xff] }
 0x1fc   : > { %5836 = vmatmul.msk.f32.gmra.mxu3 %vm262_vm1, %v5803_v34  ;;  %5921 = vmatmul.msk.f32.gmra.mxu1 %vm2758_vm2, %v2838_v23  ;;  %2770 = vst.msk [vmem:[#allocation2 + $0x30] sm:$0x1] %vm2768_vm3, %v9006_v0 }
 0x1fd   : > { %2771 = vst.msk [vmem:[#allocation2 + $0x48] sm:$0x1] %vm2768_vm3, %v9006_v0 }
 0x1fe   : > { %v1021_v44 = vpop.f32.mrf.mxu2  ;;  %2772 = vst.msk [vmem:[#allocation2 + $0x60] sm:$0x1] %vm2768_vm3, %v9006_v0 }
 0x1ff   : > { %v1059_v55 = vadd.f32 %v1021_v44, %v9005_v47  ;;  %v1299_v2 = vpop.f32.mrf.mxu3  ;;  %v1579_v48 = vpop.f32.mrf.mxu0  ;;  %2773 = vst.msk [vmem:[#allocation2 + $0x78] sm:$0x1] %vm2768_vm3, %v9006_v0 }
 0x200   : > { %2774 = vst.msk [vmem:[#allocation2 + $0x90] sm:$0x1] %vm2768_vm3, %v9006_v0 }
 0x201   : > { %v1337_v12 = vadd.f32 %v1299_v2, %v1059_v55  ;;  %v7368_v2 = vpop.f32.mrf.mxu1  ;;  %2775 = vst.msk [vmem:[#allocation2 + $0xa8] sm:$0x1] %vm2768_vm3, %v9006_v0 }
 0x202   : > { %5902 = vmatmul.msk.f32.gmra.mxu0 %vm262_vm1, %v6917_v45  ;;  %v9007_v45 = vld [vmem:[#allocation39_spill] sm:$0xff]  ;;  %2776 = vst.msk [vmem:[#allocation2 + $0xc0] sm:$0x1] %vm2768_vm3, %v9006_v0 }
 0x203   : > { %5772 = vmatmul.msk.f32.gmra.mxu2 %vm262_vm1, %v5739_v41  ;;  %v7359_v34 = vadd.f32 %v1576_v42, %v1337_v12  ;;  %2777 = vst.msk [vmem:[#allocation2 + $0xd8] sm:$0x1] %vm2768_vm3, %v9006_v0  ;;  %v5805_v41 = vld [vmem:[%s6300_s8 + $0xe1] sm:$0xff] }
 0x204   : > { %5837 = vmatmul.msk.f32.gmra.mxu3 %vm262_vm1, %v5804_v22  ;;  %2778 = vst.msk [vmem:[#allocation2 + $0xf0] sm:$0x1] %vm2768_vm3, %v9006_v0 }
 0x205   : > { %2779 = vst.msk [vmem:[#allocation2 + $0x108] sm:$0x1] %vm2768_vm3, %v9006_v0 }
 0x206   : > { %v1024_v44 = vpop.f32.mrf.mxu2  ;;  %2780 = vst.msk [vmem:[#allocation2 + $0x120] sm:$0x1] %vm2768_vm3, %v9006_v0 }
 0x207   : > { %v1060_v42 = vadd.f32 %v1024_v44, %v9007_v45  ;;  %v1302_v47 = vpop.f32.mrf.mxu3  ;;  %v1582_v55 = vpop.f32.mrf.mxu0  ;;  %2781 = vst.msk [vmem:[#allocation2 + $0x138] sm:$0x1] %vm2768_vm3, %v9006_v0  ;;  %v9008_v44 = vld [vmem:[#allocation41_spill] sm:$0xff] }
 0x208   : > { %2782 = vst.msk [vmem:[#allocation2 + $0x150] sm:$0x1] %vm2768_vm3, %v9006_v0 }
 0x209   : > { %v1338_v23 = vadd.f32 %v1302_v47, %v1060_v42  ;;  %2783 = vst.msk [vmem:[#allocation2 + $0x168] sm:$0x1] %vm2768_vm3, %v9006_v0  ;;  %v5741_v47 = vld [vmem:[%s6300_s8 + $0xf0] sm:$0xff] }
 0x20a   : > { %5903 = vmatmul.msk.f32.gmra.mxu0 %vm262_vm1, %v6931_v59  ;;  %2784 = vst.msk [vmem:[#allocation2 + $0x180] sm:$0x1] %vm2768_vm3, %v9006_v0 }
 0x20b   : > { %5773 = vmatmul.msk.f32.gmra.mxu2 %vm262_vm1, %v5740_v32  ;;  %v7386_v12 = vadd.f32 %v1579_v48, %v1338_v23  ;;  %v7400_v48 = vpop.f32.mrf.mxu1  ;;  %2785 = vst.msk [vmem:[#allocation2 + $0x29] sm:$0x1] %vm2768_vm3, %v9006_v0  ;;  %v5806_v23 = vld [vmem:[%s6300_s8 + $0xf1] sm:$0xff] }
 0x20c   : > { %5838 = vmatmul.msk.f32.gmra.mxu3 %vm262_vm1, %v5805_v41  ;;  %2786 = vst.msk [vmem:[#allocation2 + $0x41] sm:$0x1] %vm2768_vm3, %v9006_v0 }
 0x20d   : > { %2787 = vst.msk [vmem:[#allocation2 + $0x59] sm:$0x1] %vm2768_vm3, %v9006_v0 }
 0x20e   : > { %v1027_v22 = vpop.f32.mrf.mxu2  ;;  %2788 = vst.msk [vmem:[#allocation2 + $0x71] sm:$0x1] %vm2768_vm3, %v9006_v0 }
 0x20f   : > { %v1061_v59 = vadd.f32 %v1027_v22, %v9008_v44  ;;  %v1305_v45 = vpop.f32.mrf.mxu3  ;;  %v2598_v42 = vpop.f32.mrf.mxu0  ;;  %2789 = vst.msk [vmem:[#allocation2 + $0x89] sm:$0x1] %vm2768_vm3, %v9006_v0 }
 0x210   : > { %2790 = vst.msk [vmem:[#allocation2 + $0xa1] sm:$0x1] %vm2768_vm3, %v9006_v0 }
 0x211   : > { %v1339_v32 = vadd.f32 %v1305_v45, %v1061_v59  ;;  %2791 = vst.msk [vmem:[#allocation2 + $0xb9] sm:$0x1] %vm2768_vm3, %v9006_v0  ;;  %v5742_v59 = vld [vmem:[%s6300_s8 + $0xf8] sm:$0xff] }
 0x212   : > { %5904 = vmatmul.msk.f32.gmra.mxu0 %vm262_vm1, %v6947_v63  ;;  %2792 = vst.msk [vmem:[#allocation2 + $0xd1] sm:$0x1] %vm2768_vm3, %v9006_v0 }
 0x213   : > { %5774 = vmatmul.msk.f32.gmra.mxu2 %vm262_vm1, %v5741_v47  ;;  %v7413_v41 = vadd.f32 %v1582_v55, %v1339_v32  ;;  %2793 = vst.msk [vmem:[#allocation2 + $0xe9] sm:$0x1] %vm2768_vm3, %v9006_v0  ;;  %v5807_v47 = vld [vmem:[%s6300_s8 + $0xf9] sm:$0xff]  ;;  %v7433_v32 = vpop.f32.mrf.mxu1 }
 0x214   : > { %5839 = vmatmul.msk.f32.gmra.mxu3 %vm262_vm1, %v5806_v23  ;;  %2794 = vst.msk [vmem:[#allocation2 + $0x101] sm:$0x1] %vm2768_vm3, %v9006_v0 }
 0x215   : > { %9009 = vst [vmem:[#allocation38_spill] sm:$0xff] %v7413_v41 }
 0x216   : > { %v2044_v22 = vpop.f32.mrf.mxu2  ;;  %2795 = vst.msk [vmem:[#allocation2 + $0x119] sm:$0x1] %vm2768_vm3, %v9006_v0 }
 0x217   : > { %v2140_v44 = vadd.f32 %v2044_v22, %v6940_v62  ;;  %v2321_v63 = vpop.f32.mrf.mxu3  ;;  %v2601_v55 = vpop.f32.mrf.mxu0  ;;  %2796 = vst.msk [vmem:[#allocation2 + $0x131] sm:$0x1] %vm2768_vm3, %v9006_v0 }
 0x218   : > { %2797 = vst.msk [vmem:[#allocation2 + $0x149] sm:$0x1] %vm2768_vm3, %v9006_v0 }
 0x219   : > { %v2417_v45 = vadd.f32 %v2321_v63, %v2140_v44  ;;  %2798 = vst.msk [vmem:[#allocation2 + $0x161] sm:$0x1] %vm2768_vm3, %v9006_v0  ;;  %v5743_v63 = vld [vmem:[%s6300_s8 + $0x108] sm:$0xff] }
 0x21a   : > { %5905 = vmatmul.msk.f32.gmra.mxu0 %vm262_vm1, %v6963_v7  ;;  %2799 = vst.msk [vmem:[#allocation2 + $0x179] sm:$0x1] %vm2768_vm3, %v9006_v0 }
 0x21b   : > { %v2694_v62 = vadd.f32 %v2598_v42, %v2417_v45  ;;  %5775 = vmatmul.msk.f32.gmra.mxu2 %vm262_vm1, %v5742_v59  ;;  %2800 = vst.msk [vmem:[#allocation2 + $0x191] sm:$0x1] %vm2768_vm3, %v9006_v0  ;;  %v5808_v45 = vld [vmem:[%s6300_s8 + $0x109] sm:$0xff] }
 0x21c   : > { %5840 = vmatmul.msk.f32.gmra.mxu3 %vm262_vm1, %v5807_v47  ;;  %2762 = vst.msk [vmem:[#allocation2 + $0x10] sm:$0x3] %vm2761_vm4, %v9006_v0 }
 0x21d   : > { %v2726_v23 = vmax.f32 %v2694_v62, 0.0  ;;  %v7458_v62 = vpop.f32.mrf.mxu1  ;;  %2766 = vst.msk [vmem:[#allocation2 + $0x1a8] sm:$0x3] %vm2761_vm4, %v9006_v0 }
 0x21e   : > { %v2047_v22 = vpop.f32.mrf.mxu2 }
 0x21f   : > { %2801 = vst.msk [vmem:[#allocation2 + $0x19] sm:$0xff] %vm2758_vm2, %v2726_v23  ;;  %v2141_v7 = vadd.f32 %v2047_v22, %v6956_v58  ;;  %v2324_v42 = vpop.f32.mrf.mxu3  ;;  %v2604_v44 = vpop.f32.mrf.mxu0 }
 0x221   : > { %v2418_v59 = vadd.f32 %v2324_v42, %v2141_v7 }
 0x222   : > { %5906 = vmatmul.msk.f32.gmra.mxu0 %vm262_vm1, %v6979_v27 }
 0x223   : > { %v2695_v47 = vadd.f32 %v2601_v55, %v2418_v59  ;;  %5776 = vmatmul.msk.f32.gmra.mxu2 %vm262_vm1, %v5743_v63  ;;  %v5744_v63 = vld [vmem:[%s6300_s8 + $0x110] sm:$0xff] }
 0x224   : > { %5841 = vmatmul.msk.f32.gmra.mxu3 %vm262_vm1, %v5808_v45  ;;  %v5809_v59 = vld [vmem:[%s6300_s8 + $0x111] sm:$0xff] }
 0x225   : > { %v2727_v58 = vmax.f32 %v2695_v47, 0.0 }
 0x226   : > { %v2050_v23 = vpop.f32.mrf.mxu2  ;;  %v7461_v22 = vld [vmem:[#allocation2 + $0x18] sm:$0xff] }
 0x227   : > { %2802 = vst.msk [vmem:[#allocation2 + $0x21] sm:$0xff] %vm2758_vm2, %v2727_v58  ;;  %v2142_v7 = vadd.f32 %v2050_v23, %v6972_v61  ;;  %v2327_v42 = vpop.f32.mrf.mxu3  ;;  %5922 = vmatmul.msk.f32.gmra.mxu1 %vm2758_vm2, %v7461_v22  ;;  %v2607_v55 = vpop.f32.mrf.mxu0 }
 0x228   : > { %v7473_v61 = vpop.f32.mrf.mxu1 }
 0x229   : > { %v2419_v27 = vadd.f32 %v2327_v42, %v2142_v7  ;;  %v5745_v42 = vld [vmem:[%s6300_s8 + $0x120] sm:$0xff] }
 0x22a   : > { %5907 = vmatmul.msk.f32.gmra.mxu0 %vm262_vm1, %v6995_v14 }
 0x22b   : > { %v2696_v41 = vadd.f32 %v2604_v44, %v2419_v27  ;;  %5777 = vmatmul.msk.f32.gmra.mxu2 %vm262_vm1, %v5744_v63  ;;  %v5810_v63 = vld [vmem:[%s6300_s8 + $0x121] sm:$0xff] }
 0x22c   : > { %5842 = vmatmul.msk.f32.gmra.mxu3 %vm262_vm1, %v5809_v59 }
 0x22d   : > { %v2728_v45 = vmax.f32 %v2696_v41, 0.0 }
 0x22e   : > { %v2053_v47 = vpop.f32.mrf.mxu2  ;;  %v7475_v58 = vld [vmem:[#allocation2 + $0x20] sm:$0xff] }
 0x22f   : > { %2803 = vst.msk [vmem:[#allocation2 + $0x31] sm:$0xff] %vm2758_vm2, %v2728_v45  ;;  %v2143_v23 = vadd.f32 %v2053_v47, %v6988_v19  ;;  %v2330_v7 = vpop.f32.mrf.mxu3  ;;  %5923 = vmatmul.msk.f32.gmra.mxu1 %vm2758_vm2, %v7475_v58  ;;  %v2610_v44 = vpop.f32.mrf.mxu0 }
 0x231   : > { %v2420_v14 = vadd.f32 %v2330_v7, %v2143_v23  ;;  %v5746_v7 = vld [vmem:[%s6300_s8 + $0x128] sm:$0xff] }
 0x232   : > { %5908 = vmatmul.msk.f32.gmra.mxu0 %vm262_vm1, %v7011_v1 }
 0x233   : > { %v2697_v41 = vadd.f32 %v2607_v55, %v2420_v14  ;;  %5778 = vmatmul.msk.f32.gmra.mxu2 %vm262_vm1, %v5745_v42  ;;  %v7493_v55 = vpop.f32.mrf.mxu1  ;;  %v5811_v42 = vld [vmem:[%s6300_s8 + $0x129] sm:$0xff] }
 0x234   : > { %5843 = vmatmul.msk.f32.gmra.mxu3 %vm262_vm1, %v5810_v63 }
 0x235   : > { %v2729_v27 = vmax.f32 %v2697_v41, 0.0 }
 0x236   : > { %v2056_v19 = vpop.f32.mrf.mxu2  ;;  %v7487_v59 = vld [vmem:[#allocation2 + $0x30] sm:$0xff] }
 0x237   : > { %2804 = vst.msk [vmem:[#allocation2 + $0x39] sm:$0xff] %vm2758_vm2, %v2729_v27  ;;  %v2144_v45 = vadd.f32 %v2056_v19, %v7004_v15  ;;  %v2333_v47 = vpop.f32.mrf.mxu3  ;;  %5924 = vmatmul.msk.f32.gmra.mxu1 %vm2758_vm2, %v7487_v59  ;;  %v2613_v23 = vpop.f32.mrf.mxu0 }
 0x239   : > { %v2421_v1 = vadd.f32 %v2333_v47, %v2144_v45  ;;  %v5747_v45 = vld [vmem:[%s6300_s8 + $0x138] sm:$0xff] }
 0x23a   : > { %5909 = vmatmul.msk.f32.gmra.mxu0 %vm262_vm1, %v7027_v11 }
 0x23b   : > { %v2698_v14 = vadd.f32 %v2610_v44, %v2421_v1  ;;  %5779 = vmatmul.msk.f32.gmra.mxu2 %vm262_vm1, %v5746_v7  ;;  %v5812_v7 = vld [vmem:[%s6300_s8 + $0x139] sm:$0xff]  ;;  %v7509_v11 = vpop.f32.mrf.mxu1 }
 0x23c   : > { %5844 = vmatmul.msk.f32.gmra.mxu3 %vm262_vm1, %v5811_v42 }
 0x23d   : > { %v2730_v15 = vmax.f32 %v2698_v14, 0.0 }
 0x23e   : > { %v2059_v63 = vpop.f32.mrf.mxu2  ;;  %v7501_v41 = vld [vmem:[#allocation2 + $0x38] sm:$0xff] }
 0x23f   : > { %2805 = vst.msk [vmem:[#allocation2 + $0x49] sm:$0xff] %vm2758_vm2, %v2730_v15  ;;  %v2145_v27 = vadd.f32 %v2059_v63, %v7020_v10  ;;  %v2336_v19 = vpop.f32.mrf.mxu3  ;;  %5925 = vmatmul.msk.f32.gmra.mxu1 %vm2758_vm2, %v7501_v41  ;;  %v2616_v44 = vpop.f32.mrf.mxu0 }
 0x241   : > { %v2422_v47 = vadd.f32 %v2336_v19, %v2145_v27  ;;  %v5748_v27 = vld [vmem:[%s6300_s8 + $0x140] sm:$0xff] }
 0x242   : > { %5910 = vmatmul.msk.f32.gmra.mxu0 %vm262_vm1, %v7043_v30 }
 0x243   : > { %v2699_v1 = vadd.f32 %v2613_v23, %v2422_v47  ;;  %5780 = vmatmul.msk.f32.gmra.mxu2 %vm262_vm1, %v5747_v45  ;;  %v5813_v45 = vld [vmem:[%s6300_s8 + $0x141] sm:$0xff]  ;;  %v7526_v47 = vpop.f32.mrf.mxu1 }
 0x244   : > { %5845 = vmatmul.msk.f32.gmra.mxu3 %vm262_vm1, %v5812_v7 }
 0x245   : > { %v2731_v10 = vmax.f32 %v2699_v1, 0.0 }
 0x246   : > { %v2062_v42 = vpop.f32.mrf.mxu2  ;;  %v7515_v14 = vld [vmem:[#allocation2 + $0x48] sm:$0xff] }
 0x247   : > { %2806 = vst.msk [vmem:[#allocation2 + $0x51] sm:$0xff] %vm2758_vm2, %v2731_v10  ;;  %v2146_v15 = vadd.f32 %v2062_v42, %v7036_v20  ;;  %v2339_v63 = vpop.f32.mrf.mxu3  ;;  %5926 = vmatmul.msk.f32.gmra.mxu1 %vm2758_vm2, %v7515_v14  ;;  %v2619_v23 = vpop.f32.mrf.mxu0 }
 0x249   : > { %v2423_v19 = vadd.f32 %v2339_v63, %v2146_v15  ;;  %v5749_v15 = vld [vmem:[%s6300_s8 + $0x150] sm:$0xff] }
 0x24a   : > { %5911 = vmatmul.msk.f32.gmra.mxu0 %vm262_vm1, %v7059_v54  ;;  %v5814_v54 = vld [vmem:[%s6300_s8 + $0x151] sm:$0xff] }
 0x24b   : > { %v2700_v30 = vadd.f32 %v2616_v44, %v2423_v19  ;;  %5781 = vmatmul.msk.f32.gmra.mxu2 %vm262_vm1, %v5748_v27 }
 0x24c   : > { %5846 = vmatmul.msk.f32.gmra.mxu3 %vm262_vm1, %v5813_v45  ;;  %v7543_v45 = vpop.f32.mrf.mxu1 }
 0x24d   : > { %v2732_v20 = vmax.f32 %v2700_v30, 0.0 }
 0x24e   : > { %v2065_v7 = vpop.f32.mrf.mxu2  ;;  %v7529_v1 = vld [vmem:[#allocation2 + $0x50] sm:$0xff] }
 0x24f   : > { %2807 = vst.msk [vmem:[#allocation2 + $0x61] sm:$0xff] %vm2758_vm2, %v2732_v20  ;;  %v2147_v10 = vadd.f32 %v2065_v7, %v7052_v8  ;;  %v2342_v42 = vpop.f32.mrf.mxu3  ;;  %5927 = vmatmul.msk.f32.gmra.mxu1 %vm2758_vm2, %v7529_v1  ;;  %v2622_v44 = vpop.f32.mrf.mxu0  ;;  %v1870_v8 = vadd.f32 %v7200_v36, %v7065_v46  ;;  %v1871_v46 = vadd.f32 %v7216_v28, %v7081_v29 }
 0x250   : > { %v1872_v28 = vadd.f32 %v7228_v5, %v7097_v33  ;;  %v1873_v33 = vadd.f32 %v7240_v18, %v7113_v37 }
 0x251   : > { %v2424_v63 = vadd.f32 %v2342_v42, %v2147_v10 }
 0x252   : > { %5912 = vmatmul.msk.f32.gmra.mxu0 %vm262_vm1, %v7075_v51  ;;  %v5750_v51 = vld [vmem:[%s6300_s8 + $0x158] sm:$0xff] }
 0x253   : > { %v2701_v27 = vadd.f32 %v2619_v23, %v2424_v63  ;;  %5782 = vmatmul.msk.f32.gmra.mxu2 %vm262_vm1, %v5749_v15  ;;  %v5815_v15 = vld [vmem:[%s6300_s8 + $0x159] sm:$0xff] }
 0x254   : > { %5847 = vmatmul.msk.f32.gmra.mxu3 %vm262_vm1, %v5814_v54 }
 0x255   : > { %v2733_v19 = vmax.f32 %v2701_v27, 0.0 }
 0x256   : > { %v2068_v30 = vpop.f32.mrf.mxu2  ;;  %v7545_v20 = vld [vmem:[#allocation2 + $0x60] sm:$0xff] }
 0x257   : > { %2808 = vst.msk [vmem:[#allocation2 + $0x69] sm:$0xff] %vm2758_vm2, %v2733_v19  ;;  %v2148_v23 = vadd.f32 %v2068_v30, %v1870_v8  ;;  %v2345_v7 = vpop.f32.mrf.mxu3  ;;  %5928 = vmatmul.msk.f32.gmra.mxu1 %vm2758_vm2, %v7545_v20  ;;  %v2625_v10 = vpop.f32.mrf.mxu0 }
 0x259   : > { %v2425_v42 = vadd.f32 %v2345_v7, %v2148_v23  ;;  %v5816_v7 = vld [vmem:[%s6300_s8 + $0x169] sm:$0xff] }
 0x25a   : > { %5913 = vmatmul.msk.f32.gmra.mxu0 %vm262_vm1, %v7091_v17  ;;  %v5751_v17 = vld [vmem:[%s6300_s8 + $0x168] sm:$0xff] }
 0x25b   : > { %v2702_v63 = vadd.f32 %v2622_v44, %v2425_v42  ;;  %5783 = vmatmul.msk.f32.gmra.mxu2 %vm262_vm1, %v5750_v51  ;;  %v7563_v44 = vpop.f32.mrf.mxu1 }
 0x25c   : > { %5848 = vmatmul.msk.f32.gmra.mxu3 %vm262_vm1, %v5815_v15 }
 0x25d   : > { %v2734_v36 = vmax.f32 %v2702_v63, 0.0 }
 0x25e   : > { %v2071_v54 = vpop.f32.mrf.mxu2  ;;  %v7558_v27 = vld [vmem:[#allocation2 + $0x68] sm:$0xff] }
 0x25f   : > { %2809 = vst.msk [vmem:[#allocation2 + $0x79] sm:$0xff] %vm2758_vm2, %v2734_v36  ;;  %v2149_v8 = vadd.f32 %v2071_v54, %v1871_v46  ;;  %v2348_v19 = vpop.f32.mrf.mxu3  ;;  %5929 = vmatmul.msk.f32.gmra.mxu1 %vm2758_vm2, %v7558_v27  ;;  %v2628_v30 = vpop.f32.mrf.mxu0  ;;  %v5752_v36 = vld [vmem:[%s6300_s8 + $0x170] sm:$0xff] }
 0x261   : > { %v2426_v23 = vadd.f32 %v2348_v19, %v2149_v8 }
 0x262   : > { %5914 = vmatmul.msk.f32.gmra.mxu0 %vm262_vm1, %v7107_v21  ;;  %v5817_v21 = vld [vmem:[%s6300_s8 + $0x171] sm:$0xff] }
 0x263   : > { %v2703_v29 = vadd.f32 %v2625_v10, %v2426_v23  ;;  %5784 = vmatmul.msk.f32.gmra.mxu2 %vm262_vm1, %v5751_v17  ;;  %v7580_v8 = vpop.f32.mrf.mxu1 }
 0x264   : > { %5849 = vmatmul.msk.f32.gmra.mxu3 %vm262_vm1, %v5816_v7 }
 0x265   : > { %v2735_v51 = vmax.f32 %v2703_v29, 0.0 }
 0x266   : > { %v2074_v42 = vpop.f32.mrf.mxu2  ;;  %v7573_v15 = vld [vmem:[#allocation2 + $0x78] sm:$0xff] }
 0x267   : > { %2810 = vst.msk [vmem:[#allocation2 + $0x81] sm:$0xff] %vm2758_vm2, %v2735_v51  ;;  %v2150_v63 = vadd.f32 %v2074_v42, %v1872_v28  ;;  %v2351_v46 = vpop.f32.mrf.mxu3  ;;  %5930 = vmatmul.msk.f32.gmra.mxu1 %vm2758_vm2, %v7573_v15  ;;  %v2631_v10 = vpop.f32.mrf.mxu0 }
 0x269   : > { %v2427_v54 = vadd.f32 %v2351_v46, %v2150_v63 }
 0x26a   : > { %5915 = vmatmul.msk.f32.gmra.mxu0 %vm262_vm1, %v7123_v16  ;;  %v1874_v16 = vadd.f32 %v7253_v50, %v7129_v35  ;;  %v1875_v35 = vadd.f32 %v7269_v38, %v7151_v4  ;;  %v1876_v38 = vadd.f32 %v7281_v60, %v7173_v49  ;;  %v1877_v49 = vadd.f32 %v7293_v52, %v7185_v40 }
 0x26b   : > { %v2704_v19 = vadd.f32 %v2628_v30, %v2427_v54  ;;  %5785 = vmatmul.msk.f32.gmra.mxu2 %vm262_vm1, %v5752_v36  ;;  %v7597_v37 = vpop.f32.mrf.mxu1  ;;  %v1878_v40 = vadd.f32 %v7316_v57, %v7194_v53  ;;  %v1879_v53 = vadd.f32 %v7340_v39, %v7205_v24  ;;  %v7683_v24 = vld [vmem:[#allocation2 + $0x1a] sm:$0xff] }
 0x26c   : > { %5850 = vmatmul.msk.f32.gmra.mxu3 %vm262_vm1, %v5817_v21 }
 0x26d   : > { %v2736_v5 = vmax.f32 %v2704_v19, 0.0  ;;  %v5755_v19 = vld [vmem:[%s6300_s8 + $0x198] sm:$0xff] }
 0x26e   : > { %v2077_v17 = vpop.f32.mrf.mxu2  ;;  %v7588_v23 = vld [vmem:[#allocation2 + $0x80] sm:$0xff] }
 0x26f   : > { %2811 = vst.msk [vmem:[#allocation2 + $0x91] sm:$0xff] %vm2758_vm2, %v2736_v5  ;;  %v2151_v7 = vadd.f32 %v2077_v17, %v1873_v33  ;;  %v2354_v29 = vpop.f32.mrf.mxu3  ;;  %5931 = vmatmul.msk.f32.gmra.mxu1 %vm2758_vm2, %v7588_v23  ;;  %v2634_v30 = vpop.f32.mrf.mxu0  ;;  %v5885_v33 = vld [vmem:[%s6300_s8 + $0x19a] sm:$0xff] }
 0x270   : > { %v5820_v5 = vld [vmem:[%s6300_s8 + $0x199] sm:$0xff] }
 0x271   : > { %v2428_v28 = vadd.f32 %v2354_v29, %v2151_v7 }
 0x272   : > { %5916 = vmatmul.msk.f32.gmra.mxu0 %vm262_vm1, %v7145_v9 }
 0x273   : > { %v2705_v51 = vadd.f32 %v2631_v10, %v2428_v28  ;;  %5786 = vmatmul.msk.f32.gmra.mxu2 %vm262_vm1, %v7142_v26  ;;  %v7618_v0 = vpop.f32.mrf.mxu1 }
 0x274   : > { %5851 = vmatmul.msk.f32.gmra.mxu3 %vm262_vm1, %v7137_v6 }
 0x275   : > { %v2737_v18 = vmax.f32 %v2705_v51, 0.0 }
 0x276   : > { %v2080_v42 = vpop.f32.mrf.mxu2  ;;  %v7605_v63 = vld [vmem:[#allocation2 + $0x90] sm:$0xff] }
 0x277   : > { %2812 = vst.msk [vmem:[#allocation2 + $0x99] sm:$0xff] %vm2758_vm2, %v2737_v18  ;;  %v2152_v26 = vadd.f32 %v2080_v42, %v1874_v16  ;;  %v2357_v9 = vpop.f32.mrf.mxu3  ;;  %5932 = vmatmul.msk.f32.gmra.mxu1 %vm2758_vm2, %v7605_v63  ;;  %v2637_v46 = vpop.f32.mrf.mxu0  ;;  %v5756_v18 = vld [vmem:[%s6300_s8 + $0x1a0] sm:$0xff] }
 0x278   : > { %v5886_v42 = vld [vmem:[%s6300_s8 + $0x1a2] sm:$0xff] }
 0x279   : > { %v2429_v6 = vadd.f32 %v2357_v9, %v2152_v26  ;;  %v5821_v9 = vld [vmem:[%s6300_s8 + $0x1a1] sm:$0xff] }
 0x27a   : > { %5917 = vmatmul.msk.f32.gmra.mxu0 %vm262_vm1, %v7167_v43 }
 0x27b   : > { %v2706_v10 = vadd.f32 %v2634_v30, %v2429_v6  ;;  %5787 = vmatmul.msk.f32.gmra.mxu2 %vm262_vm1, %v7164_v31  ;;  %v7638_v51 = vpop.f32.mrf.mxu1 }
 0x27c   : > { %5852 = vmatmul.msk.f32.gmra.mxu3 %vm262_vm1, %v7159_v3 }
 0x27d   : > { %v2738_v50 = vmax.f32 %v2706_v10, 0.0 }
 0x27e   : > { %v2083_v36 = vpop.f32.mrf.mxu2  ;;  %v7620_v54 = vld [vmem:[#allocation2 + $0x98] sm:$0xff] }
 0x27f   : > { %2813 = vst.msk [vmem:[#allocation2 + $0xa9] sm:$0xff] %vm2758_vm2, %v2738_v50  ;;  %v2153_v21 = vadd.f32 %v2083_v36, %v1875_v35  ;;  %v2360_v31 = vpop.f32.mrf.mxu3  ;;  %5933 = vmatmul.msk.f32.gmra.mxu1 %vm2758_vm2, %v7620_v54  ;;  %v2640_v43 = vpop.f32.mrf.mxu0 }
 0x281   : > { %v2430_v3 = vadd.f32 %v2360_v31, %v2153_v21  ;;  %v3111_v21 = vld [vmem:[#allocation2 + $0x1] sm:$0xff] }
 0x282   : > { %5918 = vmatmul.msk.f32.gmra.mxu0 %vm262_vm1, %v5885_v33 }
 0x283   : > { %v2707_v4 = vadd.f32 %v2637_v46, %v2430_v3  ;;  %5788 = vmatmul.msk.f32.gmra.mxu2 %vm262_vm1, %v5755_v19  ;;  %v7653_v31 = vpop.f32.mrf.mxu1  ;;  %v3385_v19 = vld [vmem:[#allocation2 + $0x2] sm:$0xff] }
 0x284   : > { %5853 = vmatmul.msk.f32.gmra.mxu3 %vm262_vm1, %v5820_v5 }
 0x285   : > { %v2739_v17 = vmax.f32 %v2707_v4, 0.0 }
 0x286   : > { %v2086_v7 = vpop.f32.mrf.mxu2  ;;  %v7633_v29 = vld [vmem:[#allocation2 + $0xa8] sm:$0xff] }
 0x287   : > { %2814 = vst.msk [vmem:[#allocation2 + $0xb1] sm:$0xff] %vm2758_vm2, %v2739_v17  ;;  %v2154_v30 = vadd.f32 %v2086_v7, %v1876_v38  ;;  %v2363_v28 = vpop.f32.mrf.mxu3  ;;  %5934 = vmatmul.msk.f32.gmra.mxu1 %vm2758_vm2, %v7633_v29  ;;  %v2643_v16 = vpop.f32.mrf.mxu0  ;;  %v3112_v7 = vld [vmem:[#allocation2 + $0x9] sm:$0xff] }
 0x289   : > { %v2431_v26 = vadd.f32 %v2363_v28, %v2154_v30 }
 0x28a   : > { %5919 = vmatmul.msk.f32.gmra.mxu0 %vm262_vm1, %v5886_v42 }
 0x28b   : > { %v2708_v46 = vadd.f32 %v2640_v43, %v2431_v26  ;;  %5789 = vmatmul.msk.f32.gmra.mxu2 %vm262_vm1, %v5756_v18  ;;  %v7666_v28 = vpop.f32.mrf.mxu1 }
 0x28c   : > { %5854 = vmatmul.msk.f32.gmra.mxu3 %vm262_vm1, %v5821_v9 }
 0x28d   : > { %v2740_v60 = vmax.f32 %v2708_v46, 0.0 }
 0x28e   : > { %v2089_v6 = vpop.f32.mrf.mxu2  ;;  %v7648_v10 = vld [vmem:[#allocation2 + $0xb0] sm:$0xff] }
 0x28f   : > { %2815 = vst.msk [vmem:[#allocation2 + $0xc1] sm:$0xff] %vm2758_vm2, %v2740_v60  ;;  %v2155_v35 = vadd.f32 %v2089_v6, %v1877_v49  ;;  %v2366_v50 = vpop.f32.mrf.mxu3  ;;  %5935 = vmatmul.msk.f32.gmra.mxu1 %vm2758_vm2, %v7648_v10  ;;  %v2646_v36 = vpop.f32.mrf.mxu0  ;;  %v7679_v60 = vld [vmem:[#allocation2 + $0x19] sm:$0xff]  ;;  %v1880_v6 = vadd.f32 %v7368_v2, %v7214_v56  ;;  %v7702_v56 = vld [vmem:[#allocation2 + $0x22] sm:$0xff] }
 0x291   : > { %v2432_v43 = vadd.f32 %v2366_v50, %v2155_v35 }
 0x292   : > { %6016 = vmatmul.msk.f32.vlgmr.msrb.gmra.mxu0 %vm2758_vm2, %v7461_v22  ;;  %v3386_v22 = vld [vmem:[#allocation2 + $0xa] sm:$0xff] }
 0x293   : > { %v2709_v33 = vadd.f32 %v2643_v16, %v2432_v43  ;;  %5952 = vmatmul.msk.f32.vlgmr.msrb.gmra.mxu2 %vm2758_vm2, %v3111_v21 }
 0x294   : > { %5984 = vmatmul.msk.f32.vlgmr.msrb.gmra.mxu3 %vm2758_vm2, %v3385_v19 }
 0x295   : > { %v2741_v52 = vmax.f32 %v2709_v33, 0.0  ;;  %v7698_v33 = vld [vmem:[#allocation2 + $0x21] sm:$0xff] }
 0x296   : > { %v2092_v3 = vpop.f32.mrf.mxu2  ;;  %v7661_v5 = vld [vmem:[#allocation2 + $0xc0] sm:$0xff] }
 0x297   : > { %2816 = vst.msk [vmem:[#allocation2 + $0xc9] sm:$0xff] %vm2758_vm2, %v2741_v52  ;;  %v2156_v4 = vadd.f32 %v2092_v3, %v1878_v40  ;;  %v2369_v38 = vpop.f32.mrf.mxu3  ;;  %5936 = vmatmul.msk.f32.gmra.mxu1 %vm2758_vm2, %v7661_v5  ;;  %v2649_v17 = vpop.f32.mrf.mxu0  ;;  %v9010_v52 = vld [vmem:[#allocation4_spill] sm:$0xff] }
 0x298   : > { %v1881_v3 = vadd.f32 %v7400_v48, %v9010_v52  ;;  %v7721_v48 = vld [vmem:[#allocation2 + $0x32] sm:$0xff] }
 0x299   : > { %v2433_v30 = vadd.f32 %v2369_v38, %v2156_v4 }
 0x29a   : > { %6017 = vmatmul.msk.f32.gmra.mxu0 %vm2758_vm2, %v7475_v58 }
 0x29b   : > { %v2710_v16 = vadd.f32 %v2646_v36, %v2433_v30  ;;  %5953 = vmatmul.msk.f32.gmra.mxu2 %vm2758_vm2, %v3112_v7 }
 0x29c   : > { %5985 = vmatmul.msk.f32.gmra.mxu3 %vm2758_vm2, %v3386_v22 }
 0x29d   : > { %v2742_v57 = vmax.f32 %v2710_v16, 0.0  ;;  %v7717_v16 = vld [vmem:[#allocation2 + $0x31] sm:$0xff] }
 0x29e   : > { %v2095_v18 = vpop.f32.mrf.mxu2  ;;  %v7674_v42 = vld [vmem:[#allocation2 + $0xc8] sm:$0xff] }
 0x29f   : > { %2817 = vst.msk [vmem:[#allocation2 + $0xd9] sm:$0xff] %vm2758_vm2, %v2742_v57  ;;  %v2157_v26 = vadd.f32 %v2095_v18, %v1879_v53  ;;  %v2372_v9 = vpop.f32.mrf.mxu3  ;;  %5937 = vmatmul.msk.f32.gmra.mxu1 %vm2758_vm2, %v7674_v42  ;;  %v2652_v46 = vpop.f32.mrf.mxu0  ;;  %v9011_v18 = vld [vmem:[#allocation3_spill] sm:$0xff] }
 0x2a1   : > { %v2434_v49 = vadd.f32 %v2372_v9, %v2157_v26  ;;  %v1882_v26 = vadd.f32 %v7433_v32, %v9011_v18  ;;  %v7740_v32 = vld [vmem:[#allocation2 + $0x3a] sm:$0xff] }
 0x2a2   : > { %6018 = vmatmul.msk.f32.gmra.mxu0 %vm2758_vm2, %v7487_v59 }
 0x2a3   : > { %v2711_v58 = vadd.f32 %v2649_v17, %v2434_v49  ;;  %5954 = vmatmul.msk.f32.gmra.mxu2 %vm2758_vm2, %v7679_v60 }
 0x2a4   : > { %5986 = vmatmul.msk.f32.gmra.mxu3 %vm2758_vm2, %v7683_v24  ;;  %v7689_v39 = vpop.f32.mrf.mxu1 }
 0x2a5   : > { %v2743_v35 = vmax.f32 %v2711_v58, 0.0 }
 0x2a6   : > { %v2098_v50 = vpop.f32.mrf.mxu2  ;;  %v7693_v36 = vld [vmem:[#allocation2 + $0xd8] sm:$0xff] }
 0x2a7   : > { %2818 = vst.msk [vmem:[#allocation2 + $0xe1] sm:$0xff] %vm2758_vm2, %v2743_v35  ;;  %v2158_v21 = vadd.f32 %v2098_v50, %v1880_v6  ;;  %v2375_v43 = vpop.f32.mrf.mxu3  ;;  %5938 = vmatmul.msk.f32.gmra.mxu1 %vm2758_vm2, %v7693_v36  ;;  %v2655_v59 = vpop.f32.mrf.mxu0  ;;  %v7736_v50 = vld [vmem:[#allocation2 + $0x39] sm:$0xff] }
 0x2a9   : > { %v2435_v19 = vadd.f32 %v2375_v43, %v2158_v21 }
 0x2aa   : > { %6019 = vmatmul.msk.f32.gmra.mxu0 %vm2758_vm2, %v7501_v41 }
 0x2ab   : > { %v2712_v40 = vadd.f32 %v2652_v46, %v2435_v19  ;;  %5955 = vmatmul.msk.f32.gmra.mxu2 %vm2758_vm2, %v7698_v33 }
 0x2ac   : > { %5987 = vmatmul.msk.f32.gmra.mxu3 %vm2758_vm2, %v7702_v56  ;;  %v7708_v2 = vpop.f32.mrf.mxu1 }
 0x2ad   : > { %v2744_v4 = vmax.f32 %v2712_v40, 0.0 }
 0x2ae   : > { %v2101_v38 = vpop.f32.mrf.mxu2  ;;  %v7712_v17 = vld [vmem:[#allocation2 + $0xe0] sm:$0xff] }
 0x2af   : > { %2819 = vst.msk [vmem:[#allocation2 + $0xf1] sm:$0xff] %vm2758_vm2, %v2744_v4  ;;  %v2159_v7 = vadd.f32 %v2101_v38, %v1881_v3  ;;  %v2378_v30 = vpop.f32.mrf.mxu3  ;;  %5939 = vmatmul.msk.f32.gmra.mxu1 %vm2758_vm2, %v7712_v17  ;;  %v2658_v41 = vpop.f32.mrf.mxu0 }
 0x2b1   : > { %v2436_v22 = vadd.f32 %v2378_v30, %v2159_v7  ;;  %v7755_v30 = vld [vmem:[#allocation2 + $0x49] sm:$0xff] }
 0x2b2   : > { %6020 = vmatmul.msk.f32.gmra.mxu0 %vm2758_vm2, %v7515_v14 }
 0x2b3   : > { %v2713_v53 = vadd.f32 %v2655_v59, %v2436_v22  ;;  %5956 = vmatmul.msk.f32.gmra.mxu2 %vm2758_vm2, %v7717_v16  ;;  %v9012_v59 = vld [vmem:[#allocation6_spill] sm:$0xff] }
 0x2b4   : > { %5988 = vmatmul.msk.f32.gmra.mxu3 %vm2758_vm2, %v7721_v48  ;;  %v7727_v57 = vpop.f32.mrf.mxu1  ;;  %v1883_v19 = vadd.f32 %v7458_v62, %v9012_v59  ;;  %v7759_v62 = vld [vmem:[#allocation2 + $0x4a] sm:$0xff] }
 0x2b5   : > { %v2745_v9 = vmax.f32 %v2713_v53, 0.0  ;;  %v9013_v53 = vld [vmem:[#allocation5_spill] sm:$0xff] }
 0x2b6   : > { %v2104_v46 = vpop.f32.mrf.mxu2  ;;  %v7731_v49 = vld [vmem:[#allocation2 + $0xf0] sm:$0xff]  ;;  %v1884_v18 = vadd.f32 %v7473_v61, %v9013_v53  ;;  %v7793_v53 = vld [vmem:[#allocation2 + $0x61] sm:$0xff] }
 0x2b7   : > { %2820 = vst.msk [vmem:[#allocation2 + $0xf9] sm:$0xff] %vm2758_vm2, %v2745_v9  ;;  %v2160_v58 = vadd.f32 %v2104_v46, %v1882_v26  ;;  %v2381_v6 = vpop.f32.mrf.mxu3  ;;  %5940 = vmatmul.msk.f32.gmra.mxu1 %vm2758_vm2, %v7731_v49  ;;  %v2661_v14 = vpop.f32.mrf.mxu0  ;;  %v7778_v61 = vld [vmem:[#allocation2 + $0x52] sm:$0xff] }
 0x2b9   : > { %v2437_v35 = vadd.f32 %v2381_v6, %v2160_v58 }
 0x2ba   : > { %6021 = vmatmul.msk.f32.gmra.mxu0 %vm2758_vm2, %v7529_v1 }
 0x2bb   : > { %v2714_v21 = vadd.f32 %v2658_v41, %v2437_v35  ;;  %5957 = vmatmul.msk.f32.gmra.mxu2 %vm2758_vm2, %v7736_v50  ;;  %v7774_v35 = vld [vmem:[#allocation2 + $0x51] sm:$0xff] }
 0x2bc   : > { %5989 = vmatmul.msk.f32.gmra.mxu3 %vm2758_vm2, %v7740_v32  ;;  %v7746_v43 = vpop.f32.mrf.mxu1 }
 0x2bd   : > { %v2746_v40 = vmax.f32 %v2714_v21, 0.0 }
 0x2be   : > { %v2107_v52 = vpop.f32.mrf.mxu2  ;;  %v7750_v3 = vld [vmem:[#allocation2 + $0xf8] sm:$0xff] }
 0x2bf   : > { %2821 = vst.msk [vmem:[#allocation2 + $0x109] sm:$0xff] %vm2758_vm2, %v2746_v40  ;;  %v2161_v4 = vadd.f32 %v2107_v52, %v1883_v19  ;;  %v2384_v38 = vpop.f32.mrf.mxu3  ;;  %5941 = vmatmul.msk.f32.gmra.mxu1 %vm2758_vm2, %v7750_v3  ;;  %v2664_v1 = vpop.f32.mrf.mxu0  ;;  %v9014_v19 = vld [vmem:[#allocation8_spill] sm:$0xff] }
 0x2c0   : > { %v1885_v40 = vadd.f32 %v7493_v55, %v9014_v19  ;;  %v7797_v55 = vld [vmem:[#allocation2 + $0x62] sm:$0xff] }
 0x2c1   : > { %v2438_v7 = vadd.f32 %v2384_v38, %v2161_v4  ;;  %9015 = vst [vmem:[#allocation40_spill] sm:$0xff] %v7797_v55 }
 0x2c2   : > { %6022 = vmatmul.msk.f32.gmra.mxu0 %vm2758_vm2, %v7545_v20 }
 0x2c3   : > { %v2715_v41 = vadd.f32 %v2661_v14, %v2438_v7  ;;  %5958 = vmatmul.msk.f32.gmra.mxu2 %vm2758_vm2, %v7755_v30 }
 0x2c4   : > { %5990 = vmatmul.msk.f32.gmra.mxu3 %vm2758_vm2, %v7759_v62  ;;  %v7765_v22 = vpop.f32.mrf.mxu1 }
 0x2c5   : > { %v2747_v26 = vmax.f32 %v2715_v41, 0.0 }
 0x2c6   : > { %v2110_v9 = vpop.f32.mrf.mxu2  ;;  %v7769_v46 = vld [vmem:[#allocation2 + $0x108] sm:$0xff] }
 0x2c7   : > { %2822 = vst.msk [vmem:[#allocation2 + $0x111] sm:$0xff] %vm2758_vm2, %v2747_v26  ;;  %v2162_v58 = vadd.f32 %v2110_v9, %v1884_v18  ;;  %v2387_v6 = vpop.f32.mrf.mxu3  ;;  %5942 = vmatmul.msk.f32.gmra.mxu1 %vm2758_vm2, %v7769_v46  ;;  %v2667_v20 = vpop.f32.mrf.mxu0  ;;  %v9016_v9 = vld [vmem:[#allocation7_spill] sm:$0xff] }
 0x2c9   : > { %v2439_v14 = vadd.f32 %v2387_v6, %v2162_v58  ;;  %v1886_v58 = vadd.f32 %v7509_v11, %v9016_v9  ;;  %v7816_v11 = vld [vmem:[#allocation2 + $0x6a] sm:$0xff] }
 0x2ca   : > { %6023 = vmatmul.msk.f32.gmra.mxu0 %vm2758_vm2, %v7558_v27  ;;  %9017 = vst [vmem:[#allocation13_spill] sm:$0xff] %v7816_v11 }
 0x2cb   : > { %v2716_v21 = vadd.f32 %v2664_v1, %v2439_v14  ;;  %5959 = vmatmul.msk.f32.gmra.mxu2 %vm2758_vm2, %v7774_v35 }
 0x2cc   : > { %5991 = vmatmul.msk.f32.gmra.mxu3 %vm2758_vm2, %v7778_v61  ;;  %v7784_v59 = vpop.f32.mrf.mxu1 }
 0x2cd   : > { %v2748_v52 = vmax.f32 %v2716_v21, 0.0 }
 0x2ce   : > { %v2113_v4 = vpop.f32.mrf.mxu2  ;;  %v7788_v38 = vld [vmem:[#allocation2 + $0x110] sm:$0xff] }
 0x2cf   : > { %2823 = vst.msk [vmem:[#allocation2 + $0x121] sm:$0xff] %vm2758_vm2, %v2748_v52  ;;  %v2163_v1 = vadd.f32 %v2113_v4, %v1885_v40  ;;  %v2390_v7 = vpop.f32.mrf.mxu3  ;;  %5943 = vmatmul.msk.f32.gmra.mxu1 %vm2758_vm2, %v7788_v38  ;;  %v2670_v27 = vpop.f32.mrf.mxu0  ;;  %v7812_v52 = vld [vmem:[#allocation2 + $0x69] sm:$0xff] }
 0x2d1   : > { %v2440_v41 = vadd.f32 %v2390_v7, %v2163_v1  ;;  %v9018_v7 = vld [vmem:[#allocation10_spill] sm:$0xff] }
 0x2d2   : > { %6024 = vmatmul.msk.f32.gmra.mxu0 %vm2758_vm2, %v7573_v15 }
 0x2d3   : > { %v2717_v18 = vadd.f32 %v2667_v20, %v2440_v41  ;;  %5960 = vmatmul.msk.f32.gmra.mxu2 %vm2758_vm2, %v7793_v53  ;;  %v1887_v41 = vadd.f32 %v7526_v47, %v9018_v7  ;;  %v7835_v47 = vld [vmem:[#allocation2 + $0x7a] sm:$0xff] }
 0x2d4   : > { %5992 = vmatmul.msk.f32.gmra.mxu3 %vm2758_vm2, %v7797_v55  ;;  %v7803_v26 = vpop.f32.mrf.mxu1  ;;  %9019 = vst [vmem:[#allocation11_spill] sm:$0xff] %v7835_v47  ;;  %v7997_v55 = vld [vmem:[#allocation2 + $0xd9] sm:$0xff] }
 0x2d5   : > { %v2749_v6 = vmax.f32 %v2717_v18, 0.0 }
 0x2d6   : > { %v2116_v14 = vpop.f32.mrf.mxu2  ;;  %v7807_v21 = vld [vmem:[#allocation2 + $0x120] sm:$0xff] }
 0x2d7   : > { %2824 = vst.msk [vmem:[#allocation2 + $0x129] sm:$0xff] %vm2758_vm2, %v2749_v6  ;;  %v2164_v20 = vadd.f32 %v2116_v14, %v1886_v58  ;;  %v2393_v19 = vpop.f32.mrf.mxu3  ;;  %5944 = vmatmul.msk.f32.gmra.mxu1 %vm2758_vm2, %v7807_v21  ;;  %v2673_v15 = vpop.f32.mrf.mxu0 }
 0x2d9   : > { %v2441_v40 = vadd.f32 %v2393_v19, %v2164_v20  ;;  %v7831_v20 = vld [vmem:[#allocation2 + $0x79] sm:$0xff] }
 0x2da   : > { %6025 = vmatmul.msk.f32.gmra.mxu0 %vm2758_vm2, %v7588_v23 }
 0x2db   : > { %v2718_v4 = vadd.f32 %v2670_v27, %v2441_v40  ;;  %5961 = vmatmul.msk.f32.gmra.mxu2 %vm2758_vm2, %v7812_v52 }
 0x2dc   : > { %5993 = vmatmul.msk.f32.gmra.mxu3 %vm2758_vm2, %v7816_v11  ;;  %v7822_v1 = vpop.f32.mrf.mxu1  ;;  %v7962_v11 = vld [vmem:[#allocation2 + $0xc1] sm:$0xff] }
 0x2dd   : > { %v2750_v18 = vmax.f32 %v2718_v4, 0.0  ;;  %v9020_v4 = vld [vmem:[#allocation9_spill] sm:$0xff] }
 0x2de   : > { %v2119_v9 = vpop.f32.mrf.mxu2  ;;  %v7826_v58 = vld [vmem:[#allocation2 + $0x128] sm:$0xff]  ;;  %v1888_v7 = vadd.f32 %v7543_v45, %v9020_v4  ;;  %v1889_v4 = vadd.f32 %v7563_v44, %v7323_v25 }
 0x2df   : > { %2825 = vst.msk [vmem:[#allocation2 + $0x139] sm:$0xff] %vm2758_vm2, %v2750_v18  ;;  %v2165_v27 = vadd.f32 %v2119_v9, %v1887_v41  ;;  %v2396_v6 = vpop.f32.mrf.mxu3  ;;  %5945 = vmatmul.msk.f32.gmra.mxu1 %vm2758_vm2, %v7826_v58  ;;  %v2676_v23 = vpop.f32.mrf.mxu0  ;;  %v7854_v45 = vld [vmem:[#allocation2 + $0x82] sm:$0xff] }
 0x2e0   : > { %9021 = vst [vmem:[#allocation15_spill] sm:$0xff] %v7854_v45 }
 0x2e1   : > { %v2442_v14 = vadd.f32 %v2396_v6, %v2165_v27 }
 0x2e2   : > { %6026 = vmatmul.msk.f32.gmra.mxu0 %vm2758_vm2, %v7605_v63 }
 0x2e3   : > { %v2719_v19 = vadd.f32 %v2673_v15, %v2442_v14  ;;  %5962 = vmatmul.msk.f32.gmra.mxu2 %vm2758_vm2, %v7831_v20  ;;  %v7850_v14 = vld [vmem:[#allocation2 + $0x81] sm:$0xff] }
 0x2e4   : > { %5994 = vmatmul.msk.f32.gmra.mxu3 %vm2758_vm2, %v7835_v47  ;;  %v7841_v40 = vpop.f32.mrf.mxu1 }
 0x2e5   : > { %v2751_v41 = vmax.f32 %v2719_v19, 0.0 }
 0x2e6   : > { %v2122_v18 = vpop.f32.mrf.mxu2  ;;  %v7845_v9 = vld [vmem:[#allocation2 + $0x138] sm:$0xff] }
 0x2e7   : > { %2826 = vst.msk [vmem:[#allocation2 + $0x141] sm:$0xff] %vm2758_vm2, %v2751_v41  ;;  %v2166_v15 = vadd.f32 %v2122_v18, %v1888_v7  ;;  %v2399_v27 = vpop.f32.mrf.mxu3  ;;  %5946 = vmatmul.msk.f32.gmra.mxu1 %vm2758_vm2, %v7845_v9  ;;  %v2679_v63 = vpop.f32.mrf.mxu0 }
 0x2e9   : > { %v2443_v6 = vadd.f32 %v2399_v27, %v2166_v15  ;;  %v4514_v27 = vld [vmem:[%s8871_s3 + $0x30] sm:$0xff] }
 0x2ea   : > { %6027 = vmatmul.msk.f32.gmra.mxu0 %vm2758_vm2, %v7620_v54  ;;  %v4239_v54 = vld [vmem:[%s8871_s3 + $0x28] sm:$0xff]  ;;  %4626 = vmatpush.msra.mxu3 %v4514_v27 }
 0x2eb   : > { %v2720_v47 = vadd.f32 %v2676_v23, %v2443_v6  ;;  %5963 = vmatmul.msk.f32.gmra.mxu2 %vm2758_vm2, %v7850_v14 }
 0x2ec   : > { %5995 = vmatmul.msk.f32.gmra.mxu3 %vm2758_vm2, %v7854_v45  ;;  %v7860_v19 = vpop.f32.mrf.mxu1  ;;  %4351 = vmatpush.msra.mxu2 %v4239_v54  ;;  %v7919_v45 = vld [vmem:[#allocation2 + $0xa9] sm:$0xff] }
 0x2ed   : > { %v2752_v7 = vmax.f32 %v2720_v47, 0.0  ;;  %v7875_v47 = vld [vmem:[#allocation2 + $0x91] sm:$0xff] }
 0x2ee   : > { %v2125_v41 = vpop.f32.mrf.mxu2  ;;  %v7864_v18 = vld [vmem:[#allocation2 + $0x140] sm:$0xff] }
 0x2ef   : > { %2827 = vst.msk [vmem:[#allocation2 + $0x151] sm:$0xff] %vm2758_vm2, %v2752_v7  ;;  %v2167_v23 = vadd.f32 %v2125_v41, %v1889_v4  ;;  %v2402_v15 = vpop.f32.mrf.mxu3  ;;  %5947 = vmatmul.msk.f32.gmra.mxu1 %vm2758_vm2, %v7864_v18  ;;  %v2682_v25 = vpop.f32.mrf.mxu0  ;;  %v7879_v4 = vld [vmem:[#allocation2 + $0x92] sm:$0xff]  ;;  %v1890_v41 = vadd.f32 %v7580_v8, %v7338_v13  ;;  %v5062_v13 = vld [vmem:[%s8871_s3 + $0x40] sm:$0xff] }
 0x2f0   : > { %9022 = vst [vmem:[#allocation12_spill] sm:$0xff] %v7879_v4  ;;  %v7900_v8 = vld [vmem:[#allocation2 + $0x99] sm:$0xff]  ;;  %5174 = vmatpush.msra.mxu1 %v5062_v13 }
 0x2f1   : > { %v2444_v44 = vadd.f32 %v2402_v15, %v2167_v23 }
 0x2f2   : > { %6028 = vmatmul.msk.f32.gmra.mxu0 %vm2758_vm2, %v7633_v29  ;;  %v4788_v29 = vld [vmem:[%s8871_s3 + $0x38] sm:$0xff] }
 0x2f3   : > { %v2721_v6 = vadd.f32 %v2679_v63, %v2444_v44  ;;  %5964 = vmatmul.msk.f32.gmra.mxu2 %vm2758_vm2, %v7875_v47  ;;  %4900 = vmatpush.msra.mxu0 %v4788_v29 }
 0x2f4   : > { %5996 = vmatmul.msk.f32.gmra.mxu3 %vm2758_vm2, %v7879_v4  ;;  %v7885_v7 = vpop.f32.mrf.mxu1 }
 0x2f5   : > { %v2753_v23 = vmax.f32 %v2721_v6, 0.0 }
 0x2f6   : > { %v2128_v15 = vpop.f32.mrf.mxu2  ;;  %v7889_v54 = vld [vmem:[#allocation2 + $0x150] sm:$0xff] }
 0x2f7   : > { %2828 = vst.msk [vmem:[#allocation2 + $0x159] sm:$0xff] %vm2758_vm2, %v2753_v23  ;;  %v2168_v63 = vadd.f32 %v2128_v15, %v1890_v41  ;;  %v2405_v27 = vpop.f32.mrf.mxu3  ;;  %5948 = vmatmul.msk.f32.gmra.mxu1 %vm2758_vm2, %v7889_v54  ;;  %v2685_v44 = vpop.f32.mrf.mxu0  ;;  %v7904_v41 = vld [vmem:[#allocation2 + $0x9a] sm:$0xff]  ;;  %v1891_v15 = vadd.f32 %v7597_v37, %v7359_v34  ;;  %v7923_v34 = vld [vmem:[#allocation2 + $0xaa] sm:$0xff] }
 0x2f8   : > { %9023 = vst [vmem:[#allocation17_spill] sm:$0xff] %v7904_v41 }
 0x2f9   : > { %v2445_v4 = vadd.f32 %v2405_v27, %v2168_v63  ;;  %9024 = vst [vmem:[#allocation14_spill] sm:$0xff] %v7923_v34 }
 0x2fa   : > { %6029 = vmatmul.msk.f32.gmra.mxu0 %vm2758_vm2, %v7648_v10 }
 0x2fb   : > { %v2722_v6 = vadd.f32 %v2682_v25, %v2445_v4  ;;  %5965 = vmatmul.msk.f32.gmra.mxu2 %vm2758_vm2, %v7900_v8 }
 0x2fc   : > { %5997 = vmatmul.msk.f32.gmra.mxu3 %vm2758_vm2, %v7904_v41  ;;  %v7910_v23 = vpop.f32.mrf.mxu1 }
 0x2fd   : > { %v2754_v63 = vmax.f32 %v2722_v6, 0.0  ;;  %v1892_v6 = vadd.f32 %v7618_v0, %v7386_v12  ;;  %v7942_v12 = vld [vmem:[#allocation2 + $0xb2] sm:$0xff] }
 0x2fe   : > { %v2131_v27 = vpop.f32.mrf.mxu2  ;;  %v7914_v29 = vld [vmem:[#allocation2 + $0x158] sm:$0xff]  ;;  %9025 = vst [vmem:[#allocation19_spill] sm:$0xff] %v7942_v12 }
 0x2ff   : > { %2829 = vst.msk [vmem:[#allocation2 + $0x169] sm:$0xff] %vm2758_vm2, %v2754_v63  ;;  %v2169_v25 = vadd.f32 %v2131_v27, %v1891_v15  ;;  %v2408_v4 = vpop.f32.mrf.mxu3  ;;  %5949 = vmatmul.msk.f32.gmra.mxu1 %vm2758_vm2, %v7914_v29  ;;  %v2688_v10 = vpop.f32.mrf.mxu0 }
 0x301   : > { %v2446_v13 = vadd.f32 %v2408_v4, %v2169_v25 }
 0x302   : > { %6030 = vmatmul.msk.f32.gmra.mxu0 %vm2758_vm2, %v7661_v5 }
 0x303   : > { %v2723_v41 = vadd.f32 %v2685_v44, %v2446_v13  ;;  %5966 = vmatmul.msk.f32.gmra.mxu2 %vm2758_vm2, %v7919_v45  ;;  %v7938_v13 = vld [vmem:[#allocation2 + $0xb1] sm:$0xff] }
 0x304   : > { %5998 = vmatmul.msk.f32.gmra.mxu3 %vm2758_vm2, %v7923_v34  ;;  %v7929_v37 = vpop.f32.mrf.mxu1 }
 0x305   : > { %v2755_v15 = vmax.f32 %v2723_v41, 0.0  ;;  %v9026_v41 = vld [vmem:[#allocation38_spill] sm:$0xff] }
 0x306   : > { %v2134_v63 = vpop.f32.mrf.mxu2  ;;  %v7933_v27 = vld [vmem:[#allocation2 + $0x168] sm:$0xff] }
 0x307   : > { %2830 = vst.msk [vmem:[#allocation2 + $0x171] sm:$0xff] %vm2758_vm2, %v2755_v15  ;;  %v2170_v44 = vadd.f32 %v2134_v63, %v1892_v6  ;;  %v2411_v25 = vpop.f32.mrf.mxu3  ;;  %5950 = vmatmul.msk.f32.gmra.mxu1 %vm2758_vm2, %v7933_v27  ;;  %v2691_v5 = vpop.f32.mrf.mxu0  ;;  %v1893_v6 = vadd.f32 %v7638_v51, %v9026_v41 }
 0x309   : > { %v2447_v4 = vadd.f32 %v2411_v25, %v2170_v44 }
 0x30a   : > { %6031 = vmatmul.msk.f32.gmra.mxu0 %vm2758_vm2, %v7674_v42 }
 0x30b   : > { %v2724_v34 = vadd.f32 %v2688_v10, %v2447_v4  ;;  %5967 = vmatmul.msk.f32.gmra.mxu2 %vm2758_vm2, %v7938_v13  ;;  %v7960_v4 = vld [vmem:[%s8872_s4] ss:$0 sm:$0xff] }
 0x30c   : > { %5999 = vmatmul.msk.f32.gmra.mxu3 %vm2758_vm2, %v7942_v12  ;;  %v7948_v0 = vpop.f32.mrf.mxu1 }
 0x30d   : > { %v2756_v15 = vmax.f32 %v2724_v34, 0.0  ;;  %v7966_v34 = vld [vmem:[#allocation2 + $0xc2] sm:$0xff] }
 0x30e   : > { %v2137_v63 = vpop.f32.mrf.mxu2  ;;  %v7952_v44 = vld [vmem:[#allocation2 + $0x170] sm:$0xff]  ;;  %9027 = vst [vmem:[#allocation16_spill] sm:$0xff] %v7966_v34 }
 0x30f   : > { %2831 = vst.msk [vmem:[#allocation2 + $0x181] sm:$0xff] %vm2758_vm2, %v2756_v15  ;;  %v2171_v10 = vadd.f32 %v2137_v63, %v1893_v6  ;;  %v2414_v25 = vpop.f32.mrf.mxu3  ;;  %5951 = vmatmul.msk.f32.gmra.mxu1 %vm2758_vm2, %v7952_v44  ;;  %v3805_v42 = vpop.f32.mrf.mxu0  ;;  %v3079_v6 = vadd.f32 %v7960_v4, %v7653_v31 }
 0x311   : > { %v2448_v12 = vadd.f32 %v2414_v25, %v2171_v10 }
 0x312   : > { %6032 = vmatmul.msk.f32.gmra.mxu0 %vm2758_vm2, %v7693_v36  ;;  %v7979_v36 = vld [vmem:[#allocation2 + $0xc9] sm:$0xff] }
 0x313   : > { %v2725_v51 = vadd.f32 %v2691_v5, %v2448_v12  ;;  %5968 = vmatmul.msk.f32.gmra.mxu2 %vm2758_vm2, %v7962_v11 }
 0x314   : > { %6000 = vmatmul.msk.f32.gmra.mxu3 %vm2758_vm2, %v7966_v34  ;;  %v7972_v41 = vpop.f32.mrf.mxu1  ;;  %v7983_v34 = vld [vmem:[#allocation2 + $0xca] sm:$0xff] }
 0x315   : > { %v2757_v15 = vmax.f32 %v2725_v51, 0.0  ;;  %9028 = vst [vmem:[#allocation21_spill] sm:$0xff] %v7983_v34 }
 0x316   : > { %v3257_v63 = vpop.f32.mrf.mxu2 }
 0x317   : > { %2832 = vst.msk [vmem:[#allocation2 + $0x189] sm:$0xff] %vm2758_vm2, %v2757_v15  ;;  %v3353_v5 = vadd.f32 %v3257_v63, %v3079_v6  ;;  %v3531_v12 = vpop.f32.mrf.mxu3  ;;  %6048 = vmatmul.msk.f32.vlgmr.msrb.gmra.mxu1 %vm2758_vm2, %v7679_v60  ;;  %v3808_v10 = vpop.f32.mrf.mxu0  ;;  %v3080_v60 = vadd.f32 %v7960_v4, %v7666_v28 }
 0x319   : > { %v3627_v25 = vadd.f32 %v3531_v12, %v3353_v5 }
 0x31a   : > { %6033 = vmatmul.msk.f32.gmra.mxu0 %vm2758_vm2, %v7712_v17  ;;  %v8001_v17 = vld [vmem:[#allocation2 + $0xda] sm:$0xff] }
 0x31b   : > { %5969 = vmatmul.msk.f32.gmra.mxu2 %vm2758_vm2, %v7979_v36  ;;  %v7987_v31 = vadd.f32 %v3805_v42, %v3627_v25  ;;  %9030 = vst [vmem:[#allocation23_spill] sm:$0xff] %v8001_v17 }
 0x31c   : > { %6001 = vmatmul.msk.f32.gmra.mxu3 %vm2758_vm2, %v7983_v34  ;;  %v7991_v51 = vpop.f32.mrf.mxu1  ;;  %v8233_v34 = vld [vmem:[#allocation2 + $0x171] sm:$0xff] }
 0x31d   : > { %9029 = vst [vmem:[#allocation18_spill] sm:$0xff] %v7987_v31  ;;  %v8015_v31 = vld [vmem:[#allocation2 + $0xe1] sm:$0xff] }
 0x31e   : > { %v3260_v6 = vpop.f32.mrf.mxu2 }
 0x31f   : > { %v3354_v15 = vadd.f32 %v3260_v6, %v3080_v60  ;;  %v3534_v63 = vpop.f32.mrf.mxu3  ;;  %6049 = vmatmul.msk.f32.gmra.mxu1 %vm2758_vm2, %v7698_v33  ;;  %v3811_v5 = vpop.f32.mrf.mxu0  ;;  %v3081_v33 = vadd.f32 %v7960_v4, %v7689_v39 }
 0x321   : > { %v3628_v12 = vadd.f32 %v3534_v63, %v3354_v15 }
 0x322   : > { %6034 = vmatmul.msk.f32.gmra.mxu0 %vm2758_vm2, %v7731_v49  ;;  %v8019_v49 = vld [vmem:[#allocation2 + $0xe2] sm:$0xff] }
 0x323   : > { %5970 = vmatmul.msk.f32.gmra.mxu2 %vm2758_vm2, %v7997_v55  ;;  %v8005_v42 = vadd.f32 %v3808_v10, %v3628_v12  ;;  %9032 = vst [vmem:[#allocation25_spill] sm:$0xff] %v8019_v49  ;;  %v3082_v12 = vadd.f32 %v7960_v4, %v7708_v2 }
 0x324   : > { %6002 = vmatmul.msk.f32.gmra.mxu3 %vm2758_vm2, %v8001_v17  ;;  %v8009_v28 = vpop.f32.mrf.mxu1  ;;  %v8033_v17 = vld [vmem:[#allocation2 + $0xf1] sm:$0xff] }
 0x325   : > { %9031 = vst [vmem:[#allocation20_spill] sm:$0xff] %v8005_v42 }
 0x326   : > { %v3263_v25 = vpop.f32.mrf.mxu2 }
 0x327   : > { %v3355_v60 = vadd.f32 %v3263_v25, %v3081_v33  ;;  %v3537_v6 = vpop.f32.mrf.mxu3  ;;  %6050 = vmatmul.msk.f32.gmra.mxu1 %vm2758_vm2, %v7717_v16  ;;  %v3814_v15 = vpop.f32.mrf.mxu0 }
 0x329   : > { %v3629_v63 = vadd.f32 %v3537_v6, %v3355_v60 }
 0x32a   : > { %6035 = vmatmul.msk.f32.gmra.mxu0 %vm2758_vm2, %v7750_v3  ;;  %v8037_v3 = vld [vmem:[#allocation2 + $0xf2] sm:$0xff] }
 0x32b   : > { %5971 = vmatmul.msk.f32.gmra.mxu2 %vm2758_vm2, %v8015_v31  ;;  %v8023_v10 = vadd.f32 %v3811_v5, %v3629_v63  ;;  %9034 = vst [vmem:[#allocation27_spill] sm:$0xff] %v8037_v3  ;;  %v3083_v63 = vadd.f32 %v7960_v4, %v7727_v57 }
 0x32c   : > { %6003 = vmatmul.msk.f32.gmra.mxu3 %vm2758_vm2, %v8019_v49  ;;  %v8027_v39 = vpop.f32.mrf.mxu1  ;;  %v8051_v49 = vld [vmem:[#allocation2 + $0xf9] sm:$0xff] }
 0x32d   : > { %9033 = vst [vmem:[#allocation22_spill] sm:$0xff] %v8023_v10 }
 0x32e   : > { %v3266_v33 = vpop.f32.mrf.mxu2 }
 0x32f   : > { %v3356_v25 = vadd.f32 %v3266_v33, %v3082_v12  ;;  %v3540_v60 = vpop.f32.mrf.mxu3  ;;  %6051 = vmatmul.msk.f32.gmra.mxu1 %vm2758_vm2, %v7736_v50  ;;  %v3817_v6 = vpop.f32.mrf.mxu0 }
 0x331   : > { %v3630_v42 = vadd.f32 %v3540_v60, %v3356_v25 }
 0x332   : > { %6036 = vmatmul.msk.f32.gmra.mxu0 %vm2758_vm2, %v7769_v46  ;;  %v8055_v46 = vld [vmem:[#allocation2 + $0xfa] sm:$0xff] }
 0x333   : > { %5972 = vmatmul.msk.f32.gmra.mxu2 %vm2758_vm2, %v8033_v17  ;;  %v8041_v5 = vadd.f32 %v3814_v15, %v3630_v42  ;;  %9036 = vst [vmem:[#allocation29_spill] sm:$0xff] %v8055_v46  ;;  %v3084_v15 = vadd.f32 %v7960_v4, %v7746_v43 }
 0x334   : > { %6004 = vmatmul.msk.f32.gmra.mxu3 %vm2758_vm2, %v8037_v3  ;;  %v8045_v2 = vpop.f32.mrf.mxu1  ;;  %v8069_v3 = vld [vmem:[#allocation2 + $0x109] sm:$0xff] }
 0x335   : > { %9035 = vst [vmem:[#allocation24_spill] sm:$0xff] %v8041_v5 }
 0x336   : > { %v3269_v12 = vpop.f32.mrf.mxu2 }
 0x337   : > { %v3357_v33 = vadd.f32 %v3269_v12, %v3083_v63  ;;  %v3543_v25 = vpop.f32.mrf.mxu3  ;;  %6052 = vmatmul.msk.f32.gmra.mxu1 %vm2758_vm2, %v7755_v30  ;;  %v3820_v60 = vpop.f32.mrf.mxu0 }
 0x339   : > { %v3631_v10 = vadd.f32 %v3543_v25, %v3357_v33 }
 0x33a   : > { %6037 = vmatmul.msk.f32.gmra.mxu0 %vm2758_vm2, %v7788_v38  ;;  %v8073_v38 = vld [vmem:[#allocation2 + $0x10a] sm:$0xff] }
 0x33b   : > { %5973 = vmatmul.msk.f32.gmra.mxu2 %vm2758_vm2, %v8051_v49  ;;  %v8059_v42 = vadd.f32 %v3817_v6, %v3631_v10  ;;  %9038 = vst [vmem:[#allocation31_spill] sm:$0xff] %v8073_v38  ;;  %v3085_v6 = vadd.f32 %v7960_v4, %v7765_v22 }
 0x33c   : > { %6005 = vmatmul.msk.f32.gmra.mxu3 %vm2758_vm2, %v8055_v46  ;;  %v8063_v57 = vpop.f32.mrf.mxu1  ;;  %v8087_v46 = vld [vmem:[#allocation2 + $0x111] sm:$0xff] }
 0x33d   : > { %9037 = vst [vmem:[#allocation26_spill] sm:$0xff] %v8059_v42 }
 0x33e   : > { %v3272_v63 = vpop.f32.mrf.mxu2 }
 0x33f   : > { %v3358_v12 = vadd.f32 %v3272_v63, %v3084_v15  ;;  %v3546_v33 = vpop.f32.mrf.mxu3  ;;  %6053 = vmatmul.msk.f32.gmra.mxu1 %vm2758_vm2, %v7774_v35  ;;  %v3823_v25 = vpop.f32.mrf.mxu0 }
 0x341   : > { %v3632_v5 = vadd.f32 %v3546_v33, %v3358_v12 }
 0x342   : > { %6038 = vmatmul.msk.f32.gmra.mxu0 %vm2758_vm2, %v7807_v21  ;;  %v8091_v21 = vld [vmem:[#allocation2 + $0x112] sm:$0xff] }
 0x343   : > { %5974 = vmatmul.msk.f32.gmra.mxu2 %vm2758_vm2, %v8069_v3  ;;  %v8077_v10 = vadd.f32 %v3820_v60, %v3632_v5  ;;  %9040 = vst [vmem:[#allocation33_spill] sm:$0xff] %v8091_v21  ;;  %v3086_v60 = vadd.f32 %v7960_v4, %v7784_v59 }
 0x344   : > { %6006 = vmatmul.msk.f32.gmra.mxu3 %vm2758_vm2, %v8073_v38  ;;  %v8081_v43 = vpop.f32.mrf.mxu1  ;;  %v8105_v38 = vld [vmem:[#allocation2 + $0x121] sm:$0xff] }
 0x345   : > { %9039 = vst [vmem:[#allocation28_spill] sm:$0xff] %v8077_v10 }
 0x346   : > { %v3275_v15 = vpop.f32.mrf.mxu2 }
 0x347   : > { %v3359_v63 = vadd.f32 %v3275_v15, %v3085_v6  ;;  %v3549_v12 = vpop.f32.mrf.mxu3  ;;  %6054 = vmatmul.msk.f32.gmra.mxu1 %vm2758_vm2, %v7793_v53  ;;  %v3826_v33 = vpop.f32.mrf.mxu0 }
 0x349   : > { %v3633_v42 = vadd.f32 %v3549_v12, %v3359_v63 }
 0x34a   : > { %6039 = vmatmul.msk.f32.gmra.mxu0 %vm2758_vm2, %v7826_v58  ;;  %v8109_v58 = vld [vmem:[#allocation2 + $0x122] sm:$0xff] }
 0x34b   : > { %5975 = vmatmul.msk.f32.gmra.mxu2 %vm2758_vm2, %v8087_v46  ;;  %v8095_v5 = vadd.f32 %v3823_v25, %v3633_v42  ;;  %9042 = vst [vmem:[#allocation35_spill] sm:$0xff] %v8109_v58  ;;  %v3087_v25 = vadd.f32 %v7960_v4, %v7803_v26 }
 0x34c   : > { %6007 = vmatmul.msk.f32.gmra.mxu3 %vm2758_vm2, %v8091_v21  ;;  %v8099_v22 = vpop.f32.mrf.mxu1  ;;  %v8123_v21 = vld [vmem:[#allocation2 + $0x129] sm:$0xff] }
 0x34d   : > { %9041 = vst [vmem:[#allocation30_spill] sm:$0xff] %v8095_v5 }
 0x34e   : > { %v3278_v6 = vpop.f32.mrf.mxu2 }
 0x34f   : > { %v3360_v15 = vadd.f32 %v3278_v6, %v3086_v60  ;;  %v3552_v63 = vpop.f32.mrf.mxu3  ;;  %6055 = vmatmul.msk.f32.gmra.mxu1 %vm2758_vm2, %v7812_v52  ;;  %v3829_v12 = vpop.f32.mrf.mxu0 }
 0x351   : > { %v3634_v10 = vadd.f32 %v3552_v63, %v3360_v15 }
 0x352   : > { %6040 = vmatmul.msk.f32.gmra.mxu0 %vm2758_vm2, %v7845_v9  ;;  %v8127_v9 = vld [vmem:[#allocation2 + $0x12a] sm:$0xff] }
 0x353   : > { %5976 = vmatmul.msk.f32.gmra.mxu2 %vm2758_vm2, %v8105_v38  ;;  %v8113_v42 = vadd.f32 %v3826_v33, %v3634_v10  ;;  %9044 = vst [vmem:[#allocation37_spill] sm:$0xff] %v8127_v9  ;;  %v3088_v33 = vadd.f32 %v7960_v4, %v7822_v1 }
 0x354   : > { %6008 = vmatmul.msk.f32.gmra.mxu3 %vm2758_vm2, %v8109_v58  ;;  %v8117_v59 = vpop.f32.mrf.mxu1  ;;  %v8141_v58 = vld [vmem:[#allocation2 + $0x139] sm:$0xff] }
 0x355   : > { %9043 = vst [vmem:[#allocation32_spill] sm:$0xff] %v8113_v42 }
 0x356   : > { %v3281_v60 = vpop.f32.mrf.mxu2 }
 0x357   : > { %v3361_v6 = vadd.f32 %v3281_v60, %v3087_v25  ;;  %v3555_v15 = vpop.f32.mrf.mxu3  ;;  %6056 = vmatmul.msk.f32.gmra.mxu1 %vm2758_vm2, %v7831_v20  ;;  %v3832_v63 = vpop.f32.mrf.mxu0 }
 0x359   : > { %v3635_v5 = vadd.f32 %v3555_v15, %v3361_v6 }
 0x35a   : > { %6041 = vmatmul.msk.f32.gmra.mxu0 %vm2758_vm2, %v7864_v18  ;;  %v8145_v18 = vld [vmem:[#allocation2 + $0x13a] sm:$0xff] }
 0x35b   : > { %5977 = vmatmul.msk.f32.gmra.mxu2 %vm2758_vm2, %v8123_v21  ;;  %v8131_v10 = vadd.f32 %v3829_v12, %v3635_v5  ;;  %9046 = vst [vmem:[#allocation36_spill] sm:$0xff] %v8145_v18  ;;  %v3089_v12 = vadd.f32 %v7960_v4, %v7841_v40 }
 0x35c   : > { %6009 = vmatmul.msk.f32.gmra.mxu3 %vm2758_vm2, %v8127_v9  ;;  %v8135_v26 = vpop.f32.mrf.mxu1  ;;  %v8159_v9 = vld [vmem:[#allocation2 + $0x141] sm:$0xff] }
 0x35d   : > { %9045 = vst [vmem:[#allocation34_spill] sm:$0xff] %v8131_v10 }
 0x35e   : > { %v3284_v25 = vpop.f32.mrf.mxu2 }
 0x35f   : > { %v3362_v60 = vadd.f32 %v3284_v25, %v3088_v33  ;;  %v3558_v6 = vpop.f32.mrf.mxu3  ;;  %6057 = vmatmul.msk.f32.gmra.mxu1 %vm2758_vm2, %v7850_v14  ;;  %v3835_v15 = vpop.f32.mrf.mxu0 }
 0x361   : > { %v3636_v42 = vadd.f32 %v3558_v6, %v3362_v60 }
 0x362   : > { %6042 = vmatmul.msk.f32.gmra.mxu0 %vm2758_vm2, %v7889_v54  ;;  %v8163_v54 = vld [vmem:[#allocation2 + $0x142] sm:$0xff] }
 0x363   : > { %5978 = vmatmul.msk.f32.gmra.mxu2 %vm2758_vm2, %v8141_v58  ;;  %v8149_v5 = vadd.f32 %v3832_v63, %v3636_v42  ;;  %9048 = vst [vmem:[#allocation41_spill] sm:$0xff] %v8163_v54  ;;  %v3090_v63 = vadd.f32 %v7960_v4, %v7860_v19 }
 0x364   : > { %6010 = vmatmul.msk.f32.gmra.mxu3 %vm2758_vm2, %v8145_v18  ;;  %v8153_v1 = vpop.f32.mrf.mxu1  ;;  %v8177_v18 = vld [vmem:[#allocation2 + $0x151] sm:$0xff] }
 0x365   : > { %9047 = vst [vmem:[#allocation39_spill] sm:$0xff] %v8149_v5 }
 0x366   : > { %v3287_v33 = vpop.f32.mrf.mxu2 }
 0x367   : > { %v3363_v25 = vadd.f32 %v3287_v33, %v3089_v12  ;;  %v3561_v60 = vpop.f32.mrf.mxu3  ;;  %6058 = vmatmul.msk.f32.gmra.mxu1 %vm2758_vm2, %v7875_v47  ;;  %v3838_v6 = vpop.f32.mrf.mxu0 }
 0x369   : > { %v3637_v10 = vadd.f32 %v3561_v60, %v3363_v25 }
 0x36a   : > { %6043 = vmatmul.msk.f32.gmra.mxu0 %vm2758_vm2, %v7914_v29  ;;  %v8181_v29 = vld [vmem:[#allocation2 + $0x152] sm:$0xff] }
 0x36b   : > { %5979 = vmatmul.msk.f32.gmra.mxu2 %vm2758_vm2, %v8159_v9  ;;  %v8167_v42 = vadd.f32 %v3835_v15, %v3637_v10  ;;  %9050 = vst [vmem:[#allocation3_spill] sm:$0xff] %v8181_v29  ;;  %v3091_v15 = vadd.f32 %v7960_v4, %v7885_v7 }
 0x36c   : > { %6011 = vmatmul.msk.f32.gmra.mxu3 %vm2758_vm2, %v8163_v54  ;;  %v8171_v40 = vpop.f32.mrf.mxu1  ;;  %v8195_v54 = vld [vmem:[#allocation2 + $0x159] sm:$0xff] }
 0x36d   : > { %9049 = vst [vmem:[#allocation4_spill] sm:$0xff] %v8167_v42 }
 0x36e   : > { %v3290_v12 = vpop.f32.mrf.mxu2 }
 0x36f   : > { %v3364_v33 = vadd.f32 %v3290_v12, %v3090_v63  ;;  %v3564_v25 = vpop.f32.mrf.mxu3  ;;  %6059 = vmatmul.msk.f32.gmra.mxu1 %vm2758_vm2, %v7900_v8  ;;  %v3841_v60 = vpop.f32.mrf.mxu0 }
 0x371   : > { %v3638_v5 = vadd.f32 %v3564_v25, %v3364_v33 }
 0x372   : > { %6044 = vmatmul.msk.f32.gmra.mxu0 %vm2758_vm2, %v7933_v27  ;;  %v8199_v27 = vld [vmem:[#allocation2 + $0x15a] sm:$0xff] }
 0x373   : > { %5980 = vmatmul.msk.f32.gmra.mxu2 %vm2758_vm2, %v8177_v18  ;;  %v8185_v10 = vadd.f32 %v3838_v6, %v3638_v5  ;;  %9052 = vst [vmem:[#allocation5_spill] sm:$0xff] %v8199_v27  ;;  %v3092_v6 = vadd.f32 %v7960_v4, %v7910_v23 }
 0x374   : > { %6012 = vmatmul.msk.f32.gmra.mxu3 %vm2758_vm2, %v8181_v29  ;;  %v8189_v19 = vpop.f32.mrf.mxu1  ;;  %v8213_v29 = vld [vmem:[#allocation2 + $0x169] sm:$0xff] }
 0x375   : > { %9051 = vst [vmem:[#allocation6_spill] sm:$0xff] %v8185_v10 }
 0x376   : > { %v3293_v63 = vpop.f32.mrf.mxu2 }
 0x377   : > { %v3365_v12 = vadd.f32 %v3293_v63, %v3091_v15  ;;  %v3567_v33 = vpop.f32.mrf.mxu3  ;;  %6060 = vmatmul.msk.f32.gmra.mxu1 %vm2758_vm2, %v7919_v45  ;;  %v3844_v25 = vpop.f32.mrf.mxu0 }
 0x379   : > { %v3639_v42 = vadd.f32 %v3567_v33, %v3365_v12 }
 0x37a   : > { %6045 = vmatmul.msk.f32.gmra.mxu0 %vm2758_vm2, %v7952_v44  ;;  %v8215_v44 = vld [vmem:[#allocation2 + $0x180] sm:$0xff] }
 0x37b   : > { %5981 = vmatmul.msk.f32.gmra.mxu2 %vm2758_vm2, %v8195_v54  ;;  %v8203_v5 = vadd.f32 %v3841_v60, %v3639_v42  ;;  %9054 = vst [vmem:[#allocation7_spill] sm:$0xff] %v8215_v44  ;;  %v8219_v42 = vld [vmem:[#allocation2 + $0x16a] sm:$0xff] }
 0x37c   : > { %6013 = vmatmul.msk.f32.gmra.mxu3 %vm2758_vm2, %v8199_v27  ;;  %v8207_v7 = vpop.f32.mrf.mxu1  ;;  %9055 = vst [vmem:[#allocation10_spill] sm:$0xff] %v8219_v42 }
 0x37d   : > { %9053 = vst [vmem:[#allocation8_spill] sm:$0xff] %v8203_v5 }
 0x37e   : > { %v3296_v15 = vpop.f32.mrf.mxu2 }
 0x37f   : > { %v3366_v63 = vadd.f32 %v3296_v15, %v3092_v6  ;;  %v3570_v12 = vpop.f32.mrf.mxu3  ;;  %6061 = vmatmul.msk.f32.gmra.mxu1 %vm2758_vm2, %v7938_v13  ;;  %v3847_v33 = vpop.f32.mrf.mxu0  ;;  %v3093_v6 = vadd.f32 %v7960_v4, %v7929_v37 }
 0x381   : > { %v3640_v10 = vadd.f32 %v3570_v12, %v3366_v63 }
 0x382   : > { %6046 = vmatmul.msk.f32.gmra.mxu0 %vm2758_vm2, %v8215_v44 }
 0x383   : > { %5982 = vmatmul.msk.f32.gmra.mxu2 %vm2758_vm2, %v8213_v29  ;;  %v8223_v23 = vadd.f32 %v3844_v25, %v3640_v10  ;;  %v8235_v10 = vld [vmem:[#allocation2 + $0x188] sm:$0xff]  ;;  %v8239_v25 = vld [vmem:[#allocation2 + $0x172] sm:$0xff] }
 0x384   : > { %6014 = vmatmul.msk.f32.gmra.mxu3 %vm2758_vm2, %v8219_v42  ;;  %v8227_v60 = vpop.f32.mrf.mxu1  ;;  %9057 = vst [vmem:[#allocation38_spill] sm:$0xff] %v8235_v10 }
 0x385   : > { %9056 = vst [vmem:[#allocation9_spill] sm:$0xff] %v8223_v23 }
 0x386   : > { %v3299_v15 = vpop.f32.mrf.mxu2 }
 0x387   : > { %v3367_v63 = vadd.f32 %v3299_v15, %v3093_v6  ;;  %v3573_v12 = vpop.f32.mrf.mxu3  ;;  %6062 = vmatmul.msk.f32.gmra.mxu1 %vm2758_vm2, %v7962_v11  ;;  %v3850_v5 = vpop.f32.mrf.mxu0  ;;  %v3094_v15 = vadd.f32 %v7960_v4, %v7948_v0 }
 0x389   : > { %v3641_v27 = vadd.f32 %v3573_v12, %v3367_v63 }
 0x38a   : > { %6047 = vmatmul.msk.f32.gmra.mxu0 %vm2758_vm2, %v8235_v10 }
 0x38b   : > { %5983 = vmatmul.msk.f32.gmra.mxu2 %vm2758_vm2, %v8233_v34  ;;  %v8243_v37 = vadd.f32 %v3847_v33, %v3641_v27  ;;  %v4482_v27 = vld [vmem:[#allocation2 + $0x30] sm:$0xff] }
 0x38c   : > { %6015 = vmatmul.msk.f32.gmra.mxu3 %vm2758_vm2, %v8239_v25  ;;  %v8247_v6 = vpop.f32.mrf.mxu1 }
 0x38d   : > { %9058 = vst [vmem:[#allocation42_spill] sm:$0xff] %v8243_v37 }
 0x38e   : > { %v3302_v63 = vpop.f32.mrf.mxu2 }
 0x38f   : > { %v3368_v12 = vadd.f32 %v3302_v63, %v3094_v15  ;;  %v3576_v23 = vpop.f32.mrf.mxu3  ;;  %6063 = vmatmul.msk.f32.gmra.mxu1 %vm2758_vm2, %v7979_v36  ;;  %v3853_v44 = vpop.f32.mrf.mxu0  ;;  %v3095_v15 = vadd.f32 %v7960_v4, %v7972_v41 }
 0x391   : > { %v3642_v42 = vadd.f32 %v3576_v23, %v3368_v12 }
 0x392   : > { %6144 = vmatmul.msk.f32.vlgmr.msra.gmra.mxu0 %vm2758_vm2, %v7717_v16  ;;  %v4483_v16 = vld [vmem:[#allocation2 + $0x38] sm:$0xff] }
 0x393   : > { %6080 = vmatmul.msk.f32.vlgmr.msra.gmra.mxu2 %vm2758_vm2, %v7683_v24  ;;  %v8257_v33 = vadd.f32 %v3850_v5, %v3642_v42  ;;  %v3096_v42 = vadd.f32 %v7960_v4, %v7991_v51 }
 0x394   : > { %6112 = vmatmul.msk.f32.vlgmr.msra.gmra.mxu3 %vm2758_vm2, %v4482_v27  ;;  %v8260_v0 = vpop.f32.mrf.mxu1 }
 0x396   : > { %v3305_v63 = vpop.f32.mrf.mxu2 }
 0x397   : > { %v3369_v37 = vadd.f32 %v3305_v63, %v3095_v15  ;;  %v3579_v10 = vpop.f32.mrf.mxu3  ;;  %6064 = vmatmul.msk.f32.gmra.mxu1 %vm2758_vm2, %v7997_v55  ;;  %v3856_v24 = vpop.f32.mrf.mxu0 }
 0x399   : > { %v3643_v23 = vadd.f32 %v3579_v10, %v3369_v37  ;;  %v3097_v37 = vadd.f32 %v7960_v4, %v8009_v28 }
 0x39a   : > { %6145 = vmatmul.msk.f32.gmra.mxu0 %vm2758_vm2, %v7736_v50  ;;  %v4484_v50 = vld [vmem:[#allocation2 + $0x48] sm:$0xff] }
 0x39b   : > { %6081 = vmatmul.msk.f32.gmra.mxu2 %vm2758_vm2, %v7702_v56  ;;  %v8270_v5 = vadd.f32 %v3853_v44, %v3643_v23 }
 0x39c   : > { %6113 = vmatmul.msk.f32.gmra.mxu3 %vm2758_vm2, %v4483_v16  ;;  %v8273_v41 = vpop.f32.mrf.mxu1 }
 0x39e   : > { %v3308_v12 = vpop.f32.mrf.mxu2 }
 0x39f   : > { %v3370_v27 = vadd.f32 %v3308_v12, %v3096_v42  ;;  %v3582_v15 = vpop.f32.mrf.mxu3  ;;  %6065 = vmatmul.msk.f32.gmra.mxu1 %vm2758_vm2, %v8015_v31  ;;  %v3859_v56 = vpop.f32.mrf.mxu0  ;;  %v3098_v12 = vadd.f32 %v7960_v4, %v8027_v39 }
 0x3a1   : > { %v3644_v10 = vadd.f32 %v3582_v15, %v3370_v27 }
 0x3a2   : > { %6146 = vmatmul.msk.f32.gmra.mxu0 %vm2758_vm2, %v7755_v30  ;;  %v4485_v30 = vld [vmem:[#allocation2 + $0x50] sm:$0xff] }
 0x3a3   : > { %6082 = vmatmul.msk.f32.gmra.mxu2 %vm2758_vm2, %v7721_v48  ;;  %v8283_v44 = vadd.f32 %v3856_v24, %v3644_v10 }
 0x3a4   : > { %6114 = vmatmul.msk.f32.gmra.mxu3 %vm2758_vm2, %v4484_v50  ;;  %v8286_v51 = vpop.f32.mrf.mxu1 }
 0x3a6   : > { %v3311_v63 = vpop.f32.mrf.mxu2 }
 0x3a7   : > { %v3371_v23 = vadd.f32 %v3311_v63, %v3097_v37  ;;  %v3585_v16 = vpop.f32.mrf.mxu3  ;;  %6066 = vmatmul.msk.f32.gmra.mxu1 %vm2758_vm2, %v8033_v17  ;;  %v3862_v48 = vpop.f32.mrf.mxu0  ;;  %v3099_v37 = vadd.f32 %v7960_v4, %v8045_v2 }
 0x3a9   : > { %v3645_v42 = vadd.f32 %v3585_v16, %v3371_v23 }
 0x3aa   : > { %6147 = vmatmul.msk.f32.gmra.mxu0 %vm2758_vm2, %v7774_v35  ;;  %v4486_v35 = vld [vmem:[#allocation2 + $0x60] sm:$0xff] }
 0x3ab   : > { %6083 = vmatmul.msk.f32.gmra.mxu2 %vm2758_vm2, %v7740_v32  ;;  %v8296_v24 = vadd.f32 %v3859_v56, %v3645_v42 }
 0x3ac   : > { %6115 = vmatmul.msk.f32.gmra.mxu3 %vm2758_vm2, %v4485_v30  ;;  %v8299_v28 = vpop.f32.mrf.mxu1  ;;  %v3100_v30 = vadd.f32 %v7960_v4, %v8063_v57 }
 0x3ae   : > { %v3314_v27 = vpop.f32.mrf.mxu2 }
 0x3af   : > { %v3372_v15 = vadd.f32 %v3314_v27, %v3098_v12  ;;  %v3588_v10 = vpop.f32.mrf.mxu3  ;;  %6067 = vmatmul.msk.f32.gmra.mxu1 %vm2758_vm2, %v8051_v49  ;;  %v3865_v32 = vpop.f32.mrf.mxu0 }
 0x3b1   : > { %v3646_v50 = vadd.f32 %v3588_v10, %v3372_v15 }
 0x3b2   : > { %6148 = vmatmul.msk.f32.gmra.mxu0 %vm2758_vm2, %v7793_v53  ;;  %v4487_v53 = vld [vmem:[#allocation2 + $0x68] sm:$0xff] }
 0x3b3   : > { %6084 = vmatmul.msk.f32.gmra.mxu2 %vm2758_vm2, %v7759_v62  ;;  %v8309_v56 = vadd.f32 %v3862_v48, %v3646_v50  ;;  %v9059_v50 = vld [vmem:[#allocation40_spill] sm:$0xff] }
 0x3b4   : > { %6116 = vmatmul.msk.f32.gmra.mxu3 %vm2758_vm2, %v4486_v35  ;;  %v8312_v39 = vpop.f32.mrf.mxu1  ;;  %v3101_v35 = vadd.f32 %v7960_v4, %v8081_v43 }
 0x3b6   : > { %v3317_v63 = vpop.f32.mrf.mxu2 }
 0x3b7   : > { %v3373_v23 = vadd.f32 %v3317_v63, %v3099_v37  ;;  %v3591_v16 = vpop.f32.mrf.mxu3  ;;  %6068 = vmatmul.msk.f32.gmra.mxu1 %vm2758_vm2, %v8069_v3  ;;  %v3868_v62 = vpop.f32.mrf.mxu0 }
 0x3b9   : > { %v3647_v42 = vadd.f32 %v3591_v16, %v3373_v23 }
 0x3ba   : > { %6149 = vmatmul.msk.f32.gmra.mxu0 %vm2758_vm2, %v7812_v52  ;;  %v4488_v52 = vld [vmem:[#allocation2 + $0x78] sm:$0xff] }
 0x3bb   : > { %6085 = vmatmul.msk.f32.gmra.mxu2 %vm2758_vm2, %v7778_v61  ;;  %v8322_v48 = vadd.f32 %v3865_v32, %v3647_v42 }
 0x3bc   : > { %6117 = vmatmul.msk.f32.gmra.mxu3 %vm2758_vm2, %v4487_v53  ;;  %v8325_v2 = vpop.f32.mrf.mxu1  ;;  %v9060_v53 = vld [vmem:[#allocation13_spill] sm:$0xff] }
 0x3be   : > { %v3320_v12 = vpop.f32.mrf.mxu2 }
 0x3bf   : > { %v3374_v27 = vadd.f32 %v3320_v12, %v3100_v30  ;;  %v3594_v15 = vpop.f32.mrf.mxu3  ;;  %6069 = vmatmul.msk.f32.gmra.mxu1 %vm2758_vm2, %v8087_v46  ;;  %v3871_v61 = vpop.f32.mrf.mxu0  ;;  %v3102_v30 = vadd.f32 %v7960_v4, %v8099_v22 }
 0x3c1   : > { %v3648_v10 = vadd.f32 %v3594_v15, %v3374_v27 }
 0x3c2   : > { %6150 = vmatmul.msk.f32.gmra.mxu0 %vm2758_vm2, %v7831_v20  ;;  %v4489_v20 = vld [vmem:[#allocation2 + $0x80] sm:$0xff] }
 0x3c3   : > { %6086 = vmatmul.msk.f32.gmra.mxu2 %vm2758_vm2, %v9059_v50  ;;  %v8335_v32 = vadd.f32 %v3868_v62, %v3648_v10 }
 0x3c4   : > { %6118 = vmatmul.msk.f32.gmra.mxu3 %vm2758_vm2, %v4488_v52  ;;  %v8338_v57 = vpop.f32.mrf.mxu1  ;;  %v9062_v52 = vld [vmem:[#allocation11_spill] sm:$0xff] }
 0x3c6   : > { %v3323_v37 = vpop.f32.mrf.mxu2 }
 0x3c7   : > { %v3375_v63 = vadd.f32 %v3323_v37, %v3101_v35  ;;  %v3597_v23 = vpop.f32.mrf.mxu3  ;;  %6070 = vmatmul.msk.f32.gmra.mxu1 %vm2758_vm2, %v8105_v38  ;;  %v3874_v16 = vpop.f32.mrf.mxu0  ;;  %v3103_v35 = vadd.f32 %v7960_v4, %v8117_v59 }
 0x3c9   : > { %v3649_v42 = vadd.f32 %v3597_v23, %v3375_v63 }
 0x3ca   : > { %6151 = vmatmul.msk.f32.gmra.mxu0 %vm2758_vm2, %v7850_v14  ;;  %v4490_v14 = vld [vmem:[#allocation2 + $0x90] sm:$0xff] }
 0x3cb   : > { %6087 = vmatmul.msk.f32.gmra.mxu2 %vm2758_vm2, %v9060_v53  ;;  %v8348_v62 = vadd.f32 %v3871_v61, %v3649_v42 }
 0x3cc   : > { %6119 = vmatmul.msk.f32.gmra.mxu3 %vm2758_vm2, %v4489_v20  ;;  %v8351_v43 = vpop.f32.mrf.mxu1  ;;  %v9064_v20 = vld [vmem:[#allocation15_spill] sm:$0xff] }
 0x3cd   : > { %9061 = vst [vmem:[#allocation40_spill] sm:$0xff] %v8348_v62 }
 0x3ce   : > { %v3326_v12 = vpop.f32.mrf.mxu2 }
 0x3cf   : > { %v3376_v27 = vadd.f32 %v3326_v12, %v3102_v30  ;;  %v3600_v15 = vpop.f32.mrf.mxu3  ;;  %6071 = vmatmul.msk.f32.gmra.mxu1 %vm2758_vm2, %v8123_v21  ;;  %v3877_v10 = vpop.f32.mrf.mxu0  ;;  %v3104_v30 = vadd.f32 %v7960_v4, %v8135_v26 }
 0x3d1   : > { %v3650_v50 = vadd.f32 %v3600_v15, %v3376_v27 }
 0x3d2   : > { %6152 = vmatmul.msk.f32.gmra.mxu0 %vm2758_vm2, %v7875_v47  ;;  %v4491_v47 = vld [vmem:[#allocation2 + $0x98] sm:$0xff] }
 0x3d3   : > { %6088 = vmatmul.msk.f32.gmra.mxu2 %vm2758_vm2, %v9062_v52  ;;  %v8361_v61 = vadd.f32 %v3874_v16, %v3650_v50 }
 0x3d4   : > { %6120 = vmatmul.msk.f32.gmra.mxu3 %vm2758_vm2, %v4490_v14  ;;  %v8364_v22 = vpop.f32.mrf.mxu1  ;;  %v9066_v14 = vld [vmem:[#allocation12_spill] sm:$0xff] }
 0x3d5   : > { %9063 = vst [vmem:[#allocation13_spill] sm:$0xff] %v8361_v61 }
 0x3d6   : > { %v3329_v37 = vpop.f32.mrf.mxu2 }
 0x3d7   : > { %v3377_v63 = vadd.f32 %v3329_v37, %v3103_v35  ;;  %v3603_v23 = vpop.f32.mrf.mxu3  ;;  %6072 = vmatmul.msk.f32.gmra.mxu1 %vm2758_vm2, %v8141_v58  ;;  %v3880_v42 = vpop.f32.mrf.mxu0  ;;  %v3105_v35 = vadd.f32 %v7960_v4, %v8153_v1 }
 0x3d9   : > { %v3651_v53 = vadd.f32 %v3603_v23, %v3377_v63 }
 0x3da   : > { %6153 = vmatmul.msk.f32.gmra.mxu0 %vm2758_vm2, %v7900_v8  ;;  %v4492_v8 = vld [vmem:[#allocation2 + $0xa8] sm:$0xff] }
 0x3db   : > { %6089 = vmatmul.msk.f32.gmra.mxu2 %vm2758_vm2, %v9064_v20  ;;  %v8374_v16 = vadd.f32 %v3877_v10, %v3651_v53 }
 0x3dc   : > { %6121 = vmatmul.msk.f32.gmra.mxu3 %vm2758_vm2, %v4491_v47  ;;  %v8377_v59 = vpop.f32.mrf.mxu1  ;;  %v9068_v47 = vld [vmem:[#allocation17_spill] sm:$0xff] }
 0x3dd   : > { %9065 = vst [vmem:[#allocation11_spill] sm:$0xff] %v8374_v16  ;;  %v8634_v16 = vld [vmem:[#allocation2 + $0x18a] sm:$0xff] }
 0x3de   : > { %v3332_v12 = vpop.f32.mrf.mxu2 }
 0x3df   : > { %v3378_v27 = vadd.f32 %v3332_v12, %v3104_v30  ;;  %v3606_v15 = vpop.f32.mrf.mxu3  ;;  %6073 = vmatmul.msk.f32.gmra.mxu1 %vm2758_vm2, %v8159_v9  ;;  %v3883_v50 = vpop.f32.mrf.mxu0  ;;  %v3106_v30 = vadd.f32 %v7960_v4, %v8171_v40 }
 0x3e1   : > { %v3652_v52 = vadd.f32 %v3606_v15, %v3378_v27 }
 0x3e2   : > { %6154 = vmatmul.msk.f32.gmra.mxu0 %vm2758_vm2, %v7919_v45  ;;  %v4493_v45 = vld [vmem:[#allocation2 + $0xb0] sm:$0xff] }
 0x3e3   : > { %6090 = vmatmul.msk.f32.gmra.mxu2 %vm2758_vm2, %v9066_v14  ;;  %v8387_v10 = vadd.f32 %v3880_v42, %v3652_v52  ;;  %v9070_v14 = vld [vmem:[#allocation14_spill] sm:$0xff] }
 0x3e4   : > { %6122 = vmatmul.msk.f32.gmra.mxu3 %vm2758_vm2, %v4492_v8  ;;  %v8390_v26 = vpop.f32.mrf.mxu1 }
 0x3e5   : > { %9067 = vst [vmem:[#allocation15_spill] sm:$0xff] %v8387_v10 }
 0x3e6   : > { %v3335_v37 = vpop.f32.mrf.mxu2 }
 0x3e7   : > { %v3379_v63 = vadd.f32 %v3335_v37, %v3105_v35  ;;  %v3609_v23 = vpop.f32.mrf.mxu3  ;;  %6074 = vmatmul.msk.f32.gmra.mxu1 %vm2758_vm2, %v8177_v18  ;;  %v3886_v20 = vpop.f32.mrf.mxu0  ;;  %v3107_v35 = vadd.f32 %v7960_v4, %v8189_v19  ;;  %v3108_v19 = vadd.f32 %v7960_v4, %v8207_v7 }
 0x3e9   : > { %v3653_v53 = vadd.f32 %v3609_v23, %v3379_v63 }
 0x3ea   : > { %6155 = vmatmul.msk.f32.gmra.mxu0 %vm2758_vm2, %v7938_v13  ;;  %v4494_v13 = vld [vmem:[#allocation2 + $0xc0] sm:$0xff] }
 0x3eb   : > { %6091 = vmatmul.msk.f32.gmra.mxu2 %vm2758_vm2, %v9068_v47  ;;  %v8400_v42 = vadd.f32 %v3883_v50, %v3653_v53  ;;  %v9072_v47 = vld [vmem:[#allocation19_spill] sm:$0xff] }
 0x3ec   : > { %6123 = vmatmul.msk.f32.gmra.mxu3 %vm2758_vm2, %v4493_v45  ;;  %v8403_v1 = vpop.f32.mrf.mxu1 }
 0x3ed   : > { %9069 = vst [vmem:[#allocation12_spill] sm:$0xff] %v8400_v42  ;;  %v4512_v42 = vld [vmem:[#allocation2 + $0x198] sm:$0xff] }
 0x3ee   : > { %v3338_v12 = vpop.f32.mrf.mxu2 }
 0x3ef   : > { %v3380_v27 = vadd.f32 %v3338_v12, %v3106_v30  ;;  %v3612_v15 = vpop.f32.mrf.mxu3  ;;  %6075 = vmatmul.msk.f32.gmra.mxu1 %vm2758_vm2, %v8195_v54  ;;  %v3889_v8 = vpop.f32.mrf.mxu0 }
 0x3f1   : > { %v3654_v52 = vadd.f32 %v3612_v15, %v3380_v27 }
 0x3f2   : > { %6156 = vmatmul.msk.f32.gmra.mxu0 %vm2758_vm2, %v7962_v11  ;;  %v4495_v11 = vld [vmem:[#allocation2 + $0xc8] sm:$0xff] }
 0x3f3   : > { %6092 = vmatmul.msk.f32.gmra.mxu2 %vm2758_vm2, %v9070_v14  ;;  %v8413_v50 = vadd.f32 %v3886_v20, %v3654_v52  ;;  %v9074_v14 = vld [vmem:[#allocation16_spill] sm:$0xff] }
 0x3f4   : > { %6124 = vmatmul.msk.f32.gmra.mxu3 %vm2758_vm2, %v4494_v13  ;;  %v8416_v40 = vpop.f32.mrf.mxu1 }
 0x3f5   : > { %9071 = vst [vmem:[#allocation17_spill] sm:$0xff] %v8413_v50 }
 0x3f6   : > { %v3341_v37 = vpop.f32.mrf.mxu2 }
 0x3f7   : > { %v3381_v63 = vadd.f32 %v3341_v37, %v3107_v35  ;;  %v3615_v23 = vpop.f32.mrf.mxu3  ;;  %6076 = vmatmul.msk.f32.gmra.mxu1 %vm2758_vm2, %v8213_v29  ;;  %v3892_v30 = vpop.f32.mrf.mxu0  ;;  %v8446_v37 = vld [vmem:[#allocation2 + $0x181] sm:$0xff] }
 0x3f9   : > { %v3655_v53 = vadd.f32 %v3615_v23, %v3381_v63 }
 0x3fa   : > { %6157 = vmatmul.msk.f32.gmra.mxu0 %vm2758_vm2, %v7979_v36  ;;  %v4496_v36 = vld [vmem:[#allocation2 + $0xd8] sm:$0xff] }
 0x3fb   : > { %6093 = vmatmul.msk.f32.gmra.mxu2 %vm2758_vm2, %v9072_v47  ;;  %v8426_v20 = vadd.f32 %v3889_v8, %v3655_v53  ;;  %v3109_v8 = vadd.f32 %v7960_v4, %v8227_v60 }
 0x3fc   : > { %6125 = vmatmul.msk.f32.gmra.mxu3 %vm2758_vm2, %v4495_v11  ;;  %v8429_v45 = vpop.f32.mrf.mxu1  ;;  %v4497_v11 = vld [vmem:[#allocation2 + $0xe0] sm:$0xff] }
 0x3fd   : > { %9073 = vst [vmem:[#allocation14_spill] sm:$0xff] %v8426_v20  ;;  %v5041_v20 = vld [vmem:[#allocation2 + $0xb2] sm:$0xff] }
 0x3fe   : > { %v3344_v12 = vpop.f32.mrf.mxu2 }
 0x3ff   : > { %v3382_v27 = vadd.f32 %v3344_v12, %v3108_v19  ;;  %v3618_v15 = vpop.f32.mrf.mxu3  ;;  %6077 = vmatmul.msk.f32.gmra.mxu1 %vm2758_vm2, %v8233_v34  ;;  %v3895_v53 = vpop.f32.mrf.mxu0 }
 0x401   : > { %v3656_v52 = vadd.f32 %v3618_v15, %v3382_v27  ;;  %v8461_v27 = vld [vmem:[#allocation2 + $0x189] sm:$0xff] }
 0x402   : > { %6158 = vmatmul.msk.f32.gmra.mxu0 %vm2758_vm2, %v7997_v55  ;;  %v9076_v55 = vld [vmem:[#allocation21_spill] sm:$0xff] }
 0x403   : > { %6094 = vmatmul.msk.f32.gmra.mxu2 %vm2758_vm2, %v9074_v14  ;;  %v8439_v13 = vadd.f32 %v3892_v30, %v3656_v52  ;;  %v3110_v30 = vadd.f32 %v7960_v4, %v8247_v6  ;;  %v5030_v6 = vld [vmem:[#allocation2 + $0x32] sm:$0xff] }
 0x404   : > { %6126 = vmatmul.msk.f32.gmra.mxu3 %vm2758_vm2, %v4496_v36  ;;  %v8442_v7 = vpop.f32.mrf.mxu1 }
 0x405   : > { %9075 = vst [vmem:[#allocation19_spill] sm:$0xff] %v8439_v13 }
 0x406   : > { %v3347_v35 = vpop.f32.mrf.mxu2 }
 0x407   : > { %v3383_v63 = vadd.f32 %v3347_v35, %v3109_v8  ;;  %v3621_v23 = vpop.f32.mrf.mxu3  ;;  %6078 = vmatmul.msk.f32.gmra.mxu1 %vm2758_vm2, %v8446_v37  ;;  %v3898_v36 = vpop.f32.mrf.mxu0  ;;  %v4498_v8 = vld [vmem:[#allocation2 + $0xf0] sm:$0xff] }
 0x409   : > { %v3657_v47 = vadd.f32 %v3621_v23, %v3383_v63  ;;  %v9080_v63 = vld [vmem:[#allocation25_spill] sm:$0xff]  ;;  %v4499_v23 = vld [vmem:[#allocation2 + $0xf8] sm:$0xff] }
 0x40a   : > { %6159 = vmatmul.msk.f32.gmra.mxu0 %vm2758_vm2, %v8015_v31  ;;  %v9078_v31 = vld [vmem:[#allocation23_spill] sm:$0xff] }
 0x40b   : > { %6095 = vmatmul.msk.f32.gmra.mxu2 %vm2758_vm2, %v9076_v55  ;;  %v8454_v19 = vadd.f32 %v3895_v53, %v3657_v47  ;;  %v9081_v47 = vld [vmem:[#allocation27_spill] sm:$0xff]  ;;  %v4500_v55 = vld [vmem:[#allocation2 + $0x108] sm:$0xff] }
 0x40c   : > { %6127 = vmatmul.msk.f32.gmra.mxu3 %vm2758_vm2, %v4497_v11  ;;  %v8457_v60 = vpop.f32.mrf.mxu1 }
 0x40d   : > { %9077 = vst [vmem:[#allocation16_spill] sm:$0xff] %v8454_v19  ;;  %v4509_v19 = vld [vmem:[#allocation2 + $0x170] sm:$0xff] }
 0x40e   : > { %v3350_v12 = vpop.f32.mrf.mxu2 }
 0x40f   : > { %v3384_v15 = vadd.f32 %v3350_v12, %v3110_v30  ;;  %6079 = vmatmul.msk.f32.gmra.mxu1 %vm2758_vm2, %v8461_v27  ;;  %v3624_v52 = vpop.f32.mrf.mxu3  ;;  %v5032_v30 = vld [vmem:[#allocation2 + $0x4a] sm:$0xff] }
 0x410   : > { %v4501_v12 = vld [vmem:[#allocation2 + $0x110] sm:$0xff] }
 0x411   : > { %v3658_v14 = vadd.f32 %v3624_v52, %v3384_v15  ;;  %v5033_v52 = vld [vmem:[#allocation2 + $0x52] sm:$0xff] }
 0x412   : > { %6160 = vmatmul.msk.f32.gmra.mxu0 %vm2758_vm2, %v8033_v17  ;;  %v5031_v17 = vld [vmem:[#allocation2 + $0x3a] sm:$0xff] }
 0x413   : > { %6096 = vmatmul.msk.f32.gmra.mxu2 %vm2758_vm2, %v9078_v31  ;;  %v8469_v35 = vadd.f32 %v3898_v36, %v3658_v14  ;;  %v4502_v14 = vld [vmem:[#allocation2 + $0x120] sm:$0xff] }
 0x414   : > { %6128 = vmatmul.msk.f32.gmra.mxu3 %vm2758_vm2, %v4498_v8  ;;  %v8472_v4 = vpop.f32.mrf.mxu1  ;;  %v5034_v31 = vld [vmem:[#allocation2 + $0x62] sm:$0xff] }
 0x415   : > { %9079 = vst [vmem:[#allocation21_spill] sm:$0xff] %v8469_v35  ;;  %v4503_v8 = vld [vmem:[#allocation2 + $0x128] sm:$0xff] }
 0x416   : > { %v4508_v35 = vld [vmem:[#allocation2 + $0x168] sm:$0xff] }
 0x417   : > { %6176 = vmatmul.msk.f32.vlgmr.msra.gmra.mxu1 %vm2758_vm2, %v5030_v6 }
 0x41a   : > { %6161 = vmatmul.msk.f32.gmra.mxu0 %vm2758_vm2, %v8051_v49  ;;  %v9082_v49 = vld [vmem:[#allocation29_spill] sm:$0xff] }
 0x41b   : > { %6097 = vmatmul.msk.f32.gmra.mxu2 %vm2758_vm2, %v9080_v63  ;;  %v5035_v63 = vld [vmem:[#allocation2 + $0x6a] sm:$0xff] }
 0x41c   : > { %6129 = vmatmul.msk.f32.gmra.mxu3 %vm2758_vm2, %v4499_v23  ;;  %v8480_v53 = vpop.f32.mrf.mxu1  ;;  %v4504_v23 = vld [vmem:[#allocation2 + $0x138] sm:$0xff] }
 0x41f   : > { %6177 = vmatmul.msk.f32.gmra.mxu1 %vm2758_vm2, %v5031_v17 }
 0x422   : > { %6162 = vmatmul.msk.f32.gmra.mxu0 %vm2758_vm2, %v8069_v3  ;;  %v9083_v3 = vld [vmem:[#allocation31_spill] sm:$0xff] }
 0x423   : > { %6098 = vmatmul.msk.f32.gmra.mxu2 %vm2758_vm2, %v9081_v47  ;;  %v8522_v47 = vpop.f32.mrf.mxu0 }
 0x424   : > { %6130 = vmatmul.msk.f32.gmra.mxu3 %vm2758_vm2, %v4500_v55  ;;  %v8488_v11 = vpop.f32.mrf.mxu1  ;;  %v8526_v55 = vpop.f32.mrf.mxu3 }
 0x427   : > { %6178 = vmatmul.msk.f32.gmra.mxu1 %vm2758_vm2, %v5032_v30  ;;  %v5036_v30 = vld [vmem:[#allocation2 + $0x7a] sm:$0xff] }
 0x42a   : > { %6163 = vmatmul.msk.f32.gmra.mxu0 %vm2758_vm2, %v8087_v46  ;;  %v9084_v46 = vld [vmem:[#allocation33_spill] sm:$0xff] }
 0x42b   : > { %6099 = vmatmul.msk.f32.gmra.mxu2 %vm2758_vm2, %v9082_v49  ;;  %v9087_v49 = vld [vmem:[#allocation37_spill] sm:$0xff] }
 0x42c   : > { %6131 = vmatmul.msk.f32.gmra.mxu3 %vm2758_vm2, %v4501_v12  ;;  %v8496_v15 = vpop.f32.mrf.mxu1  ;;  %v4505_v12 = vld [vmem:[#allocation2 + $0x140] sm:$0xff] }
 0x42f   : > { %6179 = vmatmul.msk.f32.gmra.mxu1 %vm2758_vm2, %v5033_v52  ;;  %v5037_v52 = vld [vmem:[#allocation2 + $0x82] sm:$0xff] }
 0x432   : > { %6164 = vmatmul.msk.f32.gmra.mxu0 %vm2758_vm2, %v8105_v38  ;;  %v9085_v38 = vld [vmem:[#allocation35_spill] sm:$0xff] }
 0x433   : > { %6100 = vmatmul.msk.f32.gmra.mxu2 %vm2758_vm2, %v9083_v3  ;;  %v8536_v3 = vpop.f32.mrf.mxu0 }
 0x434   : > { %6132 = vmatmul.msk.f32.gmra.mxu3 %vm2758_vm2, %v4502_v14  ;;  %v8504_v36 = vpop.f32.mrf.mxu1 }
 0x437   : > { %6180 = vmatmul.msk.f32.gmra.mxu1 %vm2758_vm2, %v5034_v31  ;;  %v8541_v31 = vpop.f32.mrf.mxu3 }
 0x43a   : > { %6165 = vmatmul.msk.f32.gmra.mxu0 %vm2758_vm2, %v8123_v21  ;;  %v8524_v21 = vpop.f32.mrf.mxu2 }
 0x43b   : > { %6101 = vmatmul.msk.f32.gmra.mxu2 %vm2758_vm2, %v9084_v46  ;;  %v9089_v46 = vld [vmem:[#allocation36_spill] sm:$0xff] }
 0x43c   : > { %6133 = vmatmul.msk.f32.gmra.mxu3 %vm2758_vm2, %v4503_v8  ;;  %v8512_v6 = vpop.f32.mrf.mxu1  ;;  %v4506_v8 = vld [vmem:[#allocation2 + $0x150] sm:$0xff] }
 0x43f   : > { %6181 = vmatmul.msk.f32.gmra.mxu1 %vm2758_vm2, %v5035_v63  ;;  %v5038_v63 = vld [vmem:[#allocation2 + $0x92] sm:$0xff] }
 0x442   : > { %6166 = vmatmul.msk.f32.gmra.mxu0 %vm2758_vm2, %v8141_v58  ;;  %v8538_v14 = vpop.f32.mrf.mxu2 }
 0x443   : > { %6102 = vmatmul.msk.f32.gmra.mxu2 %vm2758_vm2, %v9085_v38  ;;  %v8551_v38 = vpop.f32.mrf.mxu0 }
 0x444   : > { %6134 = vmatmul.msk.f32.gmra.mxu3 %vm2758_vm2, %v4504_v23  ;;  %v8520_v17 = vpop.f32.mrf.mxu1 }
 0x445   : > { %9086 = vst [vmem:[#allocation23_spill] sm:$0xff] %v8520_v17 }
 0x447   : > { %6182 = vmatmul.msk.f32.gmra.mxu1 %vm2758_vm2, %v5036_v30  ;;  %v8555_v30 = vpop.f32.mrf.mxu3 }
 0x44a   : > { %6167 = vmatmul.msk.f32.gmra.mxu0 %vm2758_vm2, %v8159_v9  ;;  %v8553_v23 = vpop.f32.mrf.mxu2 }
 0x44b   : > { %6103 = vmatmul.msk.f32.gmra.mxu2 %vm2758_vm2, %v9087_v49  ;;  %v9091_v49 = vld [vmem:[#allocation41_spill] sm:$0xff] }
 0x44c   : > { %6135 = vmatmul.msk.f32.gmra.mxu3 %vm2758_vm2, %v4505_v12  ;;  %v8534_v58 = vpop.f32.mrf.mxu1  ;;  %v4507_v12 = vld [vmem:[#allocation2 + $0x158] sm:$0xff] }
 0x44d   : > { %9088 = vst [vmem:[#allocation25_spill] sm:$0xff] %v8534_v58 }
 0x44f   : > { %6183 = vmatmul.msk.f32.gmra.mxu1 %vm2758_vm2, %v5037_v52  ;;  %v5039_v52 = vld [vmem:[#allocation2 + $0x9a] sm:$0xff] }
 0x452   : > { %6168 = vmatmul.msk.f32.gmra.mxu0 %vm2758_vm2, %v8177_v18 }
 0x453   : > { %6104 = vmatmul.msk.f32.gmra.mxu2 %vm2758_vm2, %v9089_v46  ;;  %v8565_v46 = vpop.f32.mrf.mxu0 }
 0x454   : > { %6136 = vmatmul.msk.f32.gmra.mxu3 %vm2758_vm2, %v4506_v8  ;;  %v8548_v9 = vpop.f32.mrf.mxu1  ;;  %v8567_v8 = vpop.f32.mrf.mxu2 }
 0x455   : > { %9090 = vst [vmem:[#allocation27_spill] sm:$0xff] %v8548_v9  ;;  %v4513_v9 = vld [vmem:[#allocation2 + $0x1a0] sm:$0xff] }
 0x457   : > { %6184 = vmatmul.msk.f32.gmra.mxu1 %vm2758_vm2, %v5038_v63  ;;  %v9093_v63 = vld [vmem:[#allocation3_spill] sm:$0xff] }
 0x45a   : > { %6169 = vmatmul.msk.f32.gmra.mxu0 %vm2758_vm2, %v8195_v54 }
 0x45b   : > { %6105 = vmatmul.msk.f32.gmra.mxu2 %vm2758_vm2, %v9091_v49  ;;  %v8573_v49 = vpop.f32.mrf.mxu3 }
 0x45c   : > { %6137 = vmatmul.msk.f32.gmra.mxu3 %vm2758_vm2, %v4507_v12  ;;  %v8562_v18 = vpop.f32.mrf.mxu1  ;;  %v5040_v12 = vld [vmem:[#allocation2 + $0xaa] sm:$0xff]  ;;  %v8588_v13 = vpop.f32.mrf.mxu2 }
 0x45d   : > { %9092 = vst [vmem:[#allocation29_spill] sm:$0xff] %v8562_v18 }
 0x45f   : > { %6185 = vmatmul.msk.f32.gmra.mxu1 %vm2758_vm2, %v5039_v52  ;;  %v9095_v52 = vld [vmem:[#allocation5_spill] sm:$0xff] }
 0x462   : > { %6170 = vmatmul.msk.f32.gmra.mxu0 %vm2758_vm2, %v8213_v29  ;;  %v8586_v29 = vpop.f32.mrf.mxu0 }
 0x463   : > { %6106 = vmatmul.msk.f32.gmra.mxu2 %vm2758_vm2, %v9093_v63 }
 0x464   : > { %6138 = vmatmul.msk.f32.gmra.mxu3 %vm2758_vm2, %v4508_v35  ;;  %v8576_v54 = vpop.f32.mrf.mxu1  ;;  %v8590_v35 = vpop.f32.mrf.mxu3 }
 0x465   : > { %9094 = vst [vmem:[#allocation31_spill] sm:$0xff] %v8576_v54  ;;  %v8603_v50 = vpop.f32.mrf.mxu2 }
 0x467   : > { %6186 = vmatmul.msk.f32.gmra.mxu1 %vm2758_vm2, %v5040_v12  ;;  %v9097_v12 = vld [vmem:[#allocation10_spill] sm:$0xff] }
 0x46a   : > { %6171 = vmatmul.msk.f32.gmra.mxu0 %vm2758_vm2, %v8233_v34  ;;  %v9098_v34 = vld [vmem:[#allocation7_spill] sm:$0xff] }
 0x46b   : > { %6107 = vmatmul.msk.f32.gmra.mxu2 %vm2758_vm2, %v9095_v52  ;;  %v5042_v52 = vld [vmem:[#allocation2 + $0xc2] sm:$0xff] }
 0x46c   : > { %6139 = vmatmul.msk.f32.gmra.mxu3 %vm2758_vm2, %v4509_v19  ;;  %v8584_v63 = vpop.f32.mrf.mxu1  ;;  %v8606_v54 = vpop.f32.mrf.mxu3 }
 0x46d   : > { %9096 = vst [vmem:[#allocation33_spill] sm:$0xff] %v8584_v63  ;;  %v8601_v63 = vpop.f32.mrf.mxu0 }
 0x46f   : > { %6187 = vmatmul.msk.f32.gmra.mxu1 %vm2758_vm2, %v5041_v20  ;;  %v9100_v20 = vld [vmem:[#allocation38_spill] sm:$0xff] }
 0x472   : > { %6172 = vmatmul.msk.f32.gmra.mxu0 %vm2758_vm2, %v8446_v37 }
 0x473   : > { %6108 = vmatmul.msk.f32.gmra.mxu2 %vm2758_vm2, %v9097_v12  ;;  %v5043_v12 = vld [vmem:[#allocation2 + $0xca] sm:$0xff] }
 0x474   : > { %6140 = vmatmul.msk.f32.gmra.mxu3 %vm2758_vm2, %v9098_v34  ;;  %v8599_v19 = vpop.f32.mrf.mxu1  ;;  %v4786_v34 = vld [vmem:[#allocation2 + $0x199] sm:$0xff]  ;;  %v8621_v18 = vpop.f32.mrf.mxu3 }
 0x475   : > { %9099 = vst [vmem:[#allocation35_spill] sm:$0xff] %v8599_v19  ;;  %v8617_v19 = vpop.f32.mrf.mxu0 }
 0x477   : > { %6188 = vmatmul.msk.f32.gmra.mxu1 %vm2758_vm2, %v5042_v52  ;;  %v8619_v52 = vpop.f32.mrf.mxu2 }
 0x47a   : > { %6173 = vmatmul.msk.f32.gmra.mxu0 %vm2758_vm2, %v8461_v27 }
 0x47b   : > { %6109 = vmatmul.msk.f32.gmra.mxu2 %vm2758_vm2, %v8239_v25  ;;  %v8623_v25 = vld [vmem:[#allocation2 + $0x182] sm:$0xff] }
 0x47c   : > { %6141 = vmatmul.msk.f32.gmra.mxu3 %vm2758_vm2, %v9100_v20  ;;  %v8614_v37 = vpop.f32.mrf.mxu1  ;;  %v5044_v20 = vld [vmem:[#allocation2 + $0xda] sm:$0xff] }
 0x47d   : > { %9101 = vst [vmem:[#allocation37_spill] sm:$0xff] %v8614_v37  ;;  %v9103_v37 = vld [vmem:[#allocation18_spill] sm:$0xff]  ;;  %v8637_v61 = vpop.f32.mrf.mxu0 }
 0x47e   : > { %v4175_v10 = vadd.f32 %v8260_v0, %v9103_v37  ;;  %v5045_v0 = vld [vmem:[#allocation2 + $0xe2] sm:$0xff] }
 0x47f   : > { %6189 = vmatmul.msk.f32.gmra.mxu1 %vm2758_vm2, %v5043_v12  ;;  %v4787_v12 = vld [vmem:[#allocation2 + $0x1a1] sm:$0xff] }
 0x480   : > { %v4449_v58 = vadd.f32 %v8524_v21, %v4175_v10  ;;  %v9104_v10 = vld [vmem:[#allocation20_spill] sm:$0xff] }
 0x481   : > { %v4176_v21 = vadd.f32 %v8273_v41, %v9104_v10  ;;  %v9105_v41 = vld [vmem:[#allocation22_spill] sm:$0xff] }
 0x482   : > { %6174 = vmatmul.msk.f32.gmra.mxu0 %vm2758_vm2, %v4786_v34  ;;  %v8639_v34 = vpop.f32.mrf.mxu2  ;;  %v4724_v37 = vadd.f32 %v8526_v55, %v4449_v58 }
 0x483   : > { %6110 = vmatmul.msk.f32.gmra.mxu2 %vm2758_vm2, %v8623_v25 }
 0x484   : > { %v8628_v27 = vpop.f32.mrf.mxu1  ;;  %6142 = vmatmul.msk.f32.gmra.mxu3 %vm2758_vm2, %v4512_v42  ;;  %v8644_v42 = vpop.f32.mrf.mxu3  ;;  %v4998_v17 = vadd.f32 %v8522_v47, %v4724_v37 }
 0x485   : > { %9102 = vst [vmem:[#allocation36_spill] sm:$0xff] %v8628_v27  ;;  %v4450_v27 = vadd.f32 %v8538_v14, %v4176_v21  ;;  %v4177_v14 = vadd.f32 %v8286_v51, %v9105_v41  ;;  %v5047_v21 = vld [vmem:[#allocation2 + $0xfa] sm:$0xff]  ;;  %v5048_v41 = vld [vmem:[#allocation2 + $0x10a] sm:$0xff] }
 0x486   : > { %v9106_v51 = vld [vmem:[#allocation24_spill] sm:$0xff] }
 0x487   : > { %6190 = vmatmul.msk.f32.gmra.mxu1 %vm2758_vm2, %v5044_v20  ;;  %v4725_v55 = vadd.f32 %v8541_v31, %v4450_v27 }
 0x48a   : > { %6175 = vmatmul.msk.f32.gmra.mxu0 %vm2758_vm2, %v4787_v12  ;;  %v8667_v47 = vpop.f32.mrf.mxu2 }
 0x48b   : > { %6111 = vmatmul.msk.f32.gmra.mxu2 %vm2758_vm2, %v8634_v16 }
 0x48c   : > { %v8646_v20 = vpop.f32.mrf.mxu1  ;;  %6143 = vmatmul.msk.f32.gmra.mxu3 %vm2758_vm2, %v4513_v9  ;;  %v5046_v9 = vld [vmem:[#allocation2 + $0xf2] sm:$0xff] }
 0x48f   : > { %6191 = vmatmul.msk.f32.gmra.mxu1 %vm2758_vm2, %v5045_v0  ;;  %v4999_v0 = vadd.f32 %v8536_v3, %v4725_v55 }
 0x492   : > { %v8683_v55 = vpop.f32.mrf.mxu2 }
 0x494   : > { %v5176_v12 = vpop.f32.mrf.mxu1 }
 0x495   : > { %v5272_v62 = vadd.f32 %v5176_v12, %v4998_v17  ;;  %v4451_v17 = vadd.f32 %v8553_v23, %v4177_v14  ;;  %v4178_v12 = vadd.f32 %v8299_v28, %v9106_v51  ;;  %v9107_v28 = vld [vmem:[#allocation26_spill] sm:$0xff] }
 0x497   : > { %v5304_v58 = vmax.f32 %v5272_v62, 0.0  ;;  %6192 = vmatmul.msk.f32.gmra.mxu1 %vm2758_vm2, %v5046_v9  ;;  %v4726_v31 = vadd.f32 %v8555_v30, %v4451_v17  ;;  %v8673_v62 = vpop.f32.mrf.mxu3  ;;  %v4452_v23 = vadd.f32 %v8567_v8, %v4178_v12  ;;  %v8680_v9 = vpop.f32.mrf.mxu0 }
 0x499   : > { %5336 = vst.msk [vmem:[%s8659_s21] sm:$0xff] %vm2758_vm2, %v5304_v58  ;;  %v5000_v3 = vadd.f32 %v8551_v38, %v4726_v31  ;;  %v4727_v14 = vadd.f32 %v8573_v49, %v4452_v23 }
 0x49a   : > { %v8697_v49 = vpop.f32.mrf.mxu2 }
 0x49c   : > { %v5179_v37 = vpop.f32.mrf.mxu1 }
 0x49d   : > { %v5273_v10 = vadd.f32 %v5179_v37, %v4999_v0  ;;  %v4179_v0 = vadd.f32 %v8312_v39, %v9107_v28  ;;  %v5001_v37 = vadd.f32 %v8565_v46, %v4727_v14  ;;  %v9108_v39 = vld [vmem:[#allocation28_spill] sm:$0xff]  ;;  %v9109_v28 = vld [vmem:[#allocation30_spill] sm:$0xff] }
 0x49e   : > { %v4180_v23 = vadd.f32 %v8325_v2, %v9108_v39 }
 0x49f   : > { %v5305_v27 = vmax.f32 %v5273_v10, 0.0  ;;  %6193 = vmatmul.msk.f32.gmra.mxu1 %vm2758_vm2, %v5047_v21  ;;  %v8691_v8 = vpop.f32.mrf.mxu3  ;;  %v4453_v38 = vadd.f32 %v8588_v13, %v4179_v0  ;;  %v8695_v21 = vpop.f32.mrf.mxu0 }
 0x4a0   : > { %v4454_v13 = vadd.f32 %v8603_v50, %v4180_v23  ;;  %v4181_v50 = vadd.f32 %v8338_v57, %v9109_v28 }
 0x4a1   : > { %5337 = vst.msk [vmem:[%s8659_s21 + $0x8] sm:$0xff] %vm2758_vm2, %v5305_v27  ;;  %v5049_v27 = vld [vmem:[#allocation2 + $0x112] sm:$0xff]  ;;  %v4728_v51 = vadd.f32 %v8590_v35, %v4453_v38 }
 0x4a2   : > { %v4729_v35 = vadd.f32 %v8606_v54, %v4454_v13  ;;  %v8713_v2 = vpop.f32.mrf.mxu2 }
 0x4a3   : > { %v5002_v46 = vadd.f32 %v8586_v29, %v4728_v51  ;;  %v4455_v29 = vadd.f32 %v8619_v52, %v4181_v50  ;;  %v9110_v51 = vld [vmem:[#allocation32_spill] sm:$0xff] }
 0x4a4   : > { %v5182_v30 = vpop.f32.mrf.mxu1  ;;  %v5003_v0 = vadd.f32 %v8601_v63, %v4729_v35  ;;  %v4182_v57 = vadd.f32 %v8351_v43, %v9110_v51 }
 0x4a5   : > { %v5274_v58 = vadd.f32 %v5182_v30, %v5000_v3 }
 0x4a6   : > { %v4456_v63 = vadd.f32 %v8639_v34, %v4182_v57  ;;  %v5054_v57 = vld [vmem:[#allocation2 + $0x152] sm:$0xff] }
 0x4a7   : > { %v5306_v17 = vmax.f32 %v5274_v58, 0.0  ;;  %6194 = vmatmul.msk.f32.gmra.mxu1 %vm2758_vm2, %v5048_v41  ;;  %v8707_v3 = vpop.f32.mrf.mxu3  ;;  %v5050_v41 = vld [vmem:[#allocation2 + $0x122] sm:$0xff]  ;;  %v8710_v14 = vpop.f32.mrf.mxu0 }
 0x4a9   : > { %5338 = vst.msk [vmem:[%s8659_s21 + $0x10] sm:$0xff] %vm2758_vm2, %v5306_v17 }
 0x4aa   : > { %v8731_v52 = vpop.f32.mrf.mxu2 }
 0x4ac   : > { %v5185_v10 = vpop.f32.mrf.mxu1 }
 0x4ad   : > { %v5275_v31 = vadd.f32 %v5185_v10, %v5001_v37  ;;  %v5051_v10 = vld [vmem:[#allocation2 + $0x12a] sm:$0xff] }
 0x4af   : > { %v5307_v12 = vmax.f32 %v5275_v31, 0.0  ;;  %6195 = vmatmul.msk.f32.gmra.mxu1 %vm2758_vm2, %v5049_v27  ;;  %v8721_v54 = vpop.f32.mrf.mxu3  ;;  %v4730_v31 = vadd.f32 %v8621_v18, %v4455_v29  ;;  %v5052_v18 = vld [vmem:[#allocation2 + $0x13a] sm:$0xff] }
 0x4b1   : > { %5339 = vst.msk [vmem:[%s8659_s21 + $0x18] sm:$0xff] %vm2758_vm2, %v5307_v12  ;;  %v8727_v12 = vpop.f32.mrf.mxu0  ;;  %v5004_v39 = vadd.f32 %v8617_v19, %v4730_v31 }
 0x4b4   : > { %v5188_v30 = vpop.f32.mrf.mxu1 }
 0x4b5   : > { %v5276_v58 = vadd.f32 %v5188_v30, %v5002_v46  ;;  %v4731_v46 = vadd.f32 %v8644_v42, %v4456_v63  ;;  %v5053_v42 = vld [vmem:[#allocation2 + $0x142] sm:$0xff] }
 0x4b7   : > { %v5308_v17 = vmax.f32 %v5276_v58, 0.0  ;;  %6196 = vmatmul.msk.f32.gmra.mxu1 %vm2758_vm2, %v5050_v41  ;;  %v4664_v43 = vpop.f32.mrf.mxu3  ;;  %v9111_v58 = vld [vmem:[#allocation34_spill] sm:$0xff]  ;;  %v5005_v19 = vadd.f32 %v8637_v61, %v4731_v46  ;;  %v5055_v46 = vld [vmem:[#allocation2 + $0x15a] sm:$0xff] }
 0x4b8   : > { %v4183_v41 = vadd.f32 %v8364_v22, %v9111_v58 }
 0x4b9   : > { %5340 = vst.msk [vmem:[%s8659_s21 + $0x20] sm:$0xff] %vm2758_vm2, %v5308_v17  ;;  %v8742_v34 = vpop.f32.mrf.mxu0  ;;  %v4392_v17 = vpop.f32.mrf.mxu2 }
 0x4ba   : > { %v4457_v35 = vadd.f32 %v8667_v47, %v4183_v41 }
 0x4bc   : > { %v5191_v38 = vpop.f32.mrf.mxu1  ;;  %v4732_v29 = vadd.f32 %v8673_v62, %v4457_v35  ;;  %v9114_v35 = vld [vmem:[#allocation6_spill] sm:$0xff] }
 0x4bd   : > { %v5277_v37 = vadd.f32 %v5191_v38, %v5003_v0  ;;  %v9112_v38 = vld [vmem:[#allocation39_spill] sm:$0xff] }
 0x4be   : > { %v4184_v22 = vadd.f32 %v8377_v59, %v9112_v38  ;;  %v5006_v61 = vadd.f32 %v8680_v9, %v4732_v29 }
 0x4bf   : > { %v5309_v27 = vmax.f32 %v5277_v37, 0.0  ;;  %6197 = vmatmul.msk.f32.gmra.mxu1 %vm2758_vm2, %v5051_v10  ;;  %v4667_v47 = vpop.f32.mrf.mxu3 }
 0x4c0   : > { %v4458_v37 = vadd.f32 %v8683_v55, %v4184_v22 }
 0x4c1   : > { %5341 = vst.msk [vmem:[%s8659_s21 + $0x28] sm:$0xff] %vm2758_vm2, %v5309_v27  ;;  %v4941_v31 = vpop.f32.mrf.mxu0  ;;  %v4395_v51 = vpop.f32.mrf.mxu2 }
 0x4c2   : > { %v4733_v62 = vadd.f32 %v8691_v8, %v4458_v37 }
 0x4c4   : > { %v5194_v23 = vpop.f32.mrf.mxu1  ;;  %v5007_v9 = vadd.f32 %v8695_v21, %v4733_v62  ;;  %v9116_v62 = vld [vmem:[#allocation9_spill] sm:$0xff] }
 0x4c5   : > { %v5278_v13 = vadd.f32 %v5194_v23, %v5004_v39  ;;  %v9113_v39 = vld [vmem:[#allocation4_spill] sm:$0xff] }
 0x4c6   : > { %v4185_v59 = vadd.f32 %v8390_v26, %v9113_v39  ;;  %v4186_v26 = vadd.f32 %v8403_v1, %v9114_v35 }
 0x4c7   : > { %v5310_v30 = vmax.f32 %v5278_v13, 0.0  ;;  %6198 = vmatmul.msk.f32.gmra.mxu1 %vm2758_vm2, %v5052_v18  ;;  %v4670_v23 = vpop.f32.mrf.mxu3 }
 0x4c8   : > { %v4459_v55 = vadd.f32 %v8697_v49, %v4185_v59  ;;  %v4460_v49 = vadd.f32 %v8713_v2, %v4186_v26 }
 0x4c9   : > { %5342 = vst.msk [vmem:[%s8659_s21 + $0x30] sm:$0xff] %vm2758_vm2, %v5310_v30  ;;  %v4944_v8 = vpop.f32.mrf.mxu0  ;;  %v4398_v41 = vpop.f32.mrf.mxu2 }
 0x4ca   : > { %v4734_v30 = vadd.f32 %v8707_v3, %v4459_v55  ;;  %v4735_v3 = vadd.f32 %v8721_v54, %v4460_v49 }
 0x4cc   : > { %v5197_v28 = vpop.f32.mrf.mxu1  ;;  %v5008_v21 = vadd.f32 %v8710_v14, %v4734_v30  ;;  %v5009_v14 = vadd.f32 %v8727_v12, %v4735_v3 }
 0x4cd   : > { %v5279_v50 = vadd.f32 %v5197_v28, %v5005_v19 }
 0x4cf   : > { %v5311_v0 = vmax.f32 %v5279_v50, 0.0  ;;  %6199 = vmatmul.msk.f32.gmra.mxu1 %vm2758_vm2, %v5053_v42  ;;  %v4673_v50 = vpop.f32.mrf.mxu3  ;;  %v5056_v42 = vld [vmem:[#allocation2 + $0x16a] sm:$0xff] }
 0x4d1   : > { %5343 = vst.msk [vmem:[%s8659_s21 + $0x38] sm:$0xff] %vm2758_vm2, %v5311_v0  ;;  %v9115_v0 = vld [vmem:[#allocation8_spill] sm:$0xff]  ;;  %v4947_v1 = vpop.f32.mrf.mxu0  ;;  %v4401_v22 = vpop.f32.mrf.mxu2 }
 0x4d2   : > { %v4187_v38 = vadd.f32 %v8416_v40, %v9115_v0  ;;  %v4188_v40 = vadd.f32 %v8429_v45, %v9116_v62 }
 0x4d4   : > { %v5200_v10 = vpop.f32.mrf.mxu1  ;;  %v4461_v2 = vadd.f32 %v8731_v52, %v4187_v38 }
 0x4d5   : > { %v5280_v27 = vadd.f32 %v5200_v10, %v5006_v61  ;;  %v5057_v10 = vld [vmem:[#allocation2 + $0x172] sm:$0xff] }
 0x4d7   : > { %v5312_v63 = vmax.f32 %v5280_v27, 0.0  ;;  %6200 = vmatmul.msk.f32.gmra.mxu1 %vm2758_vm2, %v5054_v57  ;;  %v4736_v27 = vadd.f32 %v4664_v43, %v4461_v2  ;;  %v4676_v57 = vpop.f32.mrf.mxu3  ;;  %v4192_v2 = vadd.f32 %v8480_v53, %v8283_v44 }
 0x4d9   : > { %5344 = vst.msk [vmem:[%s8659_s21 + $0x40] sm:$0xff] %vm2758_vm2, %v5312_v63  ;;  %v4462_v63 = vadd.f32 %v4392_v17, %v4188_v40  ;;  %v4950_v39 = vpop.f32.mrf.mxu0  ;;  %v5010_v52 = vadd.f32 %v8742_v34, %v4736_v27  ;;  %v4404_v59 = vpop.f32.mrf.mxu2 }
 0x4dc   : > { %v5203_v13 = vpop.f32.mrf.mxu1 }
 0x4dd   : > { %v5281_v18 = vadd.f32 %v5203_v13, %v5007_v9  ;;  %v4737_v9 = vadd.f32 %v4667_v47, %v4462_v63  ;;  %v9117_v13 = vld [vmem:[#allocation42_spill] sm:$0xff] }
 0x4df   : > { %v5313_v58 = vmax.f32 %v5281_v18, 0.0  ;;  %6201 = vmatmul.msk.f32.gmra.mxu1 %vm2758_vm2, %v5055_v46  ;;  %v4189_v18 = vadd.f32 %v8442_v7, %v9117_v13  ;;  %v4679_v45 = vpop.f32.mrf.mxu3  ;;  %v5011_v17 = vadd.f32 %v4941_v31, %v4737_v9  ;;  %v5060_v31 = vld [vmem:[#allocation2 + $0x19a] sm:$0xff] }
 0x4e1   : > { %5345 = vst.msk [vmem:[%s8659_s21 + $0x48] sm:$0xff] %vm2758_vm2, %v5313_v58  ;;  %v4463_v46 = vadd.f32 %v4395_v51, %v4189_v18  ;;  %v4953_v58 = vpop.f32.mrf.mxu0  ;;  %v4407_v35 = vpop.f32.mrf.mxu2 }
 0x4e3   : > { %v4738_v26 = vadd.f32 %v4670_v23, %v4463_v46  ;;  %v4195_v46 = vadd.f32 %v8504_v36, %v8322_v48 }
 0x4e4   : > { %v5206_v19 = vpop.f32.mrf.mxu1 }
 0x4e5   : > { %v5282_v28 = vadd.f32 %v5206_v19, %v5008_v21  ;;  %v5012_v47 = vadd.f32 %v4944_v8, %v4738_v26  ;;  %v5061_v8 = vld [vmem:[#allocation2 + $0x1a2] sm:$0xff] }
 0x4e7   : > { %v5314_v29 = vmax.f32 %v5282_v28, 0.0  ;;  %6202 = vmatmul.msk.f32.gmra.mxu1 %vm2758_vm2, %v5056_v42  ;;  %v4682_v21 = vpop.f32.mrf.mxu3 }
 0x4e9   : > { %5346 = vst.msk [vmem:[%s8659_s21 + $0x50] sm:$0xff] %vm2758_vm2, %v5314_v29  ;;  %v4956_v42 = vpop.f32.mrf.mxu0  ;;  %v4410_v23 = vpop.f32.mrf.mxu2 }
 0x4ec   : > { %v5209_v37 = vpop.f32.mrf.mxu1 }
 0x4ed   : > { %v5283_v61 = vadd.f32 %v5209_v37, %v5009_v14 }
 0x4ef   : > { %v5315_v54 = vmax.f32 %v5283_v61, 0.0  ;;  %6203 = vmatmul.msk.f32.gmra.mxu1 %vm2758_vm2, %v5057_v10  ;;  %v4685_v0 = vpop.f32.mrf.mxu3 }
 0x4f1   : > { %5347 = vst.msk [vmem:[%s8659_s21 + $0x58] sm:$0xff] %vm2758_vm2, %v5315_v54  ;;  %v4959_v14 = vpop.f32.mrf.mxu0  ;;  %v4193_v54 = vadd.f32 %v8488_v11, %v8296_v24 }
 0x4f4   : > { %v5212_v12 = vpop.f32.mrf.mxu1 }
 0x4f5   : > { %v5284_v55 = vadd.f32 %v5212_v12, %v5010_v52 }
 0x4f7   : > { %v5316_v43 = vmax.f32 %v5284_v55, 0.0  ;;  %6204 = vmatmul.msk.f32.gmra.mxu1 %vm2758_vm2, %v8623_v25  ;;  %v4190_v25 = vadd.f32 %v8457_v60, %v8257_v33  ;;  %v4688_v27 = vpop.f32.mrf.mxu3 }
 0x4f9   : > { %5348 = vst.msk [vmem:[%s8659_s21 + $0x60] sm:$0xff] %vm2758_vm2, %v5316_v43  ;;  %v4464_v7 = vadd.f32 %v4398_v41, %v4190_v25  ;;  %v4962_v62 = vpop.f32.mrf.mxu0  ;;  %v4196_v25 = vadd.f32 %v8512_v6, %v8335_v32 }
 0x4fb   : > { %v4739_v28 = vadd.f32 %v4673_v50, %v4464_v7 }
 0x4fc   : > { %v5215_v30 = vpop.f32.mrf.mxu1 }
 0x4fd   : > { %v5285_v34 = vadd.f32 %v5215_v30, %v5011_v17  ;;  %v5013_v60 = vadd.f32 %v4947_v1, %v4739_v28  ;;  %v9119_v28 = vld [vmem:[#allocation23_spill] sm:$0xff] }
 0x4ff   : > { %v5317_v49 = vmax.f32 %v5285_v34, 0.0  ;;  %6205 = vmatmul.msk.f32.gmra.mxu1 %vm2758_vm2, %v8634_v16  ;;  %v4191_v16 = vadd.f32 %v8472_v4, %v8270_v5  ;;  %v4413_v5 = vpop.f32.mrf.mxu2  ;;  %v4466_v4 = vadd.f32 %v4404_v59, %v4192_v2  ;;  %v4194_v59 = vadd.f32 %v8496_v15, %v8309_v56  ;;  %v4691_v12 = vpop.f32.mrf.mxu3 }
 0x500   : > { %v4469_v17 = vadd.f32 %v4413_v5, %v4195_v46 }
 0x501   : > { %5349 = vst.msk [vmem:[%s8659_s21 + $0x68] sm:$0xff] %vm2758_vm2, %v5317_v49  ;;  %v4465_v33 = vadd.f32 %v4401_v22, %v4191_v16  ;;  %v4741_v61 = vadd.f32 %v4679_v45, %v4466_v4  ;;  %v4468_v55 = vadd.f32 %v4410_v23, %v4194_v59  ;;  %v4965_v11 = vpop.f32.mrf.mxu0  ;;  %v9124_v59 = vld [vmem:[#allocation15_spill] sm:$0xff] }
 0x502   : > { %v4744_v34 = vadd.f32 %v4688_v27, %v4469_v17 }
 0x503   : > { %v4740_v38 = vadd.f32 %v4676_v57, %v4465_v33  ;;  %v4467_v57 = vadd.f32 %v4407_v35, %v4193_v54  ;;  %v5015_v44 = vadd.f32 %v4953_v58, %v4741_v61  ;;  %v4743_v18 = vadd.f32 %v4685_v0, %v4468_v55  ;;  %v9121_v0 = vld [vmem:[#allocation25_spill] sm:$0xff]  ;;  %v9122_v61 = vld [vmem:[#allocation11_spill] sm:$0xff] }
 0x504   : > { %v5218_v51 = vpop.f32.mrf.mxu1 }
 0x505   : > { %v5286_v19 = vadd.f32 %v5218_v51, %v5012_v47  ;;  %v5014_v37 = vadd.f32 %v4950_v39, %v4740_v38  ;;  %v4742_v52 = vadd.f32 %v4682_v21, %v4467_v57  ;;  %v5017_v30 = vadd.f32 %v4959_v14, %v4743_v18 }
 0x506   : > { %v5018_v47 = vadd.f32 %v4962_v62, %v4744_v34 }
 0x507   : > { %v5318_v3 = vmax.f32 %v5286_v19, 0.0  ;;  %6206 = vmatmul.msk.f32.gmra.mxu1 %vm2758_vm2, %v5060_v31  ;;  %v4416_v53 = vpop.f32.mrf.mxu2  ;;  %v5016_v9 = vadd.f32 %v4956_v42, %v4742_v52  ;;  %v4694_v56 = vpop.f32.mrf.mxu3  ;;  %v9118_v19 = vld [vmem:[#allocation40_spill] sm:$0xff] }
 0x508   : > { %v4470_v7 = vadd.f32 %v4416_v53, %v4196_v25  ;;  %v4197_v42 = vadd.f32 %v9119_v28, %v9118_v19 }
 0x509   : > { %5350 = vst.msk [vmem:[%s8659_s21 + $0x70] sm:$0xff] %vm2758_vm2, %v5318_v3  ;;  %v4968_v35 = vpop.f32.mrf.mxu0 }
 0x50a   : > { %v4745_v51 = vadd.f32 %v4691_v12, %v4470_v7  ;;  %v9125_v12 = vld [vmem:[#allocation29_spill] sm:$0xff] }
 0x50b   : > { %v4200_v55 = vadd.f32 %v9125_v12, %v9124_v59 }
 0x50c   : > { %v5221_v41 = vpop.f32.mrf.mxu1  ;;  %v5019_v33 = vadd.f32 %v4965_v11, %v4745_v51 }
 0x50d   : > { %v5287_v29 = vadd.f32 %v5221_v41, %v5013_v60 }
 0x50f   : > { %v5319_v50 = vmax.f32 %v5287_v29, 0.0  ;;  %6207 = vmatmul.msk.f32.gmra.mxu1 %vm2758_vm2, %v5061_v8  ;;  %v4419_v13 = vpop.f32.mrf.mxu2  ;;  %v4697_v21 = vpop.f32.mrf.mxu3  ;;  %v9120_v29 = vld [vmem:[#allocation13_spill] sm:$0xff] }
 0x510   : > { %v4471_v16 = vadd.f32 %v4419_v13, %v4197_v42  ;;  %v4198_v38 = vadd.f32 %v9121_v0, %v9120_v29 }
 0x511   : > { %5351 = vst.msk [vmem:[%s8659_s21 + $0x78] sm:$0xff] %vm2758_vm2, %v5319_v50  ;;  %v4971_v3 = vpop.f32.mrf.mxu0 }
 0x512   : > { %v4746_v60 = vadd.f32 %v4694_v56, %v4471_v16  ;;  %v9127_v56 = vld [vmem:[#allocation31_spill] sm:$0xff] }
 0x514   : > { %v5224_v22 = vpop.f32.mrf.mxu1  ;;  %v5020_v14 = vadd.f32 %v4968_v35, %v4746_v60 }
 0x515   : > { %v5288_v1 = vadd.f32 %v5224_v22, %v5014_v37 }
 0x517   : > { %v5320_v10 = vmax.f32 %v5288_v1, 0.0  ;;  %v4422_v49 = vpop.f32.mrf.mxu2  ;;  %v4700_v8 = vpop.f32.mrf.mxu3 }
 0x518   : > { %v4472_v50 = vadd.f32 %v4422_v49, %v4198_v38 }
 0x519   : > { %5352 = vst.msk [vmem:[%s8659_s21 + $0x80] sm:$0xff] %vm2758_vm2, %v5320_v10  ;;  %v4974_v2 = vpop.f32.mrf.mxu0  ;;  %v9123_v10 = vld [vmem:[#allocation27_spill] sm:$0xff] }
 0x51a   : > { %v4747_v22 = vadd.f32 %v4697_v21, %v4472_v50  ;;  %v4199_v27 = vadd.f32 %v9123_v10, %v9122_v61 }
 0x51c   : > { %v5227_v40 = vpop.f32.mrf.mxu1  ;;  %v5021_v62 = vadd.f32 %v4971_v3, %v4747_v22 }
 0x51d   : > { %v5289_v63 = vadd.f32 %v5227_v40, %v5015_v44 }
 0x51f   : > { %v5321_v39 = vmax.f32 %v5289_v63, 0.0  ;;  %v4425_v23 = vpop.f32.mrf.mxu2  ;;  %v4703_v54 = vpop.f32.mrf.mxu3 }
 0x520   : > { %v4473_v57 = vadd.f32 %v4425_v23, %v4199_v27 }
 0x521   : > { %5353 = vst.msk [vmem:[%s8659_s21 + $0x88] sm:$0xff] %vm2758_vm2, %v5321_v39  ;;  %v4977_v53 = vpop.f32.mrf.mxu0 }
 0x522   : > { %v4748_v52 = vadd.f32 %v4700_v8, %v4473_v57 }
 0x524   : > { %v5230_v24 = vpop.f32.mrf.mxu1 }
 0x525   : > { %v5290_v43 = vadd.f32 %v5230_v24, %v5016_v9  ;;  %v5022_v24 = vadd.f32 %v4974_v2, %v4748_v52 }
 0x527   : > { %v5322_v45 = vmax.f32 %v5290_v43, 0.0  ;;  %v4428_v5 = vpop.f32.mrf.mxu2  ;;  %v4706_v11 = vpop.f32.mrf.mxu3 }
 0x528   : > { %v4474_v9 = vadd.f32 %v4428_v5, %v4200_v55  ;;  %v9133_v5 = vld [vmem:[#allocation37_spill] sm:$0xff] }
 0x529   : > { %5354 = vst.msk [vmem:[%s8659_s21 + $0x90] sm:$0xff] %vm2758_vm2, %v5322_v45  ;;  %v4980_v45 = vpop.f32.mrf.mxu0 }
 0x52a   : > { %v4749_v18 = vadd.f32 %v4703_v54, %v4474_v9 }
 0x52c   : > { %v5233_v15 = vpop.f32.mrf.mxu1  ;;  %v5023_v34 = vadd.f32 %v4977_v53, %v4749_v18  ;;  %v9135_v53 = vld [vmem:[#allocation36_spill] sm:$0xff] }
 0x52d   : > { %v5291_v58 = vadd.f32 %v5233_v15, %v5017_v30  ;;  %v9126_v30 = vld [vmem:[#allocation12_spill] sm:$0xff] }
 0x52e   : > { %v4201_v15 = vadd.f32 %v9127_v56, %v9126_v30 }
 0x52f   : > { %v5323_v26 = vmax.f32 %v5291_v58, 0.0  ;;  %v4431_v63 = vpop.f32.mrf.mxu2  ;;  %v4709_v49 = vpop.f32.mrf.mxu3 }
 0x530   : > { %v4475_v58 = vadd.f32 %v4431_v63, %v4201_v15 }
 0x531   : > { %5355 = vst.msk [vmem:[%s8659_s21 + $0x98] sm:$0xff] %vm2758_vm2, %v5323_v26  ;;  %v4983_v21 = vpop.f32.mrf.mxu0 }
 0x532   : > { %v4750_v25 = vadd.f32 %v4706_v11, %v4475_v58 }
 0x534   : > { %v5236_v48 = vpop.f32.mrf.mxu1  ;;  %v5024_v19 = vadd.f32 %v4980_v45, %v4750_v25 }
 0x535   : > { %v5292_v36 = vadd.f32 %v5236_v48, %v5018_v47  ;;  %v9128_v47 = vld [vmem:[#allocation17_spill] sm:$0xff] }
 0x536   : > { %v9129_v48 = vld [vmem:[#allocation33_spill] sm:$0xff] }
 0x537   : > { %v5324_v31 = vmax.f32 %v5292_v36, 0.0  ;;  %v4434_v17 = vpop.f32.mrf.mxu2  ;;  %v4202_v36 = vadd.f32 %v9129_v48, %v9128_v47  ;;  %v4712_v16 = vpop.f32.mrf.mxu3 }
 0x539   : > { %5356 = vst.msk [vmem:[%s8659_s21 + $0xa0] sm:$0xff] %vm2758_vm2, %v5324_v31  ;;  %v4476_v31 = vadd.f32 %v4434_v17, %v4202_v36  ;;  %v4986_v60 = vpop.f32.mrf.mxu0 }
 0x53b   : > { %v4751_v3 = vadd.f32 %v4709_v49, %v4476_v31 }
 0x53c   : > { %v5239_v32 = vpop.f32.mrf.mxu1 }
 0x53d   : > { %v5293_v6 = vadd.f32 %v5239_v32, %v5019_v33  ;;  %v9130_v33 = vld [vmem:[#allocation14_spill] sm:$0xff]  ;;  %v9131_v32 = vld [vmem:[#allocation35_spill] sm:$0xff]  ;;  %v5025_v8 = vadd.f32 %v4983_v21, %v4751_v3 }
 0x53f   : > { %v5325_v41 = vmax.f32 %v5293_v6, 0.0  ;;  %v4437_v51 = vpop.f32.mrf.mxu2  ;;  %v4203_v6 = vadd.f32 %v9131_v32, %v9130_v33 }
 0x541   : > { %5357 = vst.msk [vmem:[%s8659_s21 + $0xa8] sm:$0xff] %vm2758_vm2, %v5325_v41  ;;  %v4477_v41 = vadd.f32 %v4437_v51, %v4203_v6  ;;  %v4989_v27 = vpop.f32.mrf.mxu0 }
 0x543   : > { %v4752_v50 = vadd.f32 %v4712_v16, %v4477_v41 }
 0x544   : > { %v5242_v4 = vpop.f32.mrf.mxu1 }
 0x545   : > { %v5294_v37 = vadd.f32 %v5242_v4, %v5020_v14  ;;  %v9132_v14 = vld [vmem:[#allocation19_spill] sm:$0xff] }
 0x546   : > { %v4204_v4 = vadd.f32 %v9133_v5, %v9132_v14 }
 0x547   : > { %v5326_v1 = vmax.f32 %v5294_v37, 0.0  ;;  %v4440_v29 = vpop.f32.mrf.mxu2  ;;  %v4715_v37 = vpop.f32.mrf.mxu3 }
 0x548   : > { %v4478_v22 = vadd.f32 %v4440_v29, %v4204_v4 }
 0x549   : > { %5358 = vst.msk [vmem:[%s8659_s21 + $0xb0] sm:$0xff] %vm2758_vm2, %v5326_v1  ;;  %v5026_v1 = vadd.f32 %v4986_v60, %v4752_v50  ;;  %v4992_v55 = vpop.f32.mrf.mxu0 }
 0x54a   : > { %v4753_v57 = vadd.f32 %v4715_v37, %v4478_v22 }
 0x54c   : > { %v5245_v44 = vpop.f32.mrf.mxu1 }
 0x54d   : > { %v5295_v40 = vadd.f32 %v5245_v44, %v5021_v62  ;;  %v9134_v44 = vld [vmem:[#allocation16_spill] sm:$0xff] }
 0x54f   : > { %v5327_v39 = vmax.f32 %v5295_v40, 0.0  ;;  %v4443_v54 = vpop.f32.mrf.mxu2  ;;  %v4205_v40 = vadd.f32 %v9135_v53, %v9134_v44  ;;  %v4718_v63 = vpop.f32.mrf.mxu3 }
 0x551   : > { %5359 = vst.msk [vmem:[%s8659_s21 + $0xb8] sm:$0xff] %vm2758_vm2, %v5327_v39  ;;  %v4479_v52 = vadd.f32 %v4443_v54, %v4205_v40  ;;  %v5027_v39 = vadd.f32 %v4989_v27, %v4753_v57  ;;  %v4995_v58 = vpop.f32.mrf.mxu0 }
 0x553   : > { %v4754_v9 = vadd.f32 %v4718_v63, %v4479_v52 }
 0x554   : > { %v5248_v43 = vpop.f32.mrf.mxu1 }
 0x555   : > { %v5296_v13 = vadd.f32 %v5248_v43, %v5022_v24  ;;  %v9136_v43 = vld [vmem:[#allocation21_spill] sm:$0xff]  ;;  %v5028_v18 = vadd.f32 %v4992_v55, %v4754_v9 }
 0x557   : > { %v5328_v46 = vmax.f32 %v5296_v13, 0.0  ;;  %v4446_v11 = vpop.f32.mrf.mxu2  ;;  %v4206_v13 = vadd.f32 %v8646_v20, %v9136_v43 }
 0x559   : > { %5360 = vst.msk [vmem:[%s8659_s21 + $0xc0] sm:$0xff] %vm2758_vm2, %v5328_v46  ;;  %v4480_v45 = vadd.f32 %v4446_v11, %v4206_v13  ;;  %v4721_v46 = vpop.f32.mrf.mxu3 }
 0x55b   : > { %v4755_v56 = vadd.f32 %v4721_v46, %v4480_v45 }
 0x55c   : > { %v5251_v35 = vpop.f32.mrf.mxu1 }
 0x55d   : > { %v5297_v26 = vadd.f32 %v5251_v35, %v5023_v34  ;;  %v5029_v34 = vadd.f32 %v4995_v58, %v4755_v56 }
 0x55f   : > { %v5329_v7 = vmax.f32 %v5297_v26, 0.0 }
 0x561   : > { %5361 = vst.msk [vmem:[%s8659_s21 + $0xc8] sm:$0xff] %vm2758_vm2, %v5329_v7 }
 0x564   : > { %v5254_v28 = vpop.f32.mrf.mxu1 }
 0x565   : > { %v5298_v42 = vadd.f32 %v5254_v28, %v5024_v19 }
 0x567   : > { %v5330_v23 = vmax.f32 %v5298_v42, 0.0 }
 0x569   : > { %5362 = vst.msk [vmem:[%s8659_s21 + $0xd0] sm:$0xff] %vm2758_vm2, %v5330_v23 }
 0x56c   : > { %v5257_v0 = vpop.f32.mrf.mxu1 }
 0x56d   : > { %v5299_v38 = vadd.f32 %v5257_v0, %v5025_v8 }
 0x56f   : > { %v5331_v2 = vmax.f32 %v5299_v38, 0.0 }
 0x571   : > { %5363 = vst.msk [vmem:[%s8659_s21 + $0xd8] sm:$0xff] %vm2758_vm2, %v5331_v2 }
 0x574   : > { %v5260_v61 = vpop.f32.mrf.mxu1 }
 0x575   : > { %v5300_v10 = vadd.f32 %v5260_v61, %v5026_v1 }
 0x577   : > { %v5332_v62 = vmax.f32 %v5300_v10, 0.0 }
 0x579   : > { %5364 = vst.msk [vmem:[%s8659_s21 + $0xe0] sm:$0xff] %vm2758_vm2, %v5332_v62 }
 0x57c   : > { %v5263_v59 = vpop.f32.mrf.mxu1 }
 0x57d   : > { %v5301_v12 = vadd.f32 %v5263_v59, %v5027_v39 }
 0x57f   : > { %v5333_v24 = vmax.f32 %v5301_v12, 0.0 }
 0x581   : > { %5365 = vst.msk [vmem:[%s8659_s21 + $0xe8] sm:$0xff] %vm2758_vm2, %v5333_v24 }
 0x584   : > { %v5266_v17 = vpop.f32.mrf.mxu1 }
 0x585   : > { %v5302_v30 = vadd.f32 %v5266_v17, %v5028_v18 }
 0x587   : > { %v5334_v15 = vmax.f32 %v5302_v30, 0.0 }
 0x589   : > { %5366 = vst.msk [vmem:[%s8659_s21 + $0xf0] sm:$0xff] %vm2758_vm2, %v5334_v15 }
 0x58c   : > { %v5269_v35 = vpop.f32.mrf.mxu1 }
 0x58d   : > { %v5303_v26 = vadd.f32 %v5269_v35, %v5029_v34 }
 0x58f   : > { %v5335_v49 = vmax.f32 %v5303_v26, 0.0 }
 0x591   : > { %5367 = vst.msk [vmem:[%s8659_s21 + $0xf8] sm:$0xff] %vm2758_vm2, %v5335_v49 }
 0x592 PF: > { %s15_s18 = sadd.s32 1, %s6231_s18  }
 0x593   : > { %p12_p4 = scmp.ge.s32.totalorder %s15_s18, 4  }
 0x595   :  { %14 = sbr.rel (!%p12_p4) target bundleno = 1 (0x1), region = 75 }

</bundles_post_ra>
